<compile_context>
chip_gen: v7x
topology: tpu7x:2x2x1
jax: 0.10.0
libtpu: 0.0.40
codegen_flags: <defaults>
</compile_context>

<pallas_src>
import jax
import jax.numpy as jnp
from jax import lax
from jax.experimental import pallas as pl
from jax.experimental.pallas import tpu as pltpu

EPS = 1e-5  # PyTorch nn.LayerNorm default eps


# ----------------------------- kernel helpers -------------------------------

def _norm(v):
    """LayerNorm WITHOUT affine (gain/bias folded into downstream weights).

    One-pass statistics (E[x^2] - E[x]^2) -> half the cross-lane reductions.
    Kept entirely in f32 (v5e has no bf16 VPU datapath).
    """
    mu = jnp.mean(v, axis=-1, keepdims=True)
    ms = jnp.mean(v * v, axis=-1, keepdims=True)
    var = jnp.maximum(ms - mu * mu, 0.0)
    return (v - mu) * lax.rsqrt(var + EPS)


def _softmax(scores):
    """f32 softmax; the reciprocal goes to the EUP slot (approx)."""
    scores = scores - jnp.max(scores, axis=-1, keepdims=True)
    p = jnp.exp(scores)
    denom = jnp.sum(p, axis=-1, keepdims=True)
    return p * pl.reciprocal(denom, approx=True)


def _make_kernel(D, mask_mode):
    """mask_mode: 'causal' (generated in-kernel), 'dense' (int8 mask ref), 'none'."""

    def kernel(*refs):
        if mask_mode == "dense":
            x_ref, y_ref, m_ref, w_ref, b_ref, o_ref, qkv_ref, kv_ref = refs
        else:
            x_ref, y_ref, w_ref, b_ref, o_ref, qkv_ref, kv_ref = refs

        x = x_ref[...].astype(jnp.float32)            # (Bt, S, D)
        Bt, S, _ = x.shape
        T = y_ref.shape[1]
        b = b_ref[...].astype(jnp.float32)            # (10, D) packed biases (tiny)

        def mm(a2d, w_slice):
            # bf16 operands on the MXU, f32 accumulation.
            return jnp.dot(a2d.astype(jnp.bfloat16), w_slice,
                           preferred_element_type=jnp.float32)

        # ---------------- att1: masked self-attention + residual ------------
        xn = _norm(x).reshape(Bt * S, D)
        # one wide fused (D,3D) matmul, staged through VMEM scratch
        qkv_ref[...] = mm(xn, w_ref[:, 0:3 * D]).reshape(Bt, S, 3 * D)
        q = (qkv_ref[:, :, 0 * D:1 * D] + b[0]).astype(jnp.bfloat16)  # 1/sqrt(D) folded
        k = (qkv_ref[:, :, 1 * D:2 * D] + b[1]).astype(jnp.bfloat16)
        v = (qkv_ref[:, :, 2 * D:3 * D] + b[2]).astype(jnp.bfloat16)
        s = jnp.einsum("bqd,bkd->bqk", q, k, preferred_element_type=jnp.float32)
        if mask_mode == "causal":
            row = lax.broadcasted_iota(jnp.int32, (S, S), 0)
            col = lax.broadcasted_iota(jnp.int32, (S, S), 1)
            s = jnp.where((row >= col)[None], s, jnp.float32(-1e9))
        elif mask_mode == "dense":
            s = jnp.where(m_ref[...].astype(jnp.int32) > 0, s, jnp.float32(-1e9))
        p = _softmax(s).astype(jnp.bfloat16)
        ctx = jnp.einsum("bqk,bkd->bqd", p, v, preferred_element_type=jnp.float32)
        x = x + (mm(ctx.reshape(Bt * S, D), w_ref[:, 3 * D:4 * D]).reshape(Bt, S, D)
                 + b[3])

        # ---------------- att2: cross-attention (no mask) + residual --------
        xn = _norm(x).reshape(Bt * S, D)
        yn = _norm(y_ref[...].astype(jnp.float32)).reshape(Bt * T, D)
        q2 = (mm(xn, w_ref[:, 4 * D:5 * D]).reshape(Bt, S, D)
              + b[4]).astype(jnp.bfloat16)                            # 1/sqrt(D) folded
        kv_ref[...] = mm(yn, w_ref[:, 5 * D:7 * D]).reshape(Bt, T, 2 * D)  # fused KV
        k2 = (kv_ref[:, :, 0:D] + b[5]).astype(jnp.bfloat16)
        v2 = (kv_ref[:, :, D:2 * D] + b[6]).astype(jnp.bfloat16)
        s2 = jnp.einsum("bqd,bkd->bqk", q2, k2, preferred_element_type=jnp.float32)
        p2 = _softmax(s2).astype(jnp.bfloat16)
        ctx2 = jnp.einsum("bqk,bkd->bqd", p2, v2, preferred_element_type=jnp.float32)
        x = x + (mm(ctx2.reshape(Bt * S, D), w_ref[:, 7 * D:8 * D]).reshape(Bt, S, D)
                 + b[7])

        # ---------------- feed-forward + residual ---------------------------
        h = jnp.maximum(
            mm(_norm(x).reshape(Bt * S, D), w_ref[:, 8 * D:9 * D]).reshape(Bt, S, D)
            + b[8], 0.0)
        x = x + (mm(_norm(h).reshape(Bt * S, D), w_ref[:, 9 * D:10 * D]).reshape(Bt, S, D)
                 + b[9])

        o_ref[...] = x.astype(o_ref.dtype)

    return kernel


# ----------------------------- host-side wrapper -----------------------------

def _tpu_vmem_capacity():
    """Generation-aware VMEM capacity (128 MiB v5e/v6e, 64 MiB v7x)."""
    try:
        return int(pltpu.get_tpu_info().vmem_capacity_bytes)
    except Exception:
        return 64 << 20  # conservative (v7x per-core)


def _step_bytes(bt, S, T, D, dense_mask, single_buf_w):
    """Rough per-grid-step VMEM working set."""
    f32, bf16 = 4, 2
    io = 2 * f32 * (2 * bt * S * D) + 2 * f32 * (bt * T * D)   # x/out + y (double-buffered)
    wb = (1 if single_buf_w else 2) * bf16 * (10 * D * D + 10 * D)
    msk = (2 * bt * S * S) if dense_mask else 0                # int8, double-buffered
    scr = f32 * bt * (S * 3 * D + T * 2 * D)                   # qkv / kv scratch
    live = f32 * bt * (2 * S * S + 6 * S * D + 2 * T * D)      # scores/probs/ctx/norms
    return io + wb + msk + scr + live


def _pick_bt(B, S, T, D, dense_mask, single_buf_w, capacity):
    """Largest divisor of B that fits the VMEM budget; keep >=2 grid steps.

    Maximizing Bt also maximizes Bt*S (MXU row fill for the 10 DxD projections);
    the cap at B//2 guarantees the "parallel" batch axis has work for both of
    v7x's TensorCores.
    """
    budget = int(0.7 * capacity)
    bt = 1
    for cand in range(1, B + 1):
        if B % cand == 0 and _step_bytes(cand, S, T, D, dense_mask, single_buf_w) <= budget:
            bt = cand
    if B >= 2:
        bt = min(bt, B // 2)
        while B % bt:
            bt -= 1
    return max(bt, 1)


def _vmem_limit_bytes(bt, S, T, D, dense_mask, single_buf_w, capacity):
    need = _step_bytes(bt, S, T, D, dense_mask, single_buf_w) + (8 << 20)
    return int(min(max(need, 32 << 20), int(0.9 * capacity)))


def block_forward(x, y, packed_w, packed_b, mask=None, causal=False):
    """x: (B,S,D), y: (B,T,D); mask: optional (B,S,S) (nonzero=attend) OR causal=True."""
    B, S, D = x.shape
    T = y.shape[1]
    if mask is not None and causal:
        raise ValueError("pass either a dense mask or causal=True, not both")
    mask_mode = "dense" if mask is not None else ("causal" if causal else "none")
    dense = mask_mode == "dense"
    if dense:
        mask = (mask != 0).astype(jnp.int8)   # 4x less HBM/VMEM than an f32 mask

    capacity = _tpu_vmem_capacity()

    def run(single_buffer_weights):
        Bt = _pick_bt(B, S, T, D, dense, single_buffer_weights, capacity)
        grid = (B // Bt,)

        in_specs = [
            pl.BlockSpec((Bt, S, D), lambda i: (i, 0, 0)),        # x
            pl.BlockSpec((Bt, T, D), lambda i: (i, 0, 0)),        # y
        ]
        args = [x, y]
        if dense:
            in_specs.append(pl.BlockSpec((Bt, S, S), lambda i: (i, 0, 0)))  # int8 mask
            args.append(mask)

        # Invariant packed weights/biases: single-buffer (constant index_map).
        wkw = {"pipeline_mode": pl.Buffered(1)} if single_buffer_weights else {}
        in_specs += [
            pl.BlockSpec((D, 10 * D), lambda i: (0, 0), **wkw),   # bf16 weight slab
            pl.BlockSpec((10, D), lambda i: (0, 0), **wkw),       # bf16 bias slab
        ]
        args += [packed_w, packed_b]

        flops = 2 * B * S * 10 * D * D + 4 * B * S * S * D + 4 * B * S * T * D
        transcendentals = B * S * (S + T)
        bytes_accessed = (4 * (2 * B * S * D + B * T * D)
                          + 2 * (10 * D * D + 10 * D)
                          + (B * S * S if dense else 0))

        out = pl.pallas_call(
            _make_kernel(D, mask_mode),
            out_shape=jax.ShapeDtypeStruct((B, S, D), jnp.float32),
            grid=grid,
            in_specs=in_specs,
            out_specs=pl.BlockSpec((Bt, S, D), lambda i: (i, 0, 0)),
            scratch_shapes=[pltpu.VMEM((Bt, S, 3 * D), jnp.float32),   # fused QKV
                            pltpu.VMEM((Bt, T, 2 * D), jnp.float32)],  # fused KV
            compiler_params=pltpu.CompilerParams(
                dimension_semantics=("parallel",),   # batch axis -> 2-TC sharding on v7x
                vmem_limit_bytes=_vmem_limit_bytes(Bt, S, T, D, dense,
                                                   single_buffer_weights, capacity)),
            cost_estimate=pl.CostEstimate(flops=flops,
                                          transcendentals=transcendentals,
                                          bytes_accessed=bytes_accessed),
        )(*args)
        return jax.block_until_ready(out)

    try:
        return run(True)
    except Exception:
        # pl.Buffered(1) single-buffering may be unsupported on some jax builds;
        # fall back to default (double-buffered) invariant weight blocks.
        return run(False)


# --------------------- parameters: module layout + folding -------------------

def init_raw_params(key, d):
    """Synthetic params laid out like the PyTorch module (LayerNorm + nn.Linear)."""
    ks = iter(jax.random.split(key, 16))
    scale = 1.0 / jnp.sqrt(jnp.float32(d))

    def attn():
        return dict(
            ln_g=1.0 + 0.1 * jax.random.normal(next(ks), (3, d), jnp.float32),
            ln_b=0.1 * jax.random.normal(next(ks), (3, d), jnp.float32),
            w=jax.random.normal(next(ks), (3, d, d), jnp.float32) * scale,
            b=0.01 * jax.random.normal(next(ks), (3, d), jnp.float32),
            wo=jax.random.normal(next(ks), (d, d), jnp.float32) * scale,
            bo=0.01 * jax.random.normal(next(ks), (d,), jnp.float32),
        )

    def feed():
        return dict(
            ln_g=1.0 + 0.1 * jax.random.normal(next(ks), (2, d), jnp.float32),
            ln_b=0.1 * jax.random.normal(next(ks), (2, d), jnp.float32),
            w=jax.random.normal(next(ks), (2, d, d), jnp.float32) * scale,
            b=0.01 * jax.random.normal(next(ks), (2, d), jnp.float32),
        )

    return dict(att1=attn(), att2=attn(), feed=feed())


def _fold(ln_g, ln_b, w, b):
    """LayerNorm(g, b) + Linear(w, b)  ->  plain_norm(x) @ w' + b'."""
    return ln_g[:, None] * w, ln_b @ w + b


def pack_params(raw, d):
    """Fold LN affine (+ 1/sqrt(D) for q) into weights, pack into 2 bf16 slabs."""
    inv_sqrt_d = 1.0 / jnp.sqrt(jnp.float32(d))

    def fold_attn(p):
        ws, bs = [], []
        for i in range(3):
            wf, bf = _fold(p["ln_g"][i], p["ln_b"][i], p["w"][i], p["b"][i])
            if i == 0:  # q projection: fold the logits scale in too
                wf = wf * inv_sqrt_d
                bf = bf * inv_sqrt_d
            ws.append(wf)
            bs.append(bf)
        return ws, bs

    w1, b1 = fold_attn(raw["att1"])
    w2, b2 = fold_attn(raw["att2"])
    fw, fb = [], []
    for i in range(2):
        wf, bf = _fold(raw["feed"]["ln_g"][i], raw["feed"]["ln_b"][i],
                       raw["feed"]["w"][i], raw["feed"]["b"][i])
        fw.append(wf)
        fb.append(bf)

    w_cols = [w1[0], w1[1], w1[2], raw["att1"]["wo"],
              w2[0], w2[1], w2[2], raw["att2"]["wo"],
              fw[0], fw[1]]
    b_rows = [b1[0], b1[1], b1[2], raw["att1"]["bo"],
              b2[0], b2[1], b2[2], raw["att2"]["bo"],
              fb[0], fb[1]]

    # bf16 storage: halves weight DMA/VMEM, MXU is bf16-native on v5e/v6e/v7x.
    packed_w = jnp.concatenate(w_cols, axis=1).astype(jnp.bfloat16)   # (d, 10*d)
    packed_b = jnp.stack(b_rows, axis=0).astype(jnp.bfloat16)         # (10, d)
    return packed_w, packed_b


# --------------------------- pure-JAX reference -------------------------------

def block_reference(x, y, mask, raw):
    def ln(v, g, b):
        mu = v.mean(-1, keepdims=True)
        var = ((v - mu) ** 2).mean(-1, keepdims=True)
        return (v - mu) / jnp.sqrt(var + EPS) * g + b

    def attn(q_in, kv_in, p, m):
        d = q_in.shape[-1]
        q = ln(q_in, p["ln_g"][0], p["ln_b"][0]) @ p["w"][0] + p["b"][0]
        k = ln(kv_in, p["ln_g"][1], p["ln_b"][1]) @ p["w"][1] + p["b"][1]
        v = ln(kv_in, p["ln_g"][2], p["ln_b"][2]) @ p["w"][2] + p["b"][2]
        s = jnp.einsum("bqd,bkd->bqk", q, k) / jnp.sqrt(jnp.float32(d))
        if m is not None:
            s = jnp.where(m > 0.5, s, -1e9)
        pr = jax.nn.softmax(s, axis=-1)
        return jnp.einsum("bqk,bkd->bqd", pr, v) @ p["wo"] + p["bo"]

    x = x + attn(x, x, raw["att1"], mask)
    x = x + attn(x, y, raw["att2"], None)
    f = raw["feed"]
    h = jax.nn.relu(ln(x, f["ln_g"][0], f["ln_b"][0]) @ f["w"][0] + f["b"][0])
    x = x + ln(h, f["ln_g"][1], f["ln_b"][1]) @ f["w"][1] + f["b"][1]
    return x


# ------------------------------------ demo ------------------------------------

if __name__ == "__main__":
    # lane-dense shapes: D multiple of 128, S/T multiples of 8
    B, S, T, D = 2, 8, 8, 128
    key = jax.random.PRNGKey(0)
    kx, ky, kp = jax.random.split(key, 3)

    x = jax.random.normal(kx, (B, S, D), jnp.float32)
    y = jax.random.normal(ky, (B, T, D), jnp.float32)

    raw = init_raw_params(kp, D)
    packed_w, packed_b = pack_params(raw, D)

    # 1) causal self-attention mask generated in-kernel (no HBM mask traffic)
    out_causal = block_forward(x, y, packed_w, packed_b, causal=True)
    jax.block_until_ready(out_causal)

    # 2) equivalent dense (int8) mask path
    mask_f = jnp.broadcast_to(jnp.tril(jnp.ones((S, S), jnp.float32)), (B, S, S))
    out_dense = block_forward(x, y, packed_w, packed_b, mask=mask_f)
    jax.block_until_ready(out_dense)

    # correctness vs. pure-JAX f32 reference (bf16 MXU operands -> looser tolerance)
    ref = block_reference(x, y, mask_f, raw)
    for out in (out_causal, out_dense):
        assert out.shape == (B, S, D) and out.dtype == jnp.float32
        assert bool(jnp.all(jnp.isfinite(out)))
        err = jnp.abs(out - ref)
        max_err = float(jnp.max(err))
        mean_err = float(jnp.mean(err))
        assert max_err < 1.5e-1, f"max abs err {max_err}"
        assert mean_err < 3e-2, f"mean abs err {mean_err}"

    print("KERNEL_OK")
</pallas_src>

<mosaic_0001>
module attributes {stable_mosaic.version = 11 : i64} {
  func.func @kernel(%arg0: i32, %arg1: memref<1x8x128xf32, #tpu.memory_space<vmem>>, %arg2: memref<1x8x128xf32, #tpu.memory_space<vmem>>, %arg3: memref<128x1280xbf16, #tpu.memory_space<vmem>>, %arg4: memref<10x128xbf16, #tpu.memory_space<vmem>>, %arg5: memref<1x8x128xf32, #tpu.memory_space<vmem>>, %arg6: memref<1x8x384xf32, #tpu.memory_space<vmem>>, %arg7: memref<1x8x256xf32, #tpu.memory_space<vmem>>) attributes {dimension_semantics = [#tpu.dimension_semantics<parallel>], iteration_bounds = array<i64: 2>, scalar_prefetch = 0 : i64, scratch_operands = 2 : i64, tpu.core_type = #tpu.core_type<tc>, window_params = [{transform_indices = @transform_0, window_bounds = array<i64: 1, 8, 128>}, {transform_indices = @transform_1, window_bounds = array<i64: 1, 8, 128>}, {pipeline_mode = #tpu.pipeline_mode<synchronous>, transform_indices = @transform_2, window_bounds = array<i64: 128, 1280>}, {pipeline_mode = #tpu.pipeline_mode<synchronous>, transform_indices = @transform_3, window_bounds = array<i64: 10, 128>}, {transform_indices = @transform_4, window_bounds = array<i64: 1, 8, 128>}]} {
    %c0 = arith.constant 0 : index
    %c0_0 = arith.constant 0 : index
    %c0_1 = arith.constant 0 : index
    %0 = vector.load %arg1[%c0, %c0_0, %c0_1] : memref<1x8x128xf32, #tpu.memory_space<vmem>>, vector<1x8x128xf32>
    %c0_2 = arith.constant 0 : index
    %c0_3 = arith.constant 0 : index
    %1 = vector.load %arg4[%c0_2, %c0_3] : memref<10x128xbf16, #tpu.memory_space<vmem>>, vector<10x128xbf16>
    %2 = arith.extf %1 : vector<10x128xbf16> to vector<10x128xf32>
    %cst = arith.constant dense<0.000000e+00> : vector<1x8xf32>
    %3 = vector.multi_reduction <add>, %0, %cst [2] : vector<1x8x128xf32> to vector<1x8xf32>
    %4 = vector.shape_cast %3 : vector<1x8xf32> to vector<1x8x1xf32>
    %cst_4 = arith.constant 1.280000e+02 : f32
    %5 = vector.broadcast %cst_4 : f32 to vector<1x8x1xf32>
    %6 = arith.divf %4, %5 : vector<1x8x1xf32>
    %7 = arith.mulf %0, %0 : vector<1x8x128xf32>
    %cst_5 = arith.constant dense<0.000000e+00> : vector<1x8xf32>
    %8 = vector.multi_reduction <add>, %7, %cst_5 [2] : vector<1x8x128xf32> to vector<1x8xf32>
    %9 = vector.shape_cast %8 : vector<1x8xf32> to vector<1x8x1xf32>
    %cst_6 = arith.constant 1.280000e+02 : f32
    %10 = vector.broadcast %cst_6 : f32 to vector<1x8x1xf32>
    %11 = arith.divf %9, %10 : vector<1x8x1xf32>
    %12 = arith.mulf %6, %6 : vector<1x8x1xf32>
    %13 = arith.subf %11, %12 : vector<1x8x1xf32>
    %cst_7 = arith.constant 0.000000e+00 : f32
    %14 = vector.broadcast %cst_7 : f32 to vector<1x8x1xf32>
    %15 = arith.maximumf %13, %14 : vector<1x8x1xf32>
    %16 = vector.broadcast %6 : vector<1x8x1xf32> to vector<1x8x128xf32>
    %17 = arith.subf %0, %16 : vector<1x8x128xf32>
    %cst_8 = arith.constant 9.99999974E-6 : f32
    %18 = vector.broadcast %cst_8 : f32 to vector<1x8x1xf32>
    %19 = arith.addf %15, %18 : vector<1x8x1xf32>
    %20 = math.rsqrt %19 : vector<1x8x1xf32>
    %21 = vector.broadcast %20 : vector<1x8x1xf32> to vector<1x8x128xf32>
    %22 = arith.mulf %17, %21 : vector<1x8x128xf32>
    %23 = vector.shape_cast %22 : vector<1x8x128xf32> to vector<8x128xf32>
    %c0_9 = arith.constant 0 : index
    %c0_10 = arith.constant 0 : index
    %24 = vector.load %arg3[%c0_9, %c0_10] : memref<128x1280xbf16, #tpu.memory_space<vmem>>, vector<128x384xbf16>
    %25 = arith.truncf %23 : vector<8x128xf32> to vector<8x128xbf16>
    %cst_11 = arith.constant dense<0.000000e+00> : vector<8x384xf32>
    %26 = tpu.matmul %25, %24, %cst_11 {dimension_numbers = #tpu.dot_dimension_numbers<[1], [0], [0], [1], [0, 0, 1, 1], [], []>} : vector<8x128xbf16>, vector<128x384xbf16>, vector<8x384xf32> -> vector<8x384xf32>
    %27 = vector.shape_cast %26 : vector<8x384xf32> to vector<1x8x384xf32>
    %c0_12 = arith.constant 0 : index
    %c0_13 = arith.constant 0 : index
    %c0_14 = arith.constant 0 : index
    %28 = vector.load %arg6[%c0_12, %c0_13, %c0_14] : memref<1x8x384xf32, #tpu.memory_space<vmem>>, vector<1x8x384xf32>
    tpu.vector_store %arg6[%c0_12, %c0_13, %c0_14], %27 {strides = array<i32>} : memref<1x8x384xf32, #tpu.memory_space<vmem>>, vector<1x8x384xf32>,
    %c0_15 = arith.constant 0 : index
    %c0_16 = arith.constant 0 : index
    %c0_17 = arith.constant 0 : index
    %29 = vector.load %arg6[%c0_15, %c0_16, %c0_17] : memref<1x8x384xf32, #tpu.memory_space<vmem>>, vector<1x8x128xf32>
    %30 = vector.extract_strided_slice %2 {offsets = [0, 0], sizes = [1, 128], strides = [1, 1]} : vector<10x128xf32> to vector<1x128xf32>
    %31 = vector.shape_cast %30 : vector<1x128xf32> to vector<128xf32>
    %32 = vector.shape_cast %31 : vector<128xf32> to vector<1x1x128xf32>
    %33 = vector.broadcast %32 : vector<1x1x128xf32> to vector<1x8x128xf32>
    %34 = arith.addf %29, %33 : vector<1x8x128xf32>
    %35 = arith.truncf %34 : vector<1x8x128xf32> to vector<1x8x128xbf16>
    %c0_18 = arith.constant 0 : index
    %c0_19 = arith.constant 0 : index
    %c128 = arith.constant 128 : index
    %36 = vector.load %arg6[%c0_18, %c0_19, %c128] : memref<1x8x384xf32, #tpu.memory_space<vmem>>, vector<1x8x128xf32>
    %37 = vector.extract_strided_slice %2 {offsets = [1, 0], sizes = [1, 128], strides = [1, 1]} : vector<10x128xf32> to vector<1x128xf32>
    %38 = vector.shape_cast %37 : vector<1x128xf32> to vector<128xf32>
    %39 = vector.shape_cast %38 : vector<128xf32> to vector<1x1x128xf32>
    %40 = vector.broadcast %39 : vector<1x1x128xf32> to vector<1x8x128xf32>
    %41 = arith.addf %36, %40 : vector<1x8x128xf32>
    %42 = arith.truncf %41 : vector<1x8x128xf32> to vector<1x8x128xbf16>
    %c0_20 = arith.constant 0 : index
    %c0_21 = arith.constant 0 : index
    %c256 = arith.constant 256 : index
    %43 = vector.load %arg6[%c0_20, %c0_21, %c256] : memref<1x8x384xf32, #tpu.memory_space<vmem>>, vector<1x8x128xf32>
    %44 = vector.extract_strided_slice %2 {offsets = [2, 0], sizes = [1, 128], strides = [1, 1]} : vector<10x128xf32> to vector<1x128xf32>
    %45 = vector.shape_cast %44 : vector<1x128xf32> to vector<128xf32>
    %46 = vector.shape_cast %45 : vector<128xf32> to vector<1x1x128xf32>
    %47 = vector.broadcast %46 : vector<1x1x128xf32> to vector<1x8x128xf32>
    %48 = arith.addf %43, %47 : vector<1x8x128xf32>
    %49 = arith.truncf %48 : vector<1x8x128xf32> to vector<1x8x128xbf16>
    "tpu.trace_start"() <{level = 10 : i32, message = "bqd,bkd->bqk"}> : () -> ()
    %cst_22 = arith.constant dense<0.000000e+00> : vector<1x8x8xf32>
    %50 = tpu.matmul %35, %42, %cst_22 {dimension_numbers = #tpu.dot_dimension_numbers<[2], [2], [1], [1], [0, 0, 0, 1, 1, 1], [0], [0]>} : vector<1x8x128xbf16>, vector<1x8x128xbf16>, vector<1x8x8xf32> -> vector<1x8x8xf32>
    "tpu.trace_stop"() : () -> ()
    %51 = tpu.iota {dimensions = array<i32: 0>} : vector<8x8xi32>
    %52 = tpu.iota {dimensions = array<i32: 1>} : vector<8x8xi32>
    %53 = arith.cmpi sge, %51, %52 : vector<8x8xi32>
    %54 = vector.shape_cast %53 : vector<8x8xi1> to vector<1x8x8xi1>
    %cst_23 = arith.constant -1.000000e+09 : f32
    %55 = vector.broadcast %cst_23 : f32 to vector<1x8x8xf32>
    %56 = arith.select %54, %50, %55 : vector<1x8x8xi1>, vector<1x8x8xf32>
    %cst_24 = arith.constant dense<0xFF800000> : vector<1x8xf32>
    %57 = vector.multi_reduction <maximumf>, %56, %cst_24 [2] : vector<1x8x8xf32> to vector<1x8xf32>
    %58 = vector.shape_cast %57 : vector<1x8xf32> to vector<1x8x1xf32>
    %59 = vector.broadcast %58 : vector<1x8x1xf32> to vector<1x8x8xf32>
    %60 = arith.subf %56, %59 : vector<1x8x8xf32>
    %61 = math.exp %60 : vector<1x8x8xf32>
    %cst_25 = arith.constant dense<0.000000e+00> : vector<1x8xf32>
    %62 = vector.multi_reduction <add>, %61, %cst_25 [2] : vector<1x8x8xf32> to vector<1x8xf32>
    %63 = vector.shape_cast %62 : vector<1x8xf32> to vector<1x8x1xf32>
    %64 = tpu.reciprocal %63 {approx = true} : vector<1x8x1xf32> -> vector<1x8x1xf32>
    %65 = vector.broadcast %64 : vector<1x8x1xf32> to vector<1x8x8xf32>
    %66 = arith.mulf %61, %65 : vector<1x8x8xf32>
    %67 = arith.truncf %66 : vector<1x8x8xf32> to vector<1x8x8xbf16>
    "tpu.trace_start"() <{level = 10 : i32, message = "bqk,bkd->bqd"}> : () -> ()
    %cst_26 = arith.constant dense<0.000000e+00> : vector<1x8x128xf32>
    %68 = tpu.matmul %67, %49, %cst_26 {dimension_numbers = #tpu.dot_dimension_numbers<[2], [1], [1], [2], [0, 0, 0, 1, 1, 2], [0], [0]>} : vector<1x8x8xbf16>, vector<1x8x128xbf16>, vector<1x8x128xf32> -> vector<1x8x128xf32>
    "tpu.trace_stop"() : () -> ()
    %69 = vector.shape_cast %68 : vector<1x8x128xf32> to vector<8x128xf32>
    %c0_27 = arith.constant 0 : index
    %c384 = arith.constant 384 : index
    %70 = vector.load %arg3[%c0_27, %c384] : memref<128x1280xbf16, #tpu.memory_space<vmem>>, vector<128x128xbf16>
    %71 = arith.truncf %69 : vector<8x128xf32> to vector<8x128xbf16>
    %cst_28 = arith.constant dense<0.000000e+00> : vector<8x128xf32>
    %72 = tpu.matmul %71, %70, %cst_28 {dimension_numbers = #tpu.dot_dimension_numbers<[1], [0], [0], [1], [0, 0, 1, 1], [], []>} : vector<8x128xbf16>, vector<128x128xbf16>, vector<8x128xf32> -> vector<8x128xf32>
    %73 = vector.shape_cast %72 : vector<8x128xf32> to vector<1x8x128xf32>
    %74 = vector.extract_strided_slice %2 {offsets = [3, 0], sizes = [1, 128], strides = [1, 1]} : vector<10x128xf32> to vector<1x128xf32>
    %75 = vector.shape_cast %74 : vector<1x128xf32> to vector<128xf32>
    %76 = vector.shape_cast %75 : vector<128xf32> to vector<1x1x128xf32>
    %77 = vector.broadcast %76 : vector<1x1x128xf32> to vector<1x8x128xf32>
    %78 = arith.addf %73, %77 : vector<1x8x128xf32>
    %79 = arith.addf %0, %78 : vector<1x8x128xf32>
    %cst_29 = arith.constant dense<0.000000e+00> : vector<1x8xf32>
    %80 = vector.multi_reduction <add>, %79, %cst_29 [2] : vector<1x8x128xf32> to vector<1x8xf32>
    %81 = vector.shape_cast %80 : vector<1x8xf32> to vector<1x8x1xf32>
    %cst_30 = arith.constant 1.280000e+02 : f32
    %82 = vector.broadcast %cst_30 : f32 to vector<1x8x1xf32>
    %83 = arith.divf %81, %82 : vector<1x8x1xf32>
    %84 = arith.mulf %79, %79 : vector<1x8x128xf32>
    %cst_31 = arith.constant dense<0.000000e+00> : vector<1x8xf32>
    %85 = vector.multi_reduction <add>, %84, %cst_31 [2] : vector<1x8x128xf32> to vector<1x8xf32>
    %86 = vector.shape_cast %85 : vector<1x8xf32> to vector<1x8x1xf32>
    %cst_32 = arith.constant 1.280000e+02 : f32
    %87 = vector.broadcast %cst_32 : f32 to vector<1x8x1xf32>
    %88 = arith.divf %86, %87 : vector<1x8x1xf32>
    %89 = arith.mulf %83, %83 : vector<1x8x1xf32>
    %90 = arith.subf %88, %89 : vector<1x8x1xf32>
    %cst_33 = arith.constant 0.000000e+00 : f32
    %91 = vector.broadcast %cst_33 : f32 to vector<1x8x1xf32>
    %92 = arith.maximumf %90, %91 : vector<1x8x1xf32>
    %93 = vector.broadcast %83 : vector<1x8x1xf32> to vector<1x8x128xf32>
    %94 = arith.subf %79, %93 : vector<1x8x128xf32>
    %cst_34 = arith.constant 9.99999974E-6 : f32
    %95 = vector.broadcast %cst_34 : f32 to vector<1x8x1xf32>
    %96 = arith.addf %92, %95 : vector<1x8x1xf32>
    %97 = math.rsqrt %96 : vector<1x8x1xf32>
    %98 = vector.broadcast %97 : vector<1x8x1xf32> to vector<1x8x128xf32>
    %99 = arith.mulf %94, %98 : vector<1x8x128xf32>
    %100 = vector.shape_cast %99 : vector<1x8x128xf32> to vector<8x128xf32>
    %c0_35 = arith.constant 0 : index
    %c0_36 = arith.constant 0 : index
    %c0_37 = arith.constant 0 : index
    %101 = vector.load %arg2[%c0_35, %c0_36, %c0_37] : memref<1x8x128xf32, #tpu.memory_space<vmem>>, vector<1x8x128xf32>
    %cst_38 = arith.constant dense<0.000000e+00> : vector<1x8xf32>
    %102 = vector.multi_reduction <add>, %101, %cst_38 [2] : vector<1x8x128xf32> to vector<1x8xf32>
    %103 = vector.shape_cast %102 : vector<1x8xf32> to vector<1x8x1xf32>
    %cst_39 = arith.constant 1.280000e+02 : f32
    %104 = vector.broadcast %cst_39 : f32 to vector<1x8x1xf32>
    %105 = arith.divf %103, %104 : vector<1x8x1xf32>
    %106 = arith.mulf %101, %101 : vector<1x8x128xf32>
    %cst_40 = arith.constant dense<0.000000e+00> : vector<1x8xf32>
    %107 = vector.multi_reduction <add>, %106, %cst_40 [2] : vector<1x8x128xf32> to vector<1x8xf32>
    %108 = vector.shape_cast %107 : vector<1x8xf32> to vector<1x8x1xf32>
    %cst_41 = arith.constant 1.280000e+02 : f32
    %109 = vector.broadcast %cst_41 : f32 to vector<1x8x1xf32>
    %110 = arith.divf %108, %109 : vector<1x8x1xf32>
    %111 = arith.mulf %105, %105 : vector<1x8x1xf32>
    %112 = arith.subf %110, %111 : vector<1x8x1xf32>
    %cst_42 = arith.constant 0.000000e+00 : f32
    %113 = vector.broadcast %cst_42 : f32 to vector<1x8x1xf32>
    %114 = arith.maximumf %112, %113 : vector<1x8x1xf32>
    %115 = vector.broadcast %105 : vector<1x8x1xf32> to vector<1x8x128xf32>
    %116 = arith.subf %101, %115 : vector<1x8x128xf32>
    %cst_43 = arith.constant 9.99999974E-6 : f32
    %117 = vector.broadcast %cst_43 : f32 to vector<1x8x1xf32>
    %118 = arith.addf %114, %117 : vector<1x8x1xf32>
    %119 = math.rsqrt %118 : vector<1x8x1xf32>
    %120 = vector.broadcast %119 : vector<1x8x1xf32> to vector<1x8x128xf32>
    %121 = arith.mulf %116, %120 : vector<1x8x128xf32>
    %122 = vector.shape_cast %121 : vector<1x8x128xf32> to vector<8x128xf32>
    %c0_44 = arith.constant 0 : index
    %c512 = arith.constant 512 : index
    %123 = vector.load %arg3[%c0_44, %c512] : memref<128x1280xbf16, #tpu.memory_space<vmem>>, vector<128x128xbf16>
    %124 = arith.truncf %100 : vector<8x128xf32> to vector<8x128xbf16>
    %cst_45 = arith.constant dense<0.000000e+00> : vector<8x128xf32>
    %125 = tpu.matmul %124, %123, %cst_45 {dimension_numbers = #tpu.dot_dimension_numbers<[1], [0], [0], [1], [0, 0, 1, 1], [], []>} : vector<8x128xbf16>, vector<128x128xbf16>, vector<8x128xf32> -> vector<8x128xf32>
    %126 = vector.shape_cast %125 : vector<8x128xf32> to vector<1x8x128xf32>
    %127 = vector.extract_strided_slice %2 {offsets = [4, 0], sizes = [1, 128], strides = [1, 1]} : vector<10x128xf32> to vector<1x128xf32>
    %128 = vector.shape_cast %127 : vector<1x128xf32> to vector<128xf32>
    %129 = vector.shape_cast %128 : vector<128xf32> to vector<1x1x128xf32>
    %130 = vector.broadcast %129 : vector<1x1x128xf32> to vector<1x8x128xf32>
    %131 = arith.addf %126, %130 : vector<1x8x128xf32>
    %132 = arith.truncf %131 : vector<1x8x128xf32> to vector<1x8x128xbf16>
    %c0_46 = arith.constant 0 : index
    %c640 = arith.constant 640 : index
    %133 = vector.load %arg3[%c0_46, %c640] : memref<128x1280xbf16, #tpu.memory_space<vmem>>, vector<128x256xbf16>
    %134 = arith.truncf %122 : vector<8x128xf32> to vector<8x128xbf16>
    %cst_47 = arith.constant dense<0.000000e+00> : vector<8x256xf32>
    %135 = tpu.matmul %134, %133, %cst_47 {dimension_numbers = #tpu.dot_dimension_numbers<[1], [0], [0], [1], [0, 0, 1, 1], [], []>} : vector<8x128xbf16>, vector<128x256xbf16>, vector<8x256xf32> -> vector<8x256xf32>
    %136 = vector.shape_cast %135 : vector<8x256xf32> to vector<1x8x256xf32>
    %c0_48 = arith.constant 0 : index
    %c0_49 = arith.constant 0 : index
    %c0_50 = arith.constant 0 : index
    %137 = vector.load %arg7[%c0_48, %c0_49, %c0_50] : memref<1x8x256xf32, #tpu.memory_space<vmem>>, vector<1x8x256xf32>
    tpu.vector_store %arg7[%c0_48, %c0_49, %c0_50], %136 {strides = array<i32>} : memref<1x8x256xf32, #tpu.memory_space<vmem>>, vector<1x8x256xf32>,
    %c0_51 = arith.constant 0 : index
    %c0_52 = arith.constant 0 : index
    %c0_53 = arith.constant 0 : index
    %138 = vector.load %arg7[%c0_51, %c0_52, %c0_53] : memref<1x8x256xf32, #tpu.memory_space<vmem>>, vector<1x8x128xf32>
    %139 = vector.extract_strided_slice %2 {offsets = [5, 0], sizes = [1, 128], strides = [1, 1]} : vector<10x128xf32> to vector<1x128xf32>
    %140 = vector.shape_cast %139 : vector<1x128xf32> to vector<128xf32>
    %141 = vector.shape_cast %140 : vector<128xf32> to vector<1x1x128xf32>
    %142 = vector.broadcast %141 : vector<1x1x128xf32> to vector<1x8x128xf32>
    %143 = arith.addf %138, %142 : vector<1x8x128xf32>
    %144 = arith.truncf %143 : vector<1x8x128xf32> to vector<1x8x128xbf16>
    %c0_54 = arith.constant 0 : index
    %c0_55 = arith.constant 0 : index
    %c128_56 = arith.constant 128 : index
    %145 = vector.load %arg7[%c0_54, %c0_55, %c128_56] : memref<1x8x256xf32, #tpu.memory_space<vmem>>, vector<1x8x128xf32>
    %146 = vector.extract_strided_slice %2 {offsets = [6, 0], sizes = [1, 128], strides = [1, 1]} : vector<10x128xf32> to vector<1x128xf32>
    %147 = vector.shape_cast %146 : vector<1x128xf32> to vector<128xf32>
    %148 = vector.shape_cast %147 : vector<128xf32> to vector<1x1x128xf32>
    %149 = vector.broadcast %148 : vector<1x1x128xf32> to vector<1x8x128xf32>
    %150 = arith.addf %145, %149 : vector<1x8x128xf32>
    %151 = arith.truncf %150 : vector<1x8x128xf32> to vector<1x8x128xbf16>
    "tpu.trace_start"() <{level = 10 : i32, message = "bqd,bkd->bqk"}> : () -> ()
    %cst_57 = arith.constant dense<0.000000e+00> : vector<1x8x8xf32>
    %152 = tpu.matmul %132, %144, %cst_57 {dimension_numbers = #tpu.dot_dimension_numbers<[2], [2], [1], [1], [0, 0, 0, 1, 1, 1], [0], [0]>} : vector<1x8x128xbf16>, vector<1x8x128xbf16>, vector<1x8x8xf32> -> vector<1x8x8xf32>
    "tpu.trace_stop"() : () -> ()
    %cst_58 = arith.constant dense<0xFF800000> : vector<1x8xf32>
    %153 = vector.multi_reduction <maximumf>, %152, %cst_58 [2] : vector<1x8x8xf32> to vector<1x8xf32>
    %154 = vector.shape_cast %153 : vector<1x8xf32> to vector<1x8x1xf32>
    %155 = vector.broadcast %154 : vector<1x8x1xf32> to vector<1x8x8xf32>
    %156 = arith.subf %152, %155 : vector<1x8x8xf32>
    %157 = math.exp %156 : vector<1x8x8xf32>
    %cst_59 = arith.constant dense<0.000000e+00> : vector<1x8xf32>
    %158 = vector.multi_reduction <add>, %157, %cst_59 [2] : vector<1x8x8xf32> to vector<1x8xf32>
    %159 = vector.shape_cast %158 : vector<1x8xf32> to vector<1x8x1xf32>
    %160 = tpu.reciprocal %159 {approx = true} : vector<1x8x1xf32> -> vector<1x8x1xf32>
    %161 = vector.broadcast %160 : vector<1x8x1xf32> to vector<1x8x8xf32>
    %162 = arith.mulf %157, %161 : vector<1x8x8xf32>
    %163 = arith.truncf %162 : vector<1x8x8xf32> to vector<1x8x8xbf16>
    "tpu.trace_start"() <{level = 10 : i32, message = "bqk,bkd->bqd"}> : () -> ()
    %cst_60 = arith.constant dense<0.000000e+00> : vector<1x8x128xf32>
    %164 = tpu.matmul %163, %151, %cst_60 {dimension_numbers = #tpu.dot_dimension_numbers<[2], [1], [1], [2], [0, 0, 0, 1, 1, 2], [0], [0]>} : vector<1x8x8xbf16>, vector<1x8x128xbf16>, vector<1x8x128xf32> -> vector<1x8x128xf32>
    "tpu.trace_stop"() : () -> ()
    %165 = vector.shape_cast %164 : vector<1x8x128xf32> to vector<8x128xf32>
    %c0_61 = arith.constant 0 : index
    %c896 = arith.constant 896 : index
    %166 = vector.load %arg3[%c0_61, %c896] : memref<128x1280xbf16, #tpu.memory_space<vmem>>, vector<128x128xbf16>
    %167 = arith.truncf %165 : vector<8x128xf32> to vector<8x128xbf16>
    %cst_62 = arith.constant dense<0.000000e+00> : vector<8x128xf32>
    %168 = tpu.matmul %167, %166, %cst_62 {dimension_numbers = #tpu.dot_dimension_numbers<[1], [0], [0], [1], [0, 0, 1, 1], [], []>} : vector<8x128xbf16>, vector<128x128xbf16>, vector<8x128xf32> -> vector<8x128xf32>
    %169 = vector.shape_cast %168 : vector<8x128xf32> to vector<1x8x128xf32>
    %170 = vector.extract_strided_slice %2 {offsets = [7, 0], sizes = [1, 128], strides = [1, 1]} : vector<10x128xf32> to vector<1x128xf32>
    %171 = vector.shape_cast %170 : vector<1x128xf32> to vector<128xf32>
    %172 = vector.shape_cast %171 : vector<128xf32> to vector<1x1x128xf32>
    %173 = vector.broadcast %172 : vector<1x1x128xf32> to vector<1x8x128xf32>
    %174 = arith.addf %169, %173 : vector<1x8x128xf32>
    %175 = arith.addf %79, %174 : vector<1x8x128xf32>
    %cst_63 = arith.constant dense<0.000000e+00> : vector<1x8xf32>
    %176 = vector.multi_reduction <add>, %175, %cst_63 [2] : vector<1x8x128xf32> to vector<1x8xf32>
    %177 = vector.shape_cast %176 : vector<1x8xf32> to vector<1x8x1xf32>
    %cst_64 = arith.constant 1.280000e+02 : f32
    %178 = vector.broadcast %cst_64 : f32 to vector<1x8x1xf32>
    %179 = arith.divf %177, %178 : vector<1x8x1xf32>
    %180 = arith.mulf %175, %175 : vector<1x8x128xf32>
    %cst_65 = arith.constant dense<0.000000e+00> : vector<1x8xf32>
    %181 = vector.multi_reduction <add>, %180, %cst_65 [2] : vector<1x8x128xf32> to vector<1x8xf32>
    %182 = vector.shape_cast %181 : vector<1x8xf32> to vector<1x8x1xf32>
    %cst_66 = arith.constant 1.280000e+02 : f32
    %183 = vector.broadcast %cst_66 : f32 to vector<1x8x1xf32>
    %184 = arith.divf %182, %183 : vector<1x8x1xf32>
    %185 = arith.mulf %179, %179 : vector<1x8x1xf32>
    %186 = arith.subf %184, %185 : vector<1x8x1xf32>
    %cst_67 = arith.constant 0.000000e+00 : f32
    %187 = vector.broadcast %cst_67 : f32 to vector<1x8x1xf32>
    %188 = arith.maximumf %186, %187 : vector<1x8x1xf32>
    %189 = vector.broadcast %179 : vector<1x8x1xf32> to vector<1x8x128xf32>
    %190 = arith.subf %175, %189 : vector<1x8x128xf32>
    %cst_68 = arith.constant 9.99999974E-6 : f32
    %191 = vector.broadcast %cst_68 : f32 to vector<1x8x1xf32>
    %192 = arith.addf %188, %191 : vector<1x8x1xf32>
    %193 = math.rsqrt %192 : vector<1x8x1xf32>
    %194 = vector.broadcast %193 : vector<1x8x1xf32> to vector<1x8x128xf32>
    %195 = arith.mulf %190, %194 : vector<1x8x128xf32>
    %196 = vector.shape_cast %195 : vector<1x8x128xf32> to vector<8x128xf32>
    %c0_69 = arith.constant 0 : index
    %c1024 = arith.constant 1024 : index
    %197 = vector.load %arg3[%c0_69, %c1024] : memref<128x1280xbf16, #tpu.memory_space<vmem>>, vector<128x128xbf16>
    %198 = arith.truncf %196 : vector<8x128xf32> to vector<8x128xbf16>
    %cst_70 = arith.constant dense<0.000000e+00> : vector<8x128xf32>
    %199 = tpu.matmul %198, %197, %cst_70 {dimension_numbers = #tpu.dot_dimension_numbers<[1], [0], [0], [1], [0, 0, 1, 1], [], []>} : vector<8x128xbf16>, vector<128x128xbf16>, vector<8x128xf32> -> vector<8x128xf32>
    %200 = vector.shape_cast %199 : vector<8x128xf32> to vector<1x8x128xf32>
    %201 = vector.extract_strided_slice %2 {offsets = [8, 0], sizes = [1, 128], strides = [1, 1]} : vector<10x128xf32> to vector<1x128xf32>
    %202 = vector.shape_cast %201 : vector<1x128xf32> to vector<128xf32>
    %203 = vector.shape_cast %202 : vector<128xf32> to vector<1x1x128xf32>
    %204 = vector.broadcast %203 : vector<1x1x128xf32> to vector<1x8x128xf32>
    %205 = arith.addf %200, %204 : vector<1x8x128xf32>
    %cst_71 = arith.constant 0.000000e+00 : f32
    %206 = vector.broadcast %cst_71 : f32 to vector<1x8x128xf32>
    %207 = arith.maximumf %205, %206 : vector<1x8x128xf32>
    %cst_72 = arith.constant dense<0.000000e+00> : vector<1x8xf32>
    %208 = vector.multi_reduction <add>, %207, %cst_72 [2] : vector<1x8x128xf32> to vector<1x8xf32>
    %209 = vector.shape_cast %208 : vector<1x8xf32> to vector<1x8x1xf32>
    %cst_73 = arith.constant 1.280000e+02 : f32
    %210 = vector.broadcast %cst_73 : f32 to vector<1x8x1xf32>
    %211 = arith.divf %209, %210 : vector<1x8x1xf32>
    %212 = arith.mulf %207, %207 : vector<1x8x128xf32>
    %cst_74 = arith.constant dense<0.000000e+00> : vector<1x8xf32>
    %213 = vector.multi_reduction <add>, %212, %cst_74 [2] : vector<1x8x128xf32> to vector<1x8xf32>
    %214 = vector.shape_cast %213 : vector<1x8xf32> to vector<1x8x1xf32>
    %cst_75 = arith.constant 1.280000e+02 : f32
    %215 = vector.broadcast %cst_75 : f32 to vector<1x8x1xf32>
    %216 = arith.divf %214, %215 : vector<1x8x1xf32>
    %217 = arith.mulf %211, %211 : vector<1x8x1xf32>
    %218 = arith.subf %216, %217 : vector<1x8x1xf32>
    %cst_76 = arith.constant 0.000000e+00 : f32
    %219 = vector.broadcast %cst_76 : f32 to vector<1x8x1xf32>
    %220 = arith.maximumf %218, %219 : vector<1x8x1xf32>
    %221 = vector.broadcast %211 : vector<1x8x1xf32> to vector<1x8x128xf32>
    %222 = arith.subf %207, %221 : vector<1x8x128xf32>
    %cst_77 = arith.constant 9.99999974E-6 : f32
    %223 = vector.broadcast %cst_77 : f32 to vector<1x8x1xf32>
    %224 = arith.addf %220, %223 : vector<1x8x1xf32>
    %225 = math.rsqrt %224 : vector<1x8x1xf32>
    %226 = vector.broadcast %225 : vector<1x8x1xf32> to vector<1x8x128xf32>
    %227 = arith.mulf %222, %226 : vector<1x8x128xf32>
    %228 = vector.shape_cast %227 : vector<1x8x128xf32> to vector<8x128xf32>
    %c0_78 = arith.constant 0 : index
    %c1152 = arith.constant 1152 : index
    %229 = vector.load %arg3[%c0_78, %c1152] : memref<128x1280xbf16, #tpu.memory_space<vmem>>, vector<128x128xbf16>
    %230 = arith.truncf %228 : vector<8x128xf32> to vector<8x128xbf16>
    %cst_79 = arith.constant dense<0.000000e+00> : vector<8x128xf32>
    %231 = tpu.matmul %230, %229, %cst_79 {dimension_numbers = #tpu.dot_dimension_numbers<[1], [0], [0], [1], [0, 0, 1, 1], [], []>} : vector<8x128xbf16>, vector<128x128xbf16>, vector<8x128xf32> -> vector<8x128xf32>
    %232 = vector.shape_cast %231 : vector<8x128xf32> to vector<1x8x128xf32>
    %233 = vector.extract_strided_slice %2 {offsets = [9, 0], sizes = [1, 128], strides = [1, 1]} : vector<10x128xf32> to vector<1x128xf32>
    %234 = vector.shape_cast %233 : vector<1x128xf32> to vector<128xf32>
    %235 = vector.shape_cast %234 : vector<128xf32> to vector<1x1x128xf32>
    %236 = vector.broadcast %235 : vector<1x1x128xf32> to vector<1x8x128xf32>
    %237 = arith.addf %232, %236 : vector<1x8x128xf32>
    %238 = arith.addf %175, %237 : vector<1x8x128xf32>
    %c0_80 = arith.constant 0 : index
    %c0_81 = arith.constant 0 : index
    %c0_82 = arith.constant 0 : index
    %239 = vector.load %arg5[%c0_80, %c0_81, %c0_82] : memref<1x8x128xf32, #tpu.memory_space<vmem>>, vector<1x8x128xf32>
    tpu.vector_store %arg5[%c0_80, %c0_81, %c0_82], %238 {strides = array<i32>} : memref<1x8x128xf32, #tpu.memory_space<vmem>>, vector<1x8x128xf32>,
    return
  }
  func.func @transform_0(%arg0: i32) -> (i32, i32, i32) {
    %c0_i32 = arith.constant 0 : i32
    %c0_i32_0 = arith.constant 0 : i32
    %c0_i32_1 = arith.constant 0 : i32
    return %arg0, %c0_i32, %c0_i32_0 : i32, i32, i32
  }
  func.func @transform_1(%arg0: i32) -> (i32, i32, i32) {
    %c0_i32 = arith.constant 0 : i32
    %c0_i32_0 = arith.constant 0 : i32
    %c0_i32_1 = arith.constant 0 : i32
    return %arg0, %c0_i32, %c0_i32_0 : i32, i32, i32
  }
  func.func @transform_2(%arg0: i32) -> (i32, i32) {
    %c0_i32 = arith.constant 0 : i32
    %c0_i32_0 = arith.constant 0 : i32
    %c0_i32_1 = arith.constant 0 : i32
    return %c0_i32, %c0_i32_0 : i32, i32
  }
  func.func @transform_3(%arg0: i32) -> (i32, i32) {
    %c0_i32 = arith.constant 0 : i32
    %c0_i32_0 = arith.constant 0 : i32
    %c0_i32_1 = arith.constant 0 : i32
    return %c0_i32, %c0_i32_0 : i32, i32
  }
  func.func @transform_4(%arg0: i32) -> (i32, i32, i32) {
    %c0_i32 = arith.constant 0 : i32
    %c0_i32_0 = arith.constant 0 : i32
    %c0_i32_1 = arith.constant 0 : i32
    return %arg0, %c0_i32, %c0_i32_0 : i32, i32, i32
  }
}

module attributes {stable_mosaic.version = 11 : i64} {
  func.func @kernel(%arg0: i32, %arg1: memref<1x8x128xf32, #tpu.memory_space<vmem>>, %arg2: memref<1x8x128xf32, #tpu.memory_space<vmem>>, %arg3: memref<128x1280xbf16, #tpu.memory_space<vmem>>, %arg4: memref<10x128xbf16, #tpu.memory_space<vmem>>, %arg5: memref<1x8x128xf32, #tpu.memory_space<vmem>>, %arg6: memref<1x8x384xf32, #tpu.memory_space<vmem>>, %arg7: memref<1x8x256xf32, #tpu.memory_space<vmem>>) attributes {dimension_semantics = [#tpu.dimension_semantics<parallel>], iteration_bounds = array<i64: 2>, scalar_prefetch = 0 : i64, scratch_operands = 2 : i64, tpu.core_type = #tpu.core_type<tc>, window_params = [{transform_indices = @transform_0, window_bounds = array<i64: 1, 8, 128>}, {transform_indices = @transform_1, window_bounds = array<i64: 1, 8, 128>}, {pipeline_mode = #tpu.pipeline_mode<synchronous>, transform_indices = @transform_2, window_bounds = array<i64: 128, 1280>}, {pipeline_mode = #tpu.pipeline_mode<synchronous>, transform_indices = @transform_3, window_bounds = array<i64: 10, 128>}, {transform_indices = @transform_4, window_bounds = array<i64: 1, 8, 128>}]} {
    %c0 = arith.constant 0 : index
    %c0_0 = arith.constant 0 : index
    %c0_1 = arith.constant 0 : index
    %0 = vector.load %arg1[%c0, %c0_0, %c0_1] : memref<1x8x128xf32, #tpu.memory_space<vmem>>, vector<1x8x128xf32>
    %c0_2 = arith.constant 0 : index
    %c0_3 = arith.constant 0 : index
    %1 = vector.load %arg4[%c0_2, %c0_3] : memref<10x128xbf16, #tpu.memory_space<vmem>>, vector<10x128xbf16>
    %2 = arith.extf %1 : vector<10x128xbf16> to vector<10x128xf32>
    %cst = arith.constant dense<0.000000e+00> : vector<1x8xf32>
    %3 = vector.multi_reduction <add>, %0, %cst [2] : vector<1x8x128xf32> to vector<1x8xf32>
    %4 = vector.shape_cast %3 : vector<1x8xf32> to vector<1x8x1xf32>
    %cst_4 = arith.constant 1.280000e+02 : f32
    %5 = vector.broadcast %cst_4 : f32 to vector<1x8x1xf32>
    %6 = arith.divf %4, %5 : vector<1x8x1xf32>
    %7 = arith.mulf %0, %0 : vector<1x8x128xf32>
    %cst_5 = arith.constant dense<0.000000e+00> : vector<1x8xf32>
    %8 = vector.multi_reduction <add>, %7, %cst_5 [2] : vector<1x8x128xf32> to vector<1x8xf32>
    %9 = vector.shape_cast %8 : vector<1x8xf32> to vector<1x8x1xf32>
    %cst_6 = arith.constant 1.280000e+02 : f32
    %10 = vector.broadcast %cst_6 : f32 to vector<1x8x1xf32>
    %11 = arith.divf %9, %10 : vector<1x8x1xf32>
    %12 = arith.mulf %6, %6 : vector<1x8x1xf32>
    %13 = arith.subf %11, %12 : vector<1x8x1xf32>
    %cst_7 = arith.constant 0.000000e+00 : f32
    %14 = vector.broadcast %cst_7 : f32 to vector<1x8x1xf32>
    %15 = arith.maximumf %13, %14 : vector<1x8x1xf32>
    %16 = vector.broadcast %6 : vector<1x8x1xf32> to vector<1x8x128xf32>
    %17 = arith.subf %0, %16 : vector<1x8x128xf32>
    %cst_8 = arith.constant 9.99999974E-6 : f32
    %18 = vector.broadcast %cst_8 : f32 to vector<1x8x1xf32>
    %19 = arith.addf %15, %18 : vector<1x8x1xf32>
    %20 = math.rsqrt %19 : vector<1x8x1xf32>
    %21 = vector.broadcast %20 : vector<1x8x1xf32> to vector<1x8x128xf32>
    %22 = arith.mulf %17, %21 : vector<1x8x128xf32>
    %23 = vector.shape_cast %22 : vector<1x8x128xf32> to vector<8x128xf32>
    %c0_9 = arith.constant 0 : index
    %c0_10 = arith.constant 0 : index
    %24 = vector.load %arg3[%c0_9, %c0_10] : memref<128x1280xbf16, #tpu.memory_space<vmem>>, vector<128x384xbf16>
    %25 = arith.truncf %23 : vector<8x128xf32> to vector<8x128xbf16>
    %cst_11 = arith.constant dense<0.000000e+00> : vector<8x384xf32>
    %26 = tpu.matmul %25, %24, %cst_11 {dimension_numbers = #tpu.dot_dimension_numbers<[1], [0], [0], [1], [0, 0, 1, 1], [], []>} : vector<8x128xbf16>, vector<128x384xbf16>, vector<8x384xf32> -> vector<8x384xf32>
    %27 = vector.shape_cast %26 : vector<8x384xf32> to vector<1x8x384xf32>
    %c0_12 = arith.constant 0 : index
    %c0_13 = arith.constant 0 : index
    %c0_14 = arith.constant 0 : index
    %28 = vector.load %arg6[%c0_12, %c0_13, %c0_14] : memref<1x8x384xf32, #tpu.memory_space<vmem>>, vector<1x8x384xf32>
    tpu.vector_store %arg6[%c0_12, %c0_13, %c0_14], %27 {strides = array<i32>} : memref<1x8x384xf32, #tpu.memory_space<vmem>>, vector<1x8x384xf32>,
    %c0_15 = arith.constant 0 : index
    %c0_16 = arith.constant 0 : index
    %c0_17 = arith.constant 0 : index
    %29 = vector.load %arg6[%c0_15, %c0_16, %c0_17] : memref<1x8x384xf32, #tpu.memory_space<vmem>>, vector<1x8x128xf32>
    %30 = vector.extract_strided_slice %2 {offsets = [0, 0], sizes = [1, 128], strides = [1, 1]} : vector<10x128xf32> to vector<1x128xf32>
    %31 = vector.shape_cast %30 : vector<1x128xf32> to vector<128xf32>
    %32 = vector.shape_cast %31 : vector<128xf32> to vector<1x1x128xf32>
    %33 = vector.broadcast %32 : vector<1x1x128xf32> to vector<1x8x128xf32>
    %34 = arith.addf %29, %33 : vector<1x8x128xf32>
    %35 = arith.truncf %34 : vector<1x8x128xf32> to vector<1x8x128xbf16>
    %c0_18 = arith.constant 0 : index
    %c0_19 = arith.constant 0 : index
    %c128 = arith.constant 128 : index
    %36 = vector.load %arg6[%c0_18, %c0_19, %c128] : memref<1x8x384xf32, #tpu.memory_space<vmem>>, vector<1x8x128xf32>
    %37 = vector.extract_strided_slice %2 {offsets = [1, 0], sizes = [1, 128], strides = [1, 1]} : vector<10x128xf32> to vector<1x128xf32>
    %38 = vector.shape_cast %37 : vector<1x128xf32> to vector<128xf32>
    %39 = vector.shape_cast %38 : vector<128xf32> to vector<1x1x128xf32>
    %40 = vector.broadcast %39 : vector<1x1x128xf32> to vector<1x8x128xf32>
    %41 = arith.addf %36, %40 : vector<1x8x128xf32>
    %42 = arith.truncf %41 : vector<1x8x128xf32> to vector<1x8x128xbf16>
    %c0_20 = arith.constant 0 : index
    %c0_21 = arith.constant 0 : index
    %c256 = arith.constant 256 : index
    %43 = vector.load %arg6[%c0_20, %c0_21, %c256] : memref<1x8x384xf32, #tpu.memory_space<vmem>>, vector<1x8x128xf32>
    %44 = vector.extract_strided_slice %2 {offsets = [2, 0], sizes = [1, 128], strides = [1, 1]} : vector<10x128xf32> to vector<1x128xf32>
    %45 = vector.shape_cast %44 : vector<1x128xf32> to vector<128xf32>
    %46 = vector.shape_cast %45 : vector<128xf32> to vector<1x1x128xf32>
    %47 = vector.broadcast %46 : vector<1x1x128xf32> to vector<1x8x128xf32>
    %48 = arith.addf %43, %47 : vector<1x8x128xf32>
    %49 = arith.truncf %48 : vector<1x8x128xf32> to vector<1x8x128xbf16>
    "tpu.trace_start"() <{level = 10 : i32, message = "bqd,bkd->bqk"}> : () -> ()
    %cst_22 = arith.constant dense<0.000000e+00> : vector<1x8x8xf32>
    %50 = tpu.matmul %35, %42, %cst_22 {dimension_numbers = #tpu.dot_dimension_numbers<[2], [2], [1], [1], [0, 0, 0, 1, 1, 1], [0], [0]>} : vector<1x8x128xbf16>, vector<1x8x128xbf16>, vector<1x8x8xf32> -> vector<1x8x8xf32>
    "tpu.trace_stop"() : () -> ()
    %51 = tpu.iota {dimensions = array<i32: 0>} : vector<8x8xi32>
    %52 = tpu.iota {dimensions = array<i32: 1>} : vector<8x8xi32>
    %53 = arith.cmpi sge, %51, %52 : vector<8x8xi32>
    %54 = vector.shape_cast %53 : vector<8x8xi1> to vector<1x8x8xi1>
    %cst_23 = arith.constant -1.000000e+09 : f32
    %55 = vector.broadcast %cst_23 : f32 to vector<1x8x8xf32>
    %56 = arith.select %54, %50, %55 : vector<1x8x8xi1>, vector<1x8x8xf32>
    %cst_24 = arith.constant dense<0xFF800000> : vector<1x8xf32>
    %57 = vector.multi_reduction <maximumf>, %56, %cst_24 [2] : vector<1x8x8xf32> to vector<1x8xf32>
    %58 = vector.shape_cast %57 : vector<1x8xf32> to vector<1x8x1xf32>
    %59 = vector.broadcast %58 : vector<1x8x1xf32> to vector<1x8x8xf32>
    %60 = arith.subf %56, %59 : vector<1x8x8xf32>
    %61 = math.exp %60 : vector<1x8x8xf32>
    %cst_25 = arith.constant dense<0.000000e+00> : vector<1x8xf32>
    %62 = vector.multi_reduction <add>, %61, %cst_25 [2] : vector<1x8x8xf32> to vector<1x8xf32>
    %63 = vector.shape_cast %62 : vector<1x8xf32> to vector<1x8x1xf32>
    %64 = tpu.reciprocal %63 {approx = true} : vector<1x8x1xf32> -> vector<1x8x1xf32>
    %65 = vector.broadcast %64 : vector<1x8x1xf32> to vector<1x8x8xf32>
    %66 = arith.mulf %61, %65 : vector<1x8x8xf32>
    %67 = arith.truncf %66 : vector<1x8x8xf32> to vector<1x8x8xbf16>
    "tpu.trace_start"() <{level = 10 : i32, message = "bqk,bkd->bqd"}> : () -> ()
    %cst_26 = arith.constant dense<0.000000e+00> : vector<1x8x128xf32>
    %68 = tpu.matmul %67, %49, %cst_26 {dimension_numbers = #tpu.dot_dimension_numbers<[2], [1], [1], [2], [0, 0, 0, 1, 1, 2], [0], [0]>} : vector<1x8x8xbf16>, vector<1x8x128xbf16>, vector<1x8x128xf32> -> vector<1x8x128xf32>
    "tpu.trace_stop"() : () -> ()
    %69 = vector.shape_cast %68 : vector<1x8x128xf32> to vector<8x128xf32>
    %c0_27 = arith.constant 0 : index
    %c384 = arith.constant 384 : index
    %70 = vector.load %arg3[%c0_27, %c384] : memref<128x1280xbf16, #tpu.memory_space<vmem>>, vector<128x128xbf16>
    %71 = arith.truncf %69 : vector<8x128xf32> to vector<8x128xbf16>
    %cst_28 = arith.constant dense<0.000000e+00> : vector<8x128xf32>
    %72 = tpu.matmul %71, %70, %cst_28 {dimension_numbers = #tpu.dot_dimension_numbers<[1], [0], [0], [1], [0, 0, 1, 1], [], []>} : vector<8x128xbf16>, vector<128x128xbf16>, vector<8x128xf32> -> vector<8x128xf32>
    %73 = vector.shape_cast %72 : vector<8x128xf32> to vector<1x8x128xf32>
    %74 = vector.extract_strided_slice %2 {offsets = [3, 0], sizes = [1, 128], strides = [1, 1]} : vector<10x128xf32> to vector<1x128xf32>
    %75 = vector.shape_cast %74 : vector<1x128xf32> to vector<128xf32>
    %76 = vector.shape_cast %75 : vector<128xf32> to vector<1x1x128xf32>
    %77 = vector.broadcast %76 : vector<1x1x128xf32> to vector<1x8x128xf32>
    %78 = arith.addf %73, %77 : vector<1x8x128xf32>
    %79 = arith.addf %0, %78 : vector<1x8x128xf32>
    %cst_29 = arith.constant dense<0.000000e+00> : vector<1x8xf32>
    %80 = vector.multi_reduction <add>, %79, %cst_29 [2] : vector<1x8x128xf32> to vector<1x8xf32>
    %81 = vector.shape_cast %80 : vector<1x8xf32> to vector<1x8x1xf32>
    %cst_30 = arith.constant 1.280000e+02 : f32
    %82 = vector.broadcast %cst_30 : f32 to vector<1x8x1xf32>
    %83 = arith.divf %81, %82 : vector<1x8x1xf32>
    %84 = arith.mulf %79, %79 : vector<1x8x128xf32>
    %cst_31 = arith.constant dense<0.000000e+00> : vector<1x8xf32>
    %85 = vector.multi_reduction <add>, %84, %cst_31 [2] : vector<1x8x128xf32> to vector<1x8xf32>
    %86 = vector.shape_cast %85 : vector<1x8xf32> to vector<1x8x1xf32>
    %cst_32 = arith.constant 1.280000e+02 : f32
    %87 = vector.broadcast %cst_32 : f32 to vector<1x8x1xf32>
    %88 = arith.divf %86, %87 : vector<1x8x1xf32>
    %89 = arith.mulf %83, %83 : vector<1x8x1xf32>
    %90 = arith.subf %88, %89 : vector<1x8x1xf32>
    %cst_33 = arith.constant 0.000000e+00 : f32
    %91 = vector.broadcast %cst_33 : f32 to vector<1x8x1xf32>
    %92 = arith.maximumf %90, %91 : vector<1x8x1xf32>
    %93 = vector.broadcast %83 : vector<1x8x1xf32> to vector<1x8x128xf32>
    %94 = arith.subf %79, %93 : vector<1x8x128xf32>
    %cst_34 = arith.constant 9.99999974E-6 : f32
    %95 = vector.broadcast %cst_34 : f32 to vector<1x8x1xf32>
    %96 = arith.addf %92, %95 : vector<1x8x1xf32>
    %97 = math.rsqrt %96 : vector<1x8x1xf32>
    %98 = vector.broadcast %97 : vector<1x8x1xf32> to vector<1x8x128xf32>
    %99 = arith.mulf %94, %98 : vector<1x8x128xf32>
    %100 = vector.shape_cast %99 : vector<1x8x128xf32> to vector<8x128xf32>
    %c0_35 = arith.constant 0 : index
    %c0_36 = arith.constant 0 : index
    %c0_37 = arith.constant 0 : index
    %101 = vector.load %arg2[%c0_35, %c0_36, %c0_37] : memref<1x8x128xf32, #tpu.memory_space<vmem>>, vector<1x8x128xf32>
    %cst_38 = arith.constant dense<0.000000e+00> : vector<1x8xf32>
    %102 = vector.multi_reduction <add>, %101, %cst_38 [2] : vector<1x8x128xf32> to vector<1x8xf32>
    %103 = vector.shape_cast %102 : vector<1x8xf32> to vector<1x8x1xf32>
    %cst_39 = arith.constant 1.280000e+02 : f32
    %104 = vector.broadcast %cst_39 : f32 to vector<1x8x1xf32>
    %105 = arith.divf %103, %104 : vector<1x8x1xf32>
    %106 = arith.mulf %101, %101 : vector<1x8x128xf32>
    %cst_40 = arith.constant dense<0.000000e+00> : vector<1x8xf32>
    %107 = vector.multi_reduction <add>, %106, %cst_40 [2] : vector<1x8x128xf32> to vector<1x8xf32>
    %108 = vector.shape_cast %107 : vector<1x8xf32> to vector<1x8x1xf32>
    %cst_41 = arith.constant 1.280000e+02 : f32
    %109 = vector.broadcast %cst_41 : f32 to vector<1x8x1xf32>
    %110 = arith.divf %108, %109 : vector<1x8x1xf32>
    %111 = arith.mulf %105, %105 : vector<1x8x1xf32>
    %112 = arith.subf %110, %111 : vector<1x8x1xf32>
    %cst_42 = arith.constant 0.000000e+00 : f32
    %113 = vector.broadcast %cst_42 : f32 to vector<1x8x1xf32>
    %114 = arith.maximumf %112, %113 : vector<1x8x1xf32>
    %115 = vector.broadcast %105 : vector<1x8x1xf32> to vector<1x8x128xf32>
    %116 = arith.subf %101, %115 : vector<1x8x128xf32>
    %cst_43 = arith.constant 9.99999974E-6 : f32
    %117 = vector.broadcast %cst_43 : f32 to vector<1x8x1xf32>
    %118 = arith.addf %114, %117 : vector<1x8x1xf32>
    %119 = math.rsqrt %118 : vector<1x8x1xf32>
    %120 = vector.broadcast %119 : vector<1x8x1xf32> to vector<1x8x128xf32>
    %121 = arith.mulf %116, %120 : vector<1x8x128xf32>
    %122 = vector.shape_cast %121 : vector<1x8x128xf32> to vector<8x128xf32>
    %c0_44 = arith.constant 0 : index
    %c512 = arith.constant 512 : index
    %123 = vector.load %arg3[%c0_44, %c512] : memref<128x1280xbf16, #tpu.memory_space<vmem>>, vector<128x128xbf16>
    %124 = arith.truncf %100 : vector<8x128xf32> to vector<8x128xbf16>
    %cst_45 = arith.constant dense<0.000000e+00> : vector<8x128xf32>
    %125 = tpu.matmul %124, %123, %cst_45 {dimension_numbers = #tpu.dot_dimension_numbers<[1], [0], [0], [1], [0, 0, 1, 1], [], []>} : vector<8x128xbf16>, vector<128x128xbf16>, vector<8x128xf32> -> vector<8x128xf32>
    %126 = vector.shape_cast %125 : vector<8x128xf32> to vector<1x8x128xf32>
    %127 = vector.extract_strided_slice %2 {offsets = [4, 0], sizes = [1, 128], strides = [1, 1]} : vector<10x128xf32> to vector<1x128xf32>
    %128 = vector.shape_cast %127 : vector<1x128xf32> to vector<128xf32>
    %129 = vector.shape_cast %128 : vector<128xf32> to vector<1x1x128xf32>
    %130 = vector.broadcast %129 : vector<1x1x128xf32> to vector<1x8x128xf32>
    %131 = arith.addf %126, %130 : vector<1x8x128xf32>
    %132 = arith.truncf %131 : vector<1x8x128xf32> to vector<1x8x128xbf16>
    %c0_46 = arith.constant 0 : index
    %c640 = arith.constant 640 : index
    %133 = vector.load %arg3[%c0_46, %c640] : memref<128x1280xbf16, #tpu.memory_space<vmem>>, vector<128x256xbf16>
    %134 = arith.truncf %122 : vector<8x128xf32> to vector<8x128xbf16>
    %cst_47 = arith.constant dense<0.000000e+00> : vector<8x256xf32>
    %135 = tpu.matmul %134, %133, %cst_47 {dimension_numbers = #tpu.dot_dimension_numbers<[1], [0], [0], [1], [0, 0, 1, 1], [], []>} : vector<8x128xbf16>, vector<128x256xbf16>, vector<8x256xf32> -> vector<8x256xf32>
    %136 = vector.shape_cast %135 : vector<8x256xf32> to vector<1x8x256xf32>
    %c0_48 = arith.constant 0 : index
    %c0_49 = arith.constant 0 : index
    %c0_50 = arith.constant 0 : index
    %137 = vector.load %arg7[%c0_48, %c0_49, %c0_50] : memref<1x8x256xf32, #tpu.memory_space<vmem>>, vector<1x8x256xf32>
    tpu.vector_store %arg7[%c0_48, %c0_49, %c0_50], %136 {strides = array<i32>} : memref<1x8x256xf32, #tpu.memory_space<vmem>>, vector<1x8x256xf32>,
    %c0_51 = arith.constant 0 : index
    %c0_52 = arith.constant 0 : index
    %c0_53 = arith.constant 0 : index
    %138 = vector.load %arg7[%c0_51, %c0_52, %c0_53] : memref<1x8x256xf32, #tpu.memory_space<vmem>>, vector<1x8x128xf32>
    %139 = vector.extract_strided_slice %2 {offsets = [5, 0], sizes = [1, 128], strides = [1, 1]} : vector<10x128xf32> to vector<1x128xf32>
    %140 = vector.shape_cast %139 : vector<1x128xf32> to vector<128xf32>
    %141 = vector.shape_cast %140 : vector<128xf32> to vector<1x1x128xf32>
    %142 = vector.broadcast %141 : vector<1x1x128xf32> to vector<1x8x128xf32>
    %143 = arith.addf %138, %142 : vector<1x8x128xf32>
    %144 = arith.truncf %143 : vector<1x8x128xf32> to vector<1x8x128xbf16>
    %c0_54 = arith.constant 0 : index
    %c0_55 = arith.constant 0 : index
    %c128_56 = arith.constant 128 : index
    %145 = vector.load %arg7[%c0_54, %c0_55, %c128_56] : memref<1x8x256xf32, #tpu.memory_space<vmem>>, vector<1x8x128xf32>
    %146 = vector.extract_strided_slice %2 {offsets = [6, 0], sizes = [1, 128], strides = [1, 1]} : vector<10x128xf32> to vector<1x128xf32>
    %147 = vector.shape_cast %146 : vector<1x128xf32> to vector<128xf32>
    %148 = vector.shape_cast %147 : vector<128xf32> to vector<1x1x128xf32>
    %149 = vector.broadcast %148 : vector<1x1x128xf32> to vector<1x8x128xf32>
    %150 = arith.addf %145, %149 : vector<1x8x128xf32>
    %151 = arith.truncf %150 : vector<1x8x128xf32> to vector<1x8x128xbf16>
    "tpu.trace_start"() <{level = 10 : i32, message = "bqd,bkd->bqk"}> : () -> ()
    %cst_57 = arith.constant dense<0.000000e+00> : vector<1x8x8xf32>
    %152 = tpu.matmul %132, %144, %cst_57 {dimension_numbers = #tpu.dot_dimension_numbers<[2], [2], [1], [1], [0, 0, 0, 1, 1, 1], [0], [0]>} : vector<1x8x128xbf16>, vector<1x8x128xbf16>, vector<1x8x8xf32> -> vector<1x8x8xf32>
    "tpu.trace_stop"() : () -> ()
    %cst_58 = arith.constant dense<0xFF800000> : vector<1x8xf32>
    %153 = vector.multi_reduction <maximumf>, %152, %cst_58 [2] : vector<1x8x8xf32> to vector<1x8xf32>
    %154 = vector.shape_cast %153 : vector<1x8xf32> to vector<1x8x1xf32>
    %155 = vector.broadcast %154 : vector<1x8x1xf32> to vector<1x8x8xf32>
    %156 = arith.subf %152, %155 : vector<1x8x8xf32>
    %157 = math.exp %156 : vector<1x8x8xf32>
    %cst_59 = arith.constant dense<0.000000e+00> : vector<1x8xf32>
    %158 = vector.multi_reduction <add>, %157, %cst_59 [2] : vector<1x8x8xf32> to vector<1x8xf32>
    %159 = vector.shape_cast %158 : vector<1x8xf32> to vector<1x8x1xf32>
    %160 = tpu.reciprocal %159 {approx = true} : vector<1x8x1xf32> -> vector<1x8x1xf32>
    %161 = vector.broadcast %160 : vector<1x8x1xf32> to vector<1x8x8xf32>
    %162 = arith.mulf %157, %161 : vector<1x8x8xf32>
    %163 = arith.truncf %162 : vector<1x8x8xf32> to vector<1x8x8xbf16>
    "tpu.trace_start"() <{level = 10 : i32, message = "bqk,bkd->bqd"}> : () -> ()
    %cst_60 = arith.constant dense<0.000000e+00> : vector<1x8x128xf32>
    %164 = tpu.matmul %163, %151, %cst_60 {dimension_numbers = #tpu.dot_dimension_numbers<[2], [1], [1], [2], [0, 0, 0, 1, 1, 2], [0], [0]>} : vector<1x8x8xbf16>, vector<1x8x128xbf16>, vector<1x8x128xf32> -> vector<1x8x128xf32>
    "tpu.trace_stop"() : () -> ()
    %165 = vector.shape_cast %164 : vector<1x8x128xf32> to vector<8x128xf32>
    %c0_61 = arith.constant 0 : index
    %c896 = arith.constant 896 : index
    %166 = vector.load %arg3[%c0_61, %c896] : memref<128x1280xbf16, #tpu.memory_space<vmem>>, vector<128x128xbf16>
    %167 = arith.truncf %165 : vector<8x128xf32> to vector<8x128xbf16>
    %cst_62 = arith.constant dense<0.000000e+00> : vector<8x128xf32>
    %168 = tpu.matmul %167, %166, %cst_62 {dimension_numbers = #tpu.dot_dimension_numbers<[1], [0], [0], [1], [0, 0, 1, 1], [], []>} : vector<8x128xbf16>, vector<128x128xbf16>, vector<8x128xf32> -> vector<8x128xf32>
    %169 = vector.shape_cast %168 : vector<8x128xf32> to vector<1x8x128xf32>
    %170 = vector.extract_strided_slice %2 {offsets = [7, 0], sizes = [1, 128], strides = [1, 1]} : vector<10x128xf32> to vector<1x128xf32>
    %171 = vector.shape_cast %170 : vector<1x128xf32> to vector<128xf32>
    %172 = vector.shape_cast %171 : vector<128xf32> to vector<1x1x128xf32>
    %173 = vector.broadcast %172 : vector<1x1x128xf32> to vector<1x8x128xf32>
    %174 = arith.addf %169, %173 : vector<1x8x128xf32>
    %175 = arith.addf %79, %174 : vector<1x8x128xf32>
    %cst_63 = arith.constant dense<0.000000e+00> : vector<1x8xf32>
    %176 = vector.multi_reduction <add>, %175, %cst_63 [2] : vector<1x8x128xf32> to vector<1x8xf32>
    %177 = vector.shape_cast %176 : vector<1x8xf32> to vector<1x8x1xf32>
    %cst_64 = arith.constant 1.280000e+02 : f32
    %178 = vector.broadcast %cst_64 : f32 to vector<1x8x1xf32>
    %179 = arith.divf %177, %178 : vector<1x8x1xf32>
    %180 = arith.mulf %175, %175 : vector<1x8x128xf32>
    %cst_65 = arith.constant dense<0.000000e+00> : vector<1x8xf32>
    %181 = vector.multi_reduction <add>, %180, %cst_65 [2] : vector<1x8x128xf32> to vector<1x8xf32>
    %182 = vector.shape_cast %181 : vector<1x8xf32> to vector<1x8x1xf32>
    %cst_66 = arith.constant 1.280000e+02 : f32
    %183 = vector.broadcast %cst_66 : f32 to vector<1x8x1xf32>
    %184 = arith.divf %182, %183 : vector<1x8x1xf32>
    %185 = arith.mulf %179, %179 : vector<1x8x1xf32>
    %186 = arith.subf %184, %185 : vector<1x8x1xf32>
    %cst_67 = arith.constant 0.000000e+00 : f32
    %187 = vector.broadcast %cst_67 : f32 to vector<1x8x1xf32>
    %188 = arith.maximumf %186, %187 : vector<1x8x1xf32>
    %189 = vector.broadcast %179 : vector<1x8x1xf32> to vector<1x8x128xf32>
    %190 = arith.subf %175, %189 : vector<1x8x128xf32>
    %cst_68 = arith.constant 9.99999974E-6 : f32
    %191 = vector.broadcast %cst_68 : f32 to vector<1x8x1xf32>
    %192 = arith.addf %188, %191 : vector<1x8x1xf32>
    %193 = math.rsqrt %192 : vector<1x8x1xf32>
    %194 = vector.broadcast %193 : vector<1x8x1xf32> to vector<1x8x128xf32>
    %195 = arith.mulf %190, %194 : vector<1x8x128xf32>
    %196 = vector.shape_cast %195 : vector<1x8x128xf32> to vector<8x128xf32>
    %c0_69 = arith.constant 0 : index
    %c1024 = arith.constant 1024 : index
    %197 = vector.load %arg3[%c0_69, %c1024] : memref<128x1280xbf16, #tpu.memory_space<vmem>>, vector<128x128xbf16>
    %198 = arith.truncf %196 : vector<8x128xf32> to vector<8x128xbf16>
    %cst_70 = arith.constant dense<0.000000e+00> : vector<8x128xf32>
    %199 = tpu.matmul %198, %197, %cst_70 {dimension_numbers = #tpu.dot_dimension_numbers<[1], [0], [0], [1], [0, 0, 1, 1], [], []>} : vector<8x128xbf16>, vector<128x128xbf16>, vector<8x128xf32> -> vector<8x128xf32>
    %200 = vector.shape_cast %199 : vector<8x128xf32> to vector<1x8x128xf32>
    %201 = vector.extract_strided_slice %2 {offsets = [8, 0], sizes = [1, 128], strides = [1, 1]} : vector<10x128xf32> to vector<1x128xf32>
    %202 = vector.shape_cast %201 : vector<1x128xf32> to vector<128xf32>
    %203 = vector.shape_cast %202 : vector<128xf32> to vector<1x1x128xf32>
    %204 = vector.broadcast %203 : vector<1x1x128xf32> to vector<1x8x128xf32>
    %205 = arith.addf %200, %204 : vector<1x8x128xf32>
    %cst_71 = arith.constant 0.000000e+00 : f32
    %206 = vector.broadcast %cst_71 : f32 to vector<1x8x128xf32>
    %207 = arith.maximumf %205, %206 : vector<1x8x128xf32>
    %cst_72 = arith.constant dense<0.000000e+00> : vector<1x8xf32>
    %208 = vector.multi_reduction <add>, %207, %cst_72 [2] : vector<1x8x128xf32> to vector<1x8xf32>
    %209 = vector.shape_cast %208 : vector<1x8xf32> to vector<1x8x1xf32>
    %cst_73 = arith.constant 1.280000e+02 : f32
    %210 = vector.broadcast %cst_73 : f32 to vector<1x8x1xf32>
    %211 = arith.divf %209, %210 : vector<1x8x1xf32>
    %212 = arith.mulf %207, %207 : vector<1x8x128xf32>
    %cst_74 = arith.constant dense<0.000000e+00> : vector<1x8xf32>
    %213 = vector.multi_reduction <add>, %212, %cst_74 [2] : vector<1x8x128xf32> to vector<1x8xf32>
    %214 = vector.shape_cast %213 : vector<1x8xf32> to vector<1x8x1xf32>
    %cst_75 = arith.constant 1.280000e+02 : f32
    %215 = vector.broadcast %cst_75 : f32 to vector<1x8x1xf32>
    %216 = arith.divf %214, %215 : vector<1x8x1xf32>
    %217 = arith.mulf %211, %211 : vector<1x8x1xf32>
    %218 = arith.subf %216, %217 : vector<1x8x1xf32>
    %cst_76 = arith.constant 0.000000e+00 : f32
    %219 = vector.broadcast %cst_76 : f32 to vector<1x8x1xf32>
    %220 = arith.maximumf %218, %219 : vector<1x8x1xf32>
    %221 = vector.broadcast %211 : vector<1x8x1xf32> to vector<1x8x128xf32>
    %222 = arith.subf %207, %221 : vector<1x8x128xf32>
    %cst_77 = arith.constant 9.99999974E-6 : f32
    %223 = vector.broadcast %cst_77 : f32 to vector<1x8x1xf32>
    %224 = arith.addf %220, %223 : vector<1x8x1xf32>
    %225 = math.rsqrt %224 : vector<1x8x1xf32>
    %226 = vector.broadcast %225 : vector<1x8x1xf32> to vector<1x8x128xf32>
    %227 = arith.mulf %222, %226 : vector<1x8x128xf32>
    %228 = vector.shape_cast %227 : vector<1x8x128xf32> to vector<8x128xf32>
    %c0_78 = arith.constant 0 : index
    %c1152 = arith.constant 1152 : index
    %229 = vector.load %arg3[%c0_78, %c1152] : memref<128x1280xbf16, #tpu.memory_space<vmem>>, vector<128x128xbf16>
    %230 = arith.truncf %228 : vector<8x128xf32> to vector<8x128xbf16>
    %cst_79 = arith.constant dense<0.000000e+00> : vector<8x128xf32>
    %231 = tpu.matmul %230, %229, %cst_79 {dimension_numbers = #tpu.dot_dimension_numbers<[1], [0], [0], [1], [0, 0, 1, 1], [], []>} : vector<8x128xbf16>, vector<128x128xbf16>, vector<8x128xf32> -> vector<8x128xf32>
    %232 = vector.shape_cast %231 : vector<8x128xf32> to vector<1x8x128xf32>
    %233 = vector.extract_strided_slice %2 {offsets = [9, 0], sizes = [1, 128], strides = [1, 1]} : vector<10x128xf32> to vector<1x128xf32>
    %234 = vector.shape_cast %233 : vector<1x128xf32> to vector<128xf32>
    %235 = vector.shape_cast %234 : vector<128xf32> to vector<1x1x128xf32>
    %236 = vector.broadcast %235 : vector<1x1x128xf32> to vector<1x8x128xf32>
    %237 = arith.addf %232, %236 : vector<1x8x128xf32>
    %238 = arith.addf %175, %237 : vector<1x8x128xf32>
    %c0_80 = arith.constant 0 : index
    %c0_81 = arith.constant 0 : index
    %c0_82 = arith.constant 0 : index
    %239 = vector.load %arg5[%c0_80, %c0_81, %c0_82] : memref<1x8x128xf32, #tpu.memory_space<vmem>>, vector<1x8x128xf32>
    tpu.vector_store %arg5[%c0_80, %c0_81, %c0_82], %238 {strides = array<i32>} : memref<1x8x128xf32, #tpu.memory_space<vmem>>, vector<1x8x128xf32>,
    return
  }
  func.func @transform_0(%arg0: i32) -> (i32, i32, i32) {
    %c0_i32 = arith.constant 0 : i32
    %c0_i32_0 = arith.constant 0 : i32
    %c0_i32_1 = arith.constant 0 : i32
    return %arg0, %c0_i32, %c0_i32_0 : i32, i32, i32
  }
  func.func @transform_1(%arg0: i32) -> (i32, i32, i32) {
    %c0_i32 = arith.constant 0 : i32
    %c0_i32_0 = arith.constant 0 : i32
    %c0_i32_1 = arith.constant 0 : i32
    return %arg0, %c0_i32, %c0_i32_0 : i32, i32, i32
  }
  func.func @transform_2(%arg0: i32) -> (i32, i32) {
    %c0_i32 = arith.constant 0 : i32
    %c0_i32_0 = arith.constant 0 : i32
    %c0_i32_1 = arith.constant 0 : i32
    return %c0_i32, %c0_i32_0 : i32, i32
  }
  func.func @transform_3(%arg0: i32) -> (i32, i32) {
    %c0_i32 = arith.constant 0 : i32
    %c0_i32_0 = arith.constant 0 : i32
    %c0_i32_1 = arith.constant 0 : i32
    return %c0_i32, %c0_i32_0 : i32, i32
  }
  func.func @transform_4(%arg0: i32) -> (i32, i32, i32) {
    %c0_i32 = arith.constant 0 : i32
    %c0_i32_0 = arith.constant 0 : i32
    %c0_i32_1 = arith.constant 0 : i32
    return %arg0, %c0_i32, %c0_i32_0 : i32, i32, i32
  }
}

</mosaic_0001>

<bundles_post_ra>
// kernel: tpu_custom_call.1
= control target key start
LH: loop header
LB: loop body
LE: loop exit
PB: predicated region body
PF: predicated region fallthrough
CT: control target
= control target key end

     0   :  { %s2697_s0 = inlined_call_operand.hbm [shape: f32[2,8,128], index: 0, kind: input, shape index: {}]   ;;  %s2698_s1 = inlined_call_operand.hbm [shape: f32[2,8,128], index: 1, kind: input, shape index: {}]   ;;  %s2699_s2 = inlined_call_operand.hbm [shape: bf16[128,1280], index: 2, kind: input, shape index: {}]   ;;  %s2700_s3 = inlined_call_operand.vmem [shape: bf16[10,128], index: 3, kind: input, shape index: {}]   ;;  %s2701_s4 = inlined_call_operand.hbm [shape: f32[2,8,128], index: 4, kind: output, shape index: {}]  }
   0x1   :  { %2706 = sst [smem:[#allocation15_spill]] %s2699_s2 }
   0x2   :  { %9 = vsyncpa [#allocation5], 0 }
   0x3   :  { %11 = vsyncpa [#allocation5 + $0x1], 0 }
   0x4   :  { %12 = vsyncpa [#allocation8], 0 }
   0x5   :  { %14 = vsyncpa [#allocation8 + $0x1], 0 }
   0x6   :  { %15 = vsyncpa [#allocation6], 0 }
   0x7   :  { %17 = vsyncpa [#allocation6 + $0x1], 0  ;;  %s2322_s15 = smov 0   ;;  %s2324_s16 = smov 0  }
   0x8   :  { %s2326_s17 = smov 0   ;;  %s2328_s18 = smov 0  }
   0x9 LB: > { %s2343_s19 = sadd.s32 4294967295, %s2286_s18   ;;  %s1638_s20 = sadd.s32 4294967294, %s2286_s18   ;;  %s2286_s18 = sphi %s2328_s18, %s2725_s18   ;;  %s2282_s17 = sphi %s2326_s17, %s2724_s17   ;;  %s2278_s16 = sphi %s2324_s16, %s2723_s16   ;;  %s2274_s15 = sphi %s2322_s15, %s2722_s15  }
   0xa   : > { %p43_p0 = scmp.ne.s32.totalorder %s2278_s16, %s2274_s15  ;;  %p2702_p1 = scmp.eq.s32.totalorder %s2343_s19, 0 }
   0xb   : > { %p141_p3 = scmp.eq.s32.totalorder %s1638_s20, 1  ;;  %p1639_p5 = scmp.ge.s32.totalorder %s2286_s18, 1 }
   0xc   : > { %p2352_p4 = por %p2702_p1, %p43_p0  ;;  %p148_p7 = scmp.lt.s32.totalorder %s2286_s18, 3 }
   0xd   : > { %p2357_p6 = por %p141_p3, %p43_p0  ;;  %s2288_s24 = smov [#allocation9]  }
   0xe   : > { %s2707_s21 = scalar_select %p2352_p4, 1, 0 }
   0xf   : > { %s2708_s22 = scalar_select %p2357_p6, 1, 0 }
  0x10   : > { %p2362_p8 = pnand %p1639_p5, %p148_p7  ;;  %s160_s25 = sshll.u32 %s2288_s24, 4  ;;  %s2366_s25 = int_to_ptr.vmem [resolvable:$true] %s160_s25 }
  0x11   : > { %s2378_s27 = sadd.s32 1, %s2286_s18   ;;  %s30_s28 = sadd.s32 1, %s2282_s17 }
  0x12   : > { %s2709_s23 = scalar_select %p2362_p8, 1, 0 }
  0x13   : > { %p1953_p9 = pneg %p2362_p8  ;;  %s27_s29 = ssub.s32 %s2286_s18, %s2378_s27 }
  0x14   : > { %s2711_s2 = sld [smem:[#allocation15_spill]] }
  0x15   : > { %p2373_p11 = pnand %p1953_p9, %p2702_p1 }
  0x17   : > { %p2126_p13 = pneg %p2373_p11 }
  0x1a   : > { %s2124_s6 = scalar_lea.hbm %s2711_s2, 10240 }
  0x1b   : > { %p2125_p12 = scmp.ne.s32.totalorder %s2711_s2, %s2124_s6  ;;  %p2131_p5 = scmp.lt.u32.totalorder %s2124_s6, %s2711_s2 }
  0x1d   : > { %p2127_p0 = pnand %p2126_p13, %p2125_p12 }
  0x1f   : > { %p2128_p3 = pneg %p2127_p0 }
  0x21   : > { %p2133_p7 = pnand %p2131_p5, %p2128_p3 }
  0x23   : > { %2136 = shalt.err (!%p2133_p7)
}
  0x24   : > { %s2137_s11 = scalar_lea.vmem %s2366_s25, 10240  ;;  %p2145_p2 = scmp.lt.s32.totalorder %s2366_s25, %s2366_s25 }
  0x25   : > { %p2138_p9 = scmp.ne.s32.totalorder %s2366_s25, %s2137_s11  ;;  %p2146_p6 = scmp.lt.s32.totalorder %s2137_s11, %s2137_s11 }
  0x27   : > { %p2140_p10 = pnand %p2138_p9, %p2126_p13  ;;  %p2147_p4 = por %p2146_p6, %p2145_p2 }
  0x29   : > { %p2141_p1 = pneg %p2140_p10 }
  0x2b   : > { %p2148_p8 = pnand %p2147_p4, %p2141_p1 }
  0x2d   : > { %2151 = shalt.err (!%p2148_p8)
}
  0x2e   : > { %s2289_s12 = smov 640   ;;  %s2290_s13 = smov 40  }
  0x2f   : > { %1956 = dma.hbm_to_vmem [thread:$0]  (!%p2373_p11), %s2711_s2, 10240, %s2366_s25, [#allocation8], %s2289_s12, %s2289_s12, %s2290_s13  }
  0x30   : > { %p28_p2 = scmp.eq.s32.totalorder %s27_s29, 0  ;;  %p37_p1 = scmp.ne.s32.totalorder %s2282_s17, %s2278_s16 }
  0x31   : > { %p38_p4 = scmp.eq.s32.totalorder %s2286_s18, 0  ;;  %p1969_p6 = scmp.lt.s32.totalorder %s2286_s18, 2 }
  0x32   : > { %s2409_s24 = scalar_select %p28_p2, %s2282_s17, %s30_s28  }
  0x33   : > { %p39_p8 = por %p38_p4, %p37_p1  ;;  %p2712_p10 = scmp.eq.s32.totalorder %s2343_s19, 1 }
  0x34   : > { %s177_s5 = sand.u32 1, %s2282_s17   ;;  %s1643_s6 = sshll.u32 %s2286_s18, 7 }
  0x35   : > { %p2413_p12 = por %p2712_p10, %p37_p1  ;;  %s2419_s7 = sshll.u32 %s177_s5, 3 }
  0x36   : > { %s2424_s25 = scalar_lea.hbm %s2697_s0, %s1643_s6  ;;  %s181_s28 = scalar_lea.vmem [#allocation4], %s2419_s7 }
  0x37   : > { %s2713_s30 = scalar_select %p2413_p12, 1, 0 }
  0x38   : > { %s188_s29 = sshll.u32 %s181_s28, 4  ;;  %p2427_p11 = pnand %p1969_p6, %p39_p8  ;;  %s2431_s29 = int_to_ptr.vmem [resolvable:$true] %s188_s29 }
  0x39   : > { %s2436_s12 = scalar_lea.hbm %s2698_s1, %s1643_s6  ;;  %s178_s13 = scalar_lea.sflag [#allocation5], %s177_s5 }
  0x3a   : > { %s2152_s14 = scalar_lea.hbm %s2424_s25, 128  ;;  %p2154_p0 = pneg %p2427_p11 }
  0x3b   : > { %p2153_p13 = scmp.ne.s32.totalorder %s2424_s25, %s2152_s14  ;;  %s2157_s8 = scalar_lea.hbm %s2697_s0, 256 }
  0x3c   : > { %p2158_p7 = scmp.lt.u32.totalorder %s2424_s25, %s2697_s0  ;;  %p2159_p9 = scmp.lt.u32.totalorder %s2157_s8, %s2152_s14 }
  0x3d   : > { %p2155_p3 = pnand %p2154_p0, %p2153_p13  ;;  %p2161_p1 = scmp.lt.u32.totalorder %s2152_s14, %s2424_s25 }
  0x3e   : > { %p2160_p2 = por %p2159_p9, %p2158_p7 }
  0x3f   : > { %p2156_p5 = pneg %p2155_p3 }
  0x40   : > { %p2162_p4 = por %p2161_p1, %p2160_p2 }
  0x42   : > { %p2163_p6 = pnand %p2162_p4, %p2156_p5 }
  0x44   : > { %2166 = shalt.err (!%p2163_p6)
}
  0x45   : > { %s2167_s5 = scalar_lea.vmem %s2431_s29, 128  ;;  %s2291_s6 = smov [#allocation4]  }
  0x46   : > { %p2168_p8 = scmp.ne.s32.totalorder %s2431_s29, %s2167_s5  ;;  %s2172_s10 = sshll.u32 %s2291_s6, 4  ;;  %s2173_s10 = int_to_ptr.vmem [resolvable:$false] %s2172_s10 }
  0x47   : > { %s2174_s2 = scalar_lea.vmem %s2173_s10, 256  ;;  %p2175_p3 = scmp.lt.s32.totalorder %s2431_s29, %s2173_s10 }
  0x48   : > { %p2170_p10 = pnand %p2168_p8, %p2154_p0  ;;  %p2176_p7 = scmp.lt.s32.totalorder %s2174_s2, %s2167_s5 }
  0x4a   : > { %p2171_p13 = pneg %p2170_p10  ;;  %p2177_p9 = por %p2176_p7, %p2175_p3 }
  0x4c   : > { %p2178_p2 = pnand %p2177_p9, %p2171_p13 }
  0x4e   : > { %2181 = shalt.err (!%p2178_p2)
}
  0x4f   : > { %1960 = dma.hbm_to_vmem [thread:$0]  (!%p2427_p11), %s2424_s25, 128, %s2431_s29, %s178_s13  }
  0x50   : > { %s195_s11 = sand.u32 1, %s2286_s18   ;;  %s199_s14 = scalar_lea.vmem [#allocation7], %s2419_s7 }
  0x51   : > { %s206_s20 = sshll.u32 %s199_s14, 4  ;;  %s196_s26 = scalar_lea.sflag [#allocation8], %s195_s11  ;;  %s207_s20 = int_to_ptr.vmem [resolvable:$true] %s206_s20 }
  0x52   : > { %s2182_s8 = scalar_lea.hbm %s2436_s12, 128  ;;  %s2187_s6 = scalar_lea.hbm %s2698_s1, 256 }
  0x53   : > { %p2183_p5 = scmp.ne.s32.totalorder %s2436_s12, %s2182_s8  ;;  %p2188_p6 = scmp.lt.u32.totalorder %s2436_s12, %s2698_s1 }
  0x54   : > { %p2189_p8 = scmp.lt.u32.totalorder %s2187_s6, %s2182_s8  ;;  %p2191_p13 = scmp.lt.u32.totalorder %s2182_s8, %s2436_s12 }
  0x55   : > { %p2185_p1 = pnand %p2183_p5, %p2154_p0 }
  0x56   : > { %p2190_p10 = por %p2189_p8, %p2188_p6 }
  0x57   : > { %p2186_p4 = pneg %p2185_p1 }
  0x58   : > { %p2192_p3 = por %p2191_p13, %p2190_p10 }
  0x5a   : > { %p2193_p7 = pnand %p2192_p3, %p2186_p4 }
  0x5c   : > { %2196 = shalt.err (!%p2193_p7)
}
  0x5d   : > { %s2197_s7 = scalar_lea.vmem %s207_s20, 128  ;;  %s2292_s25 = smov [#allocation7]  }
  0x5e   : > { %p2198_p9 = scmp.ne.s32.totalorder %s207_s20, %s2197_s7  ;;  %s2202_s29 = sshll.u32 %s2292_s25, 4  ;;  %s2203_s29 = int_to_ptr.vmem [resolvable:$false] %s2202_s29 }
  0x5f   : > { %s2204_s13 = scalar_lea.vmem %s2203_s29, 256  ;;  %p2205_p1 = scmp.lt.s32.totalorder %s207_s20, %s2203_s29 }
  0x60   : > { %p2200_p2 = pnand %p2198_p9, %p2154_p0  ;;  %p2206_p12 = scmp.lt.s32.totalorder %s2204_s13, %s2197_s7 }
  0x62   : > { %p2201_p5 = pneg %p2200_p2  ;;  %p2207_p6 = por %p2206_p12, %p2205_p1 }
  0x64   : > { %p2208_p8 = pnand %p2207_p6, %p2201_p5 }
  0x66   : > { %2211 = shalt.err (!%p2208_p8)
}
  0x67   : > { %1963 = dma.hbm_to_vmem [thread:$0]  (!%p2427_p11), %s2436_s12, 128, %s207_s20, %s196_s26  }
  0x68   : > { %p2715_p4 = scmp.ne.s32.totalorder %s2709_s23, 0 }
  0x69   : > { %s2487_s11 = sand.u32 (!%p2715_p4), 1, %s2278_s16   ;;  %p2716_p12 = scmp.ne.s32.totalorder (!%p2715_p4), %s2707_s21, 0 }
  0x6a   : > { %215 = sbr.rel (%p2715_p4) target bundleno = 3594 (0xe0a), region = 36  ;;  %s2490_s14 = sshll.u32 (!%p2715_p4), %s2487_s11, 3 }
  0x6b   : > { %s218_s8 = scalar_lea.sflag (!%p2715_p4), [#allocation5], %s2487_s11  ;;  %s221_s28 = scalar_lea.vmem (!%p2715_p4), [#allocation4], %s2490_s14 }
  0x71   : > { %2257 = dma.done.wait (%p2716_p12), %s218_s8, 128  }
  0x72   : > { %2259 = vsyncadd (%p2716_p12), %s218_s8, 4294967168  ;;  %s226_s23 = sand.u32 1, %s2343_s19   ;;  %s230_s12 = scalar_lea.vmem [#allocation7], %s2490_s14 }
  0x73   : > { %s227_s9 = scalar_lea.sflag [#allocation8], %s226_s23 }
  0x74   : > { %2261 = dma.done.wait (%p2716_p12), %s227_s9, 128  }
  0x75   : > { %2263 = vsyncadd (%p2716_p12), %s227_s9, 4294967168  ;;  %p2717_p11 = scmp.eq.s32.totalorder %s2343_s19, 0 }
  0x77   : > { %2265 = dma.done.wait (%p2717_p11), [#allocation8], 10240   ;;  %p2718_p0 = pmov %p2717_p11 }
  0x78   : > { %v2293_v0 = vmov 0.0   ;;  %v2509_v1 = vld [vmem:[%s221_s28] sm:$0xff]  ;;  %v2014_v6 = vld [vmem:[#allocation9 + $0x54] ss:$40 sps:$4 sm:$0xff]   ;;  %v2016_v7 = vld [vmem:[#allocation9 + $0x50] ss:$40 sps:$4 sm:$0xff]   ;;  %v531_v40 = vlaneseq }
  0x79   : > { %2267 = vsyncadd (%p2718_p0), [#allocation8], 4294957056  ;;  %1799 = vmatprep.subr.bf16.mxu1 %v2293_v0  ;;  %270 = vadd.xlane.f32.xlu0 %v2509_v1  ;;  %v274_v2 = vmul.f32 %v2509_v1, %v2509_v1  ;;  %v2010_v3 = vld [vmem:[#allocation9 + $0x4] ss:$40 sps:$4 sm:$0xff]   ;;  %v2012_v4 = vld [vmem:[#allocation9] ss:$40 sps:$4 sm:$0xff]  }
  0x7a   : > { %v2013_v5 = vld [vmem:[#allocation9 + $0x8] ss:$40 sps:$4 sm:$0xff]   ;;  %446 = vmatprep.subr.bf16.mxu0 %v2010_v3  ;;  %v2017_v8 = vld [vmem:[#allocation9 + $0x58] ss:$40 sps:$4 sm:$0xff]   ;;  %v2018_v9 = vld [vmem:[#allocation9 + $0xa4] ss:$40 sps:$4 sm:$0xff]  }
  0x7b   : > { %447 = vmatpush1.bf16.msra.mxu0 %v2012_v4  ;;  %1800 = vmatpush3.bf16.msra.mxu1 %v2013_v5  ;;  %v2020_v10 = vld [vmem:[#allocation9 + $0xa0] ss:$40 sps:$4 sm:$0xff]   ;;  %v2022_v12 = vld [vmem:[#allocation9 + $0xf4] ss:$40 sps:$4 sm:$0xff]   ;;  %v2024_v13 = vld [vmem:[#allocation9 + $0xf0] ss:$40 sps:$4 sm:$0xff]  }
  0x7c   : > { %448 = vmatprep.subr.bf16.mxu0 %v2014_v6  ;;  %1801 = vmatprep.subr.bf16.mxu1 %v2293_v0  ;;  %v2021_v11 = vld [vmem:[#allocation9 + $0xa8] ss:$40 sps:$4 sm:$0xff]   ;;  %v2025_v14 = vld [vmem:[#allocation9 + $0xf8] ss:$40 sps:$4 sm:$0xff]   ;;  %v2026_v15 = vld [vmem:[#allocation9 + $0x144] ss:$40 sps:$4 sm:$0xff]  }
  0x7d   : > { %275 = vadd.xlane.f32.xlu0 %v274_v2  ;;  %v2028_v16 = vld [vmem:[#allocation9 + $0x140] ss:$40 sps:$4 sm:$0xff]   ;;  %v2030_v18 = vld [vmem:[#allocation9 + $0x194] ss:$40 sps:$4 sm:$0xff]   ;;  %v2032_v19 = vld [vmem:[#allocation9 + $0x190] ss:$40 sps:$4 sm:$0xff]  }
  0x7e   : > { %v2029_v17 = vld [vmem:[#allocation9 + $0x148] ss:$40 sps:$4 sm:$0xff]   ;;  %v2033_v20 = vld [vmem:[#allocation9 + $0x198] ss:$40 sps:$4 sm:$0xff]   ;;  %v2034_v21 = vld [vmem:[#allocation9 + $0x1e4] ss:$40 sps:$4 sm:$0xff]  }
  0x7f   : > { %449 = vmatpush1.bf16.msra.mxu0 %v2016_v7  ;;  %1802 = vmatpush3.bf16.msra.mxu1 %v2017_v8  ;;  %v2036_v22 = vld [vmem:[#allocation9 + $0x1e0] ss:$40 sps:$4 sm:$0xff]   ;;  %v2038_v24 = vld [vmem:[#allocation9 + $0x234] ss:$40 sps:$4 sm:$0xff]   ;;  %v2040_v25 = vld [vmem:[#allocation9 + $0x230] ss:$40 sps:$4 sm:$0xff]  }
  0x80   : > { %1803 = vmatprep.subr.bf16.mxu1 %v2293_v0  ;;  %450 = vmatprep.subr.bf16.mxu0 %v2018_v9  ;;  %v2037_v23 = vld [vmem:[#allocation9 + $0x1e8] ss:$40 sps:$4 sm:$0xff]   ;;  %v2041_v26 = vld [vmem:[#allocation9 + $0x238] ss:$40 sps:$4 sm:$0xff]   ;;  %v2294_v27 = vmov 0   ;;  %vm2295_vm0 = vmmov 0  }
  0x81   : > { %478 = vmatprep.mubr.bf16.mxu0 %v2294_v27  ;;  %1815 = vmatprep.mubr.msk.bf16.mxu1 %vm2295_vm0, %v2293_v0  ;;  %v2531_v41 = vshrl.u32 %v531_v40, 7  ;;  %v266_v42 = vld [vmem:[%s2700_s3] sm:$0xf]  ;;  %vm613_vm1 = vcmask 1043456   ;;  %v594_v3 = vand.u32 127, %v531_v40  ;;  %vm597_vm3 = vcmask 64512  }
  0x82   : > { %v2536_v43 = vunpack.c.l.bf16 %v266_v42  ;;  %s1734_s6 = sshll.u32 %s2343_s19, 7  ;;  %s263_s10 = scalar_lea.vmem [#allocation10], %s2490_s14 }
  0x83   : > { %451 = vmatpush1.bf16.msra.mxu0 %v2020_v10  ;;  %1804 = vmatpush3.bf16.msra.mxu1 %v2021_v11  ;;  %v540_v44 = vsub.s32 1, %v2531_v41  ;;  %v547_v45 = vsub.s32 2, %v2531_v41  ;;  %v533_v47 = vsub.s32 0, %v2531_v41  ;;  %vm595_vm2 = vcmp.ge.s32.totalorder %v2531_v41, %v594_v3  ;;  %s1536_s2 = sshll.u32 %s263_s10, 4  ;;  %s2653_s29 = scalar_lea.hbm %s2701_s4, %s1734_s6  ;;  %s2655_s2 = int_to_ptr.vmem [resolvable:$true] %s1536_s2 }
  0x84   : > { %1805 = vmatprep.subr.bf16.mxu1 %v2293_v0  ;;  %452 = vmatprep.subr.bf16.mxu0 %v2022_v12  ;;  %s1523_s19 = scalar_lea.sflag [#allocation6], %s2487_s11  ;;  %s2212_s13 = scalar_lea.vmem %s2655_s2, 128 }
  0x85   : > { %v541_v46 = vrot.slane %v2536_v43, %v540_v44  ;;  %v548_v50 = vrot.slane %v2536_v43, %v547_v45  ;;  %v534_v56 = vrot.slane %v2536_v43, %v533_v47  ;;  %v2053_v45 = vld [vmem:[#allocation9 + $0x64] ss:$40 sps:$4 sm:$0xff]   ;;  %p2213_p10 = scmp.ne.s32.totalorder %s2655_s2, %s2212_s13  ;;  %p2719_p13 = scmp.ne.s32.totalorder %s2713_s30, 0 }
  0x86   : > { %s2296_s14 = smov [#allocation10]  }
  0x87   : > { %453 = vmatpush1.bf16.msra.mxu0 %v2024_v13  ;;  %1806 = vmatpush3.bf16.msra.mxu1 %v2025_v14  ;;  %p2214_p3 = pnand %p2213_p10, %p2719_p13  ;;  %s2216_s8 = sshll.u32 %s2296_s14, 4  ;;  %s2217_s8 = int_to_ptr.vmem [resolvable:$false] %s2216_s8 }
  0x88   : > { %1807 = vmatprep.subr.bf16.mxu1 %v2293_v0  ;;  %454 = vmatprep.subr.bf16.mxu0 %v2026_v15  ;;  %s2218_s28 = scalar_lea.vmem %s2217_s8, 256  ;;  %p2219_p9 = scmp.lt.s32.totalorder %s2655_s2, %s2217_s8 }
  0x89   : > { %p2215_p7 = pneg %p2214_p3  ;;  %p2220_p2 = scmp.lt.s32.totalorder %s2218_s28, %s2212_s13 }
  0x8b   : > { %455 = vmatpush1.bf16.msra.mxu0 %v2028_v16  ;;  %1808 = vmatpush3.bf16.msra.mxu1 %v2029_v17  ;;  %p2221_p5 = por %p2220_p2, %p2219_p9 }
  0x8c   : > { %1809 = vmatprep.subr.bf16.mxu1 %v2293_v0  ;;  %456 = vmatprep.subr.bf16.mxu0 %v2030_v18  ;;  %v2042_v18 = vld [vmem:[#allocation9 + $0xc] ss:$40 sps:$4 sm:$0xff]  }
  0x8d   : > { %p2222_p1 = pnand %p2221_p5, %p2215_p7 }
  0x8f   : > { %457 = vmatpush1.bf16.msra.mxu0 %v2032_v19  ;;  %1810 = vmatpush3.bf16.msra.mxu1 %v2033_v20  ;;  %v2043_v20 = vld [vmem:[#allocation9 + $0x5c] ss:$40 sps:$4 sm:$0xff]  }
  0x90   : > { %458 = vmatprep.subr.bf16.mxu0 %v2034_v21  ;;  %1811 = vmatprep.subr.bf16.mxu1 %v2293_v0  ;;  %v2044_v21 = vld [vmem:[#allocation9 + $0xac] ss:$40 sps:$4 sm:$0xff]  }
  0x93   : > { %459 = vmatpush1.bf16.msra.mxu0 %v2036_v22  ;;  %1812 = vmatpush3.bf16.msra.mxu1 %v2037_v23  ;;  %v2045_v22 = vld [vmem:[#allocation9 + $0xfc] ss:$40 sps:$4 sm:$0xff]   ;;  %v2046_v23 = vld [vmem:[#allocation9 + $0x14c] ss:$40 sps:$4 sm:$0xff]  }
  0x94   : > { %460 = vmatprep.subr.bf16.mxu0 %v2038_v24  ;;  %1813 = vmatprep.subr.bf16.mxu1 %v2293_v0  ;;  %v2047_v24 = vld [vmem:[#allocation9 + $0x19c] ss:$40 sps:$4 sm:$0xff]  }
  0x97   : > { %461 = vmatpush1.bf16.msra.mxu0 %v2040_v25  ;;  %1814 = vmatpush3.bf16.msra.mxu1 %v2041_v26  ;;  %v2048_v25 = vld [vmem:[#allocation9 + $0x1ec] ss:$40 sps:$4 sm:$0xff]   ;;  %v2049_v26 = vld [vmem:[#allocation9 + $0x23c] ss:$40 sps:$4 sm:$0xff]  }
  0x98   : > { %1819 = vmatprep.subr.bf16.mxu0 %v2293_v0  ;;  %1851 = vmatprep.subr.bf16.mxu1 %v2293_v0 }
 0x106   : > { %v271_v28 = vpop.xlane.xlu0 %270 }
 0x107   : > { %v273_v29 = vmul.f32 0.0078125, %v271_v28  ;;  %v782_v28 = vld [vmem:[%s230_s12] sm:$0xff] }
 0x108   : > { %783 = vadd.xlane.f32.xlu0 %v782_v28 }
 0x109   : > { %v278_v31 = vmul.f32 %v273_v29, %v273_v29  ;;  %v281_v36 = vsub.f32 %v2509_v1, %v273_v29  ;;  %v786_v29 = vmul.f32 %v782_v28, %v782_v28 }
 0x10a   : > { %v276_v30 = vpop.xlane.xlu0 %275 }
 0x10b   : > { %v277_v32 = vmul.f32 0.0078125, %v276_v30 }
 0x10d   : > { %v279_v33 = vsub.f32 %v277_v32, %v278_v31 }
 0x10f   : > { %v280_v34 = vmax.f32 %v279_v33, 0.0 }
 0x111   : > { %v282_v35 = vadd.f32 1e-05, %v280_v34 }
 0x113   : > { %2106 = vrsqrt.f32 %v282_v35  ;;  %v2050_v35 = vld [vmem:[#allocation9 + $0x14] ss:$40 sps:$4 sm:$0xff]  }
 0x11d   : > { %v2107_v37 = vpop.eup %2106 }
 0x11e   : > { %v284_v38 = vmul.f32 %v2107_v37, %v281_v36  ;;  %v2052_v36 = vld [vmem:[#allocation9 + $0x18] ss:$40 sps:$4 sm:$0xff]  }
 0x120   : > { %v317_v39 = vpack.c.bf16 %v284_v38, %v284_v38 }
 0x122   : > { %479 = vmatmul.mubr.bf16.vlgmr.msra.gmra.mrb[0].mxu0 %v317_v39  ;;  %1816 = vmatmul.mubr.bf16.vlgmr.msra.gmra.mrb[0].mxu1 %v317_v39  ;;  %v2055_v39 = vld [vmem:[#allocation9 + $0x68] ss:$40 sps:$4 sm:$0xff]  }
 0x123   : > { %1821 = vmatprep.mubr.msk.bf16.mxu0 %vm2295_vm0, %v2293_v0  ;;  %1867 = vmatprep.mubr.msk.bf16.mxu1 %vm2295_vm0, %v2293_v0 }
 0x195   : > { %v784_v37 = vpop.xlane.xlu0 %783 }
 0x196   : > { %v785_v40 = vmul.f32 0.0078125, %v784_v37 }
 0x1f5   : > { %v480_v48 = vpop.f32.mrb[0].mxu0  ;;  %v521_v49 = vpop.f32.mrb[0].mxu1 }
 0x1f6   : > { %v482_v51 = vpop.f32.mrb[1].mxu0  ;;  %v1817_v52 = vpop.f32.mrb[1].mxu1  ;;  %v549_v60 = vadd.f32 %v548_v50, %v521_v49  ;;  %v535_v61 = vadd.f32 %v534_v56, %v480_v48  ;;  %v2058_v48 = vld [vmem:[#allocation9 + $0xb8] ss:$40 sps:$4 sm:$0xff]  }
 0x1f7   : > { %v542_v53 = vadd.f32 %v541_v46, %v482_v51  ;;  %v484_v54 = vpop.f32.mrb[2].mxu0  ;;  %v524_v55 = vpop.f32.mrb[2].mxu1  ;;  %v790_v46 = vmul.f32 %v785_v40, %v785_v40  ;;  %v2071_v50 = vld [vmem:[#allocation9 + $0x10] ss:$40 sps:$4 sm:$0xff]   ;;  %v2056_v52 = vld [vmem:[#allocation9 + $0xb4] ss:$40 sps:$4 sm:$0xff]  }
 0x1f8   : > { %v485_v57 = vpop.f32.mrb[3].mxu0  ;;  %v1818_v58 = vpop.f32.mrb[3].mxu1  ;;  %v550_v62 = vpack.c.bf16 %v549_v60, %v549_v60  ;;  %v536_v63 = vpack.c.bf16 %v535_v61, %v535_v61  ;;  %1852 = vmatpush3.bf16.msra.mxu1 %v2071_v50  ;;  %v2059_v55 = vld [vmem:[#allocation9 + $0x104] ss:$40 sps:$4 sm:$0xff]   ;;  %v2064_v56 = vld [vmem:[#allocation9 + $0x158] ss:$40 sps:$4 sm:$0xff]   ;;  %v793_v61 = vsub.f32 %v782_v28, %v785_v40 }
 0x1f9   : > { %v543_v59 = vpack.c.bf16 %v542_v53, %v542_v53  ;;  %v2061_v53 = vld [vmem:[#allocation9 + $0x108] ss:$40 sps:$4 sm:$0xff]   ;;  %1853 = vmatprep.subr.bf16.mxu1 %v2293_v0  ;;  %v2062_v57 = vld [vmem:[#allocation9 + $0x154] ss:$40 sps:$4 sm:$0xff]   ;;  %v2070_v60 = vld [vmem:[#allocation9 + $0x1f8] ss:$40 sps:$4 sm:$0xff]  }
 0x1fa   : > { %v615_v2 = vsel %vm613_vm1, %v550_v62, 0  ;;  %v2067_v58 = vld [vmem:[#allocation9 + $0x1a8] ss:$40 sps:$4 sm:$0xff]  }
 0x1fb   : > { %1820 = vmatpush3.bf16.xpose.msra.mxu0 %v543_v59  ;;  %v2065_v59 = vld [vmem:[#allocation9 + $0x1a4] ss:$40 sps:$4 sm:$0xff]  }
 0x1fc   : > { %1825 = vmatprep.subr.bf16.mxu0 %v2293_v0 }
 0x202   : > { %1822 = vmatmul.mubr.bf16.vlgmr.msra.gmra.mrb[4].mxu0 %v536_v63  ;;  %v2068_v63 = vld [vmem:[#allocation9 + $0x1f4] ss:$40 sps:$4 sm:$0xff]  }
 0x203   : > { %1826 = vmatpush3.bf16.msra.mxu0 %v615_v2  ;;  %1827 = vmatprep.mubr.msk.bf16.mxu0 %vm2295_vm0, %v2293_v0  ;;  %v2074_v2 = vld [vmem:[#allocation9 + $0x248] ss:$40 sps:$4 sm:$0xff]  }
 0x204   : > { %1831 = vmatprep.subr.bf16.mxu0 %v2293_v0 }
 0x2d5   : > { %v585_v4 = vpop.f32.mrb[4].mxu0 }
 0x2d6   : > { %v596_v5 = vsel %vm595_vm2, %v585_v4, -1e+09  ;;  %v1823_v6 = vpop.f32.mrb[5].mxu0  ;;  %v2072_v4 = vld [vmem:[#allocation9 + $0x244] ss:$40 sps:$4 sm:$0xff]  }
 0x2d7   : > { %v588_v7 = vpop.f32.mrb[6].mxu0  ;;  %v598_v8 = vsel %vm597_vm3, %v596_v5, -inf  ;;  %v764_v6 = vsub.s32 3, %v2531_v41 }
 0x2d8   : > { %599 = vmax.xlane.f32.xlu1 %v598_v8  ;;  %v1824_v9 = vpop.f32.mrb[7].mxu0 }
 0x2d9   : > { %v765_v7 = vrot.slane %v2536_v43, %v764_v6 }
 0x365   : > { %v600_v10 = vpop.xlane.xlu1 %599 }
 0x366   : > { %v601_v11 = vsub.f32 %v596_v5, %v600_v10 }
 0x368   : > { %v602_v12 = vmul.f32 1.442695, %v601_v11 }
 0x36a   : > { %2108 = vpow2.f32 %v602_v12 }
 0x374   : > { %v2109_v13 = vpop.eup %2108 }
 0x375   : > { %v604_v14 = vsel %vm597_vm3, %v2109_v13, 0.0 }
 0x376   : > { %605 = vadd.xlane.f32.xlu1 %v604_v14 }
 0x37a   : > { %787 = vadd.xlane.f32.xlu1 %v786_v29 }
 0x403   : > { %v606_v15 = vpop.xlane.xlu1 %605 }
 0x404   : > { %2110 = vrcp.f32 %v606_v15  ;;  %v2076_v15 = vld [vmem:[#allocation9 + $0xb0] ss:$40 sps:$4 sm:$0xff]  }
 0x407   : > { %v788_v38 = vpop.xlane.xlu1 %787 }
 0x408   : > { %v789_v42 = vmul.f32 0.0078125, %v788_v38 }
 0x40a   : > { %v791_v49 = vsub.f32 %v789_v42, %v790_v46  ;;  %v1058_v42 = vsub.s32 6, %v2531_v41  ;;  %v904_v46 = vsub.s32 4, %v2531_v41 }
 0x40c   : > { %v792_v51 = vmax.f32 %v791_v49, 0.0  ;;  %v905_v49 = vrot.slane %v2536_v43, %v904_v46 }
 0x40e   : > { %v2111_v16 = vpop.eup %2110  ;;  %v794_v54 = vadd.f32 1e-05, %v792_v51 }
 0x40f   : > { %v608_v17 = vmul.f32 %v2111_v16, %v2109_v13  ;;  %v2077_v16 = vld [vmem:[#allocation9 + $0x100] ss:$40 sps:$4 sm:$0xff]  }
 0x410   : > { %2112 = vrsqrt.f32 %v794_v54 }
 0x411   : > { %v609_v19 = vpack.c.bf16 %v608_v17, %v608_v17  ;;  %v2078_v17 = vld [vmem:[#allocation9 + $0x150] ss:$40 sps:$4 sm:$0xff]  }
 0x413   : > { %1828 = vmatmul.mubr.msk.bf16.vlgmr.msra.gmra.mrb[8].mxu0 %vm597_vm3, %v609_v19  ;;  %v2081_v19 = vld [vmem:[#allocation9 + $0x240] ss:$40 sps:$4 sm:$0xff]  }
 0x414   : > { %1832 = vmatpush3.bf16.msra.mxu0 %v2042_v18  ;;  %1847 = vmatprep.mubr.msk.bf16.mxu0 %vm2295_vm0, %v2293_v0  ;;  %v2079_v18 = vld [vmem:[#allocation9 + $0x1a0] ss:$40 sps:$4 sm:$0xff]  }
 0x415   : > { %1833 = vmatprep.subr.bf16.mxu0 %v2293_v0 }
 0x418   : > { %1834 = vmatpush3.bf16.msra.mxu0 %v2043_v20 }
 0x419   : > { %1835 = vmatprep.subr.bf16.mxu0 %v2293_v0 }
 0x41a   : > { %v2113_v62 = vpop.eup %2112 }
 0x41b   : > { %v796_v3 = vmul.f32 %v2113_v62, %v793_v61 }
 0x41c   : > { %1836 = vmatpush3.bf16.msra.mxu0 %v2044_v21 }
 0x41d   : > { %1837 = vmatprep.subr.bf16.mxu0 %v2293_v0  ;;  %v924_v5 = vpack.c.bf16 %v796_v3, %v796_v3 }
 0x420   : > { %1838 = vmatpush3.bf16.msra.mxu0 %v2045_v22 }
 0x421   : > { %1839 = vmatprep.subr.bf16.mxu0 %v2293_v0 }
 0x424   : > { %1840 = vmatpush3.bf16.msra.mxu0 %v2046_v23 }
 0x425   : > { %1841 = vmatprep.subr.bf16.mxu0 %v2293_v0 }
 0x428   : > { %1842 = vmatpush3.bf16.msra.mxu0 %v2047_v24 }
 0x429   : > { %1843 = vmatprep.subr.bf16.mxu0 %v2293_v0 }
 0x42c   : > { %1844 = vmatpush3.bf16.msra.mxu0 %v2048_v25 }
 0x42d   : > { %1845 = vmatprep.subr.bf16.mxu0 %v2293_v0 }
 0x430   : > { %1846 = vmatpush3.bf16.msra.mxu0 %v2049_v26 }
 0x431   : > { %1005 = vmatprep.subr.bf16.mxu0 %v2052_v36 }
 0x4e6   : > { %v651_v30 = vpop.f32.mrb[8].mxu0 }
 0x4e7   : > { %v673_v31 = vpack.c.bf16 %v651_v30, %v651_v30  ;;  %v1829_v32 = vpop.f32.mrb[9].mxu0 }
 0x4e8   : > { %v654_v33 = vpop.f32.mrb[10].mxu0 }
 0x4e9   : > { %v1830_v34 = vpop.f32.mrb[11].mxu0  ;;  %1848 = vmatmul.mubr.bf16.vlgmr.msra.gmra.mrb[12].mxu0 %v673_v31  ;;  %v1051_v33 = vsub.s32 5, %v2531_v41 }
 0x4ea   : > { %1037 = vmatprep.mubr.bf16.mxu0 %v2294_v27  ;;  %1006 = vmatpush1.bf16.msra.mxu0 %v2050_v35  ;;  %v2075_v27 = vld [vmem:[#allocation9 + $0x60] ss:$40 sps:$4 sm:$0xff]  }
 0x4eb   : > { %1007 = vmatprep.subr.bf16.mxu0 %v2055_v39  ;;  %1854 = vmatpush3.bf16.msra.mxu1 %v2075_v27  ;;  %v1052_v34 = vrot.slane %v2536_v43, %v1051_v33 }
 0x4ec   : > { %1855 = vmatprep.subr.bf16.mxu1 %v2293_v0 }
 0x4ee   : > { %1008 = vmatpush1.bf16.msra.mxu0 %v2053_v45  ;;  %v1059_v45 = vrot.slane %v2536_v43, %v1058_v42 }
 0x4ef   : > { %1009 = vmatprep.subr.bf16.mxu0 %v2058_v48  ;;  %1856 = vmatpush3.bf16.msra.mxu1 %v2076_v15  ;;  %v2087_v15 = vld [vmem:[#allocation9 + $0x1ac] ss:$40 sps:$4 sm:$0xff]  }
 0x4f0   : > { %1857 = vmatprep.subr.bf16.mxu1 %v2293_v0 }
 0x4f2   : > { %1010 = vmatpush1.bf16.msra.mxu0 %v2056_v52 }
 0x4f3   : > { %1011 = vmatprep.subr.bf16.mxu0 %v2061_v53  ;;  %1858 = vmatpush3.bf16.msra.mxu1 %v2077_v16  ;;  %v2088_v16 = vld [vmem:[#allocation9 + $0x1fc] ss:$40 sps:$4 sm:$0xff]  }
 0x4f4   : > { %1859 = vmatprep.subr.bf16.mxu1 %v2293_v0 }
 0x4f6   : > { %1012 = vmatpush1.bf16.msra.mxu0 %v2059_v55 }
 0x4f7   : > { %1013 = vmatprep.subr.bf16.mxu0 %v2064_v56  ;;  %1860 = vmatpush3.bf16.msra.mxu1 %v2078_v17  ;;  %v2089_v17 = vld [vmem:[#allocation9 + $0x24c] ss:$40 sps:$4 sm:$0xff]  }
 0x4f8   : > { %1861 = vmatprep.subr.bf16.mxu1 %v2293_v0 }
 0x4fa   : > { %1014 = vmatpush1.bf16.msra.mxu0 %v2062_v57 }
 0x4fb   : > { %1015 = vmatprep.subr.bf16.mxu0 %v2067_v58  ;;  %1862 = vmatpush3.bf16.msra.mxu1 %v2079_v18 }
 0x4fc   : > { %1863 = vmatprep.subr.bf16.mxu1 %v2293_v0 }
 0x4fe   : > { %1016 = vmatpush1.bf16.msra.mxu0 %v2065_v59 }
 0x4ff   : > { %1017 = vmatprep.subr.bf16.mxu0 %v2070_v60 }
 0x502   : > { %1018 = vmatpush1.bf16.msra.mxu0 %v2068_v63 }
 0x503   : > { %1019 = vmatprep.subr.bf16.mxu0 %v2074_v2 }
 0x506   : > { %1020 = vmatpush1.bf16.msra.mxu0 %v2072_v4 }
 0x507   : > { %1903 = vmatprep.subr.bf16.mxu0 %v2293_v0 }
 0x509   : > { %1038 = vmatmul.mubr.bf16.vlgmr.msra.gmra.mrb[16].mxu0 %v924_v5 }
 0x50a   : > { %1919 = vmatprep.mubr.msk.bf16.mxu0 %vm2295_vm0, %v2293_v0 }
 0x5bc   : > { %v756_v8 = vpop.f32.mrb[12].mxu0 }
 0x5bd   : > { %v766_v9 = vadd.f32 %v765_v7, %v756_v8  ;;  %v1849_v10 = vpop.f32.mrb[13].mxu0  ;;  %v2082_v8 = vld [vmem:[#allocation9 + $0x1c] ss:$40 sps:$4 sm:$0xff]  }
 0x5be   : > { %v759_v11 = vpop.f32.mrb[14].mxu0  ;;  %v2083_v10 = vld [vmem:[#allocation9 + $0x6c] ss:$40 sps:$4 sm:$0xff]  }
 0x5bf   : > { %v2577_v12 = vadd.f32 %v766_v9, %v2509_v1  ;;  %v1850_v13 = vpop.f32.mrb[15].mxu0  ;;  %v2080_v1 = vld [vmem:[#allocation9 + $0x1f0] ss:$40 sps:$4 sm:$0xff]   ;;  %v2084_v11 = vld [vmem:[#allocation9 + $0xbc] ss:$40 sps:$4 sm:$0xff]  }
 0x5c0   : > { %1864 = vmatpush3.bf16.msra.mxu1 %v2080_v1  ;;  %v2085_v13 = vld [vmem:[#allocation9 + $0x10c] ss:$40 sps:$4 sm:$0xff]  }
 0x5c1   : > { %768 = vadd.xlane.f32.xlu0 %v2577_v12  ;;  %v771_v14 = vmul.f32 %v2577_v12, %v2577_v12  ;;  %1865 = vmatprep.subr.bf16.mxu1 %v2293_v0 }
 0x5c3   : > { %772 = vadd.xlane.f32.xlu1 %v771_v14  ;;  %v2086_v14 = vld [vmem:[#allocation9 + $0x15c] ss:$40 sps:$4 sm:$0xff]  }
 0x5c4   : > { %1866 = vmatpush3.bf16.msra.mxu1 %v2081_v19 }
 0x5c5   : > { %1871 = vmatprep.subr.bf16.mxu1 %v2293_v0 }
 0x5dc   : > { %v1039_v20 = vpop.f32.mrb[16].mxu0 }
 0x5dd   : > { %v1041_v21 = vpop.f32.mrb[17].mxu0  ;;  %v1053_v35 = vadd.f32 %v1052_v34, %v1039_v20  ;;  %v2092_v34 = vld [vmem:[#allocation9 + $0xc0] ss:$40 sps:$4 sm:$0xff]  }
 0x5de   : > { %v1043_v22 = vpop.f32.mrb[18].mxu0  ;;  %v1060_v48 = vadd.f32 %v1059_v45, %v1041_v21 }
 0x5df   : > { %v1044_v23 = vpop.f32.mrb[19].mxu0  ;;  %v1054_v39 = vpack.c.bf16 %v1053_v35, %v1053_v35  ;;  %v2090_v22 = vld [vmem:[#allocation9 + $0x20] ss:$40 sps:$4 sm:$0xff]   ;;  %v2093_v35 = vld [vmem:[#allocation9 + $0x110] ss:$40 sps:$4 sm:$0xff]  }
 0x5e0   : > { %v1061_v51 = vpack.c.bf16 %v1060_v48, %v1060_v48  ;;  %1904 = vmatpush3.bf16.msra.mxu0 %v2090_v22  ;;  %v2091_v23 = vld [vmem:[#allocation9 + $0x70] ss:$40 sps:$4 sm:$0xff]  }
 0x5e1   : > { %1905 = vmatprep.subr.bf16.mxu0 %v2293_v0 }
 0x5e2   : > { %v1118_v56 = vsel %vm613_vm1, %v1061_v51, 0 }
 0x5e4   : > { %1906 = vmatpush3.bf16.msra.mxu0 %v2091_v23 }
 0x5e5   : > { %1907 = vmatprep.subr.bf16.mxu0 %v2293_v0 }
 0x5e8   : > { %1908 = vmatpush3.bf16.msra.mxu0 %v2092_v34 }
 0x5e9   : > { %1909 = vmatprep.subr.bf16.mxu0 %v2293_v0 }
 0x5ec   : > { %1910 = vmatpush3.bf16.msra.mxu0 %v2093_v35 }
 0x5ed   : > { %1911 = vmatprep.subr.bf16.mxu0 %v2293_v0 }
 0x64e   : > { %v769_v24 = vpop.xlane.xlu0 %768 }
 0x64f   : > { %v770_v25 = vmul.f32 0.0078125, %v769_v24  ;;  %v1267_v24 = vsub.s32 7, %v2531_v41 }
 0x650   : > { %v773_v26 = vpop.xlane.xlu1 %772 }
 0x651   : > { %v775_v28 = vmul.f32 %v770_v25, %v770_v25  ;;  %v774_v29 = vmul.f32 0.0078125, %v773_v26  ;;  %v778_v36 = vsub.f32 %v2577_v12, %v770_v25  ;;  %v1268_v25 = vrot.slane %v2536_v43, %v1267_v24  ;;  %v2094_v43 = vld [vmem:[#allocation9 + $0x160] ss:$40 sps:$4 sm:$0xff]  }
 0x652   : > { %1912 = vmatpush3.bf16.msra.mxu0 %v2094_v43 }
 0x653   : > { %v776_v30 = vsub.f32 %v774_v29, %v775_v28  ;;  %1913 = vmatprep.subr.bf16.mxu0 %v2293_v0 }
 0x655   : > { %v777_v31 = vmax.f32 %v776_v30, 0.0 }
 0x657   : > { %v779_v32 = vadd.f32 1e-05, %v777_v31 }
 0x659   : > { %2114 = vrsqrt.f32 %v779_v32 }
 0x663   : > { %v2115_v37 = vpop.eup %2114 }
 0x664   : > { %v781_v38 = vmul.f32 %v2115_v37, %v778_v36  ;;  %v2095_v36 = vld [vmem:[#allocation9 + $0x1b0] ss:$40 sps:$4 sm:$0xff]  }
 0x665   : > { %1914 = vmatpush3.bf16.msra.mxu0 %v2095_v36  ;;  %v2097_v37 = vld [vmem:[#allocation9 + $0x250] ss:$40 sps:$4 sm:$0xff]  }
 0x666   : > { %v813_v40 = vpack.c.bf16 %v781_v38, %v781_v38  ;;  %1915 = vmatprep.subr.bf16.mxu0 %v2293_v0 }
 0x668   : > { %1868 = vmatmul.mubr.bf16.vlgmr.msra.gmra.mrb[4].mxu1 %v813_v40 }
 0x669   : > { %1872 = vmatpush3.bf16.xpose.msra.mxu1 %v1054_v39  ;;  %1873 = vmatprep.mubr.msk.bf16.mxu1 %vm2295_vm0, %v2293_v0 }
 0x66a   : > { %1877 = vmatprep.subr.bf16.mxu1 %v2293_v0 }
 0x73b   : > { %v896_v50 = vpop.f32.mrb[4].mxu1 }
 0x73c   : > { %v906_v52 = vadd.f32 %v905_v49, %v896_v50  ;;  %v1869_v27 = vpop.f32.mrb[5].mxu1 }
 0x73d   : > { %v899_v53 = vpop.f32.mrb[6].mxu1 }
 0x73e   : > { %v907_v54 = vpack.c.bf16 %v906_v52, %v906_v52  ;;  %v1870_v55 = vpop.f32.mrb[7].mxu1  ;;  %v2098_v53 = vld [vmem:[#allocation9 + $0x24] ss:$40 sps:$4 sm:$0xff]  }
 0x73f   : > { %v267_v55 = vld [vmem:[%s2700_s3 + $0x4] sm:$0x1] }
 0x740   : > { %1874 = vmatmul.mubr.bf16.vlgmr.msra.gmra.mrb[8].mxu1 %v907_v54  ;;  %v2099_v54 = vld [vmem:[#allocation9 + $0x74] ss:$40 sps:$4 sm:$0xff]  }
 0x741   : > { %1878 = vmatpush3.bf16.msra.mxu1 %v1118_v56  ;;  %1879 = vmatprep.mubr.msk.bf16.mxu1 %vm2295_vm0, %v2293_v0  ;;  %v269_v56 = vunpack.c.l.bf16 %v267_v55 }
 0x742   : > { %1883 = vmatprep.subr.bf16.mxu1 %v2293_v0 }
 0x813   : > { %v1096_v57 = vpop.f32.mrb[8].mxu1 }
 0x814   : > { %v1875_v58 = vpop.f32.mrb[9].mxu1  ;;  %v1102_v59 = vsel %vm597_vm3, %v1096_v57, -inf }
 0x815   : > { %1103 = vmax.xlane.f32.xlu0 %v1102_v59  ;;  %v1099_v60 = vpop.f32.mrb[10].mxu1 }
 0x816   : > { %v1876_v61 = vpop.f32.mrb[11].mxu1 }
 0x8a2   : > { %v1104_v62 = vpop.xlane.xlu0 %1103 }
 0x8a3   : > { %v1105_v63 = vsub.f32 %v1096_v57, %v1104_v62  ;;  %v1393_v57 = vrot.slane %v269_v56, %v533_v47  ;;  %v2103_v47 = vld [vmem:[#allocation9 + $0x1b4] ss:$40 sps:$4 sm:$0xff]  }
 0x8a5   : > { %v1106_v2 = vmul.f32 1.442695, %v1105_v63 }
 0x8a7   : > { %2116 = vpow2.f32 %v1106_v2 }
 0x8b1   : > { %v2117_v3 = vpop.eup %2116 }
 0x8b2   : > { %v1108_v4 = vsel %vm597_vm3, %v2117_v3, 0.0 }
 0x8b3   : > { %1109 = vadd.xlane.f32.xlu1 %v1108_v4  ;;  %v2101_v4 = vld [vmem:[#allocation9 + $0x114] ss:$40 sps:$4 sm:$0xff]  }
 0x940   : > { %v1110_v5 = vpop.xlane.xlu1 %1109 }
 0x941   : > { %2118 = vrcp.f32 %v1110_v5  ;;  %v2102_v5 = vld [vmem:[#allocation9 + $0x164] ss:$40 sps:$4 sm:$0xff]  }
 0x94b   : > { %v2119_v6 = vpop.eup %2118 }
 0x94c   : > { %v1112_v7 = vmul.f32 %v2119_v6, %v2117_v3  ;;  %v2100_v3 = vld [vmem:[#allocation9 + $0xc4] ss:$40 sps:$4 sm:$0xff]  }
 0x94d   : > { %v2104_v6 = vld [vmem:[#allocation9 + $0x204] ss:$40 sps:$4 sm:$0xff]  }
 0x94e   : > { %v1113_v9 = vpack.c.bf16 %v1112_v7, %v1112_v7  ;;  %v2105_v7 = vld [vmem:[#allocation9 + $0x254] ss:$40 sps:$4 sm:$0xff]  }
 0x950   : > { %1880 = vmatmul.mubr.msk.bf16.vlgmr.msra.gmra.mrb[12].mxu1 %vm597_vm3, %v1113_v9 }
 0x951   : > { %1884 = vmatpush3.bf16.msra.mxu1 %v2082_v8  ;;  %1899 = vmatprep.mubr.msk.bf16.mxu1 %vm2295_vm0, %v2293_v0 }
 0x952   : > { %1885 = vmatprep.subr.bf16.mxu1 %v2293_v0 }
 0x955   : > { %1886 = vmatpush3.bf16.msra.mxu1 %v2083_v10 }
 0x956   : > { %1887 = vmatprep.subr.bf16.mxu1 %v2293_v0 }
 0x959   : > { %1888 = vmatpush3.bf16.msra.mxu1 %v2084_v11 }
 0x95a   : > { %1889 = vmatprep.subr.bf16.mxu1 %v2293_v0 }
 0x95d   : > { %1890 = vmatpush3.bf16.msra.mxu1 %v2085_v13 }
 0x95e   : > { %1891 = vmatprep.subr.bf16.mxu1 %v2293_v0 }
 0x961   : > { %1892 = vmatpush3.bf16.msra.mxu1 %v2086_v14 }
 0x962   : > { %1893 = vmatprep.subr.bf16.mxu1 %v2293_v0 }
 0x965   : > { %1894 = vmatpush3.bf16.msra.mxu1 %v2087_v15 }
 0x966   : > { %1895 = vmatprep.subr.bf16.mxu1 %v2293_v0 }
 0x969   : > { %1896 = vmatpush3.bf16.msra.mxu1 %v2088_v16 }
 0x96a   : > { %1897 = vmatprep.subr.bf16.mxu1 %v2293_v0 }
 0x96d   : > { %1898 = vmatpush3.bf16.msra.mxu1 %v2089_v17 }
 0x96e   : > { %1923 = vmatprep.subr.bf16.mxu1 %v2293_v0 }
 0xa23   : > { %v1154_v18 = vpop.f32.mrb[12].mxu1 }
 0xa24   : > { %v1176_v1 = vpack.c.bf16 %v1154_v18, %v1154_v18  ;;  %v1881_v19 = vpop.f32.mrb[13].mxu1 }
 0xa25   : > { %v1157_v20 = vpop.f32.mrb[14].mxu1 }
 0xa26   : > { %v1882_v21 = vpop.f32.mrb[15].mxu1  ;;  %1900 = vmatmul.mubr.bf16.vlgmr.msra.gmra.mrb[16].mxu1 %v1176_v1 }
 0xa27   : > { %1939 = vmatprep.mubr.msk.bf16.mxu1 %vm2295_vm0, %v2293_v0  ;;  %1924 = vmatpush3.bf16.msra.mxu1 %v2098_v53 }
 0xa28   : > { %1925 = vmatprep.subr.bf16.mxu1 %v2293_v0 }
 0xa2b   : > { %1926 = vmatpush3.bf16.msra.mxu1 %v2099_v54 }
 0xa2c   : > { %1927 = vmatprep.subr.bf16.mxu1 %v2293_v0 }
 0xa2f   : > { %1928 = vmatpush3.bf16.msra.mxu1 %v2100_v3 }
 0xa30   : > { %1929 = vmatprep.subr.bf16.mxu1 %v2293_v0 }
 0xa33   : > { %1930 = vmatpush3.bf16.msra.mxu1 %v2101_v4 }
 0xa34   : > { %1931 = vmatprep.subr.bf16.mxu1 %v2293_v0 }
 0xa37   : > { %1932 = vmatpush3.bf16.msra.mxu1 %v2102_v5 }
 0xa38   : > { %1933 = vmatprep.subr.bf16.mxu1 %v2293_v0 }
 0xa3b   : > { %1934 = vmatpush3.bf16.msra.mxu1 %v2103_v47 }
 0xa3c   : > { %1935 = vmatprep.subr.bf16.mxu1 %v2293_v0 }
 0xa3f   : > { %1936 = vmatpush3.bf16.msra.mxu1 %v2104_v6 }
 0xa40   : > { %1937 = vmatprep.subr.bf16.mxu1 %v2293_v0 }
 0xa43   : > { %1938 = vmatpush3.bf16.msra.mxu1 %v2105_v7 }
 0xaf9   : > { %v1259_v26 = vpop.f32.mrb[16].mxu1 }
 0xafa   : > { %v1269_v28 = vadd.f32 %v1268_v25, %v1259_v26  ;;  %v1901_v29 = vpop.f32.mrb[17].mxu1 }
 0xafb   : > { %v1262_v30 = vpop.f32.mrb[18].mxu1 }
 0xafc   : > { %v2622_v31 = vadd.f32 %v1269_v28, %v2577_v12  ;;  %v1902_v32 = vpop.f32.mrb[19].mxu1  ;;  %v2096_v12 = vld [vmem:[#allocation9 + $0x200] ss:$40 sps:$4 sm:$0xff]  }
 0xafd   : > { %1916 = vmatpush3.bf16.msra.mxu0 %v2096_v12 }
 0xafe   : > { %1271 = vadd.xlane.f32.xlu0 %v2622_v31  ;;  %v1274_v33 = vmul.f32 %v2622_v31, %v2622_v31  ;;  %1917 = vmatprep.subr.bf16.mxu0 %v2293_v0  ;;  %v1518_v0 = vrot.slane %v269_v56, %v540_v44 }
 0xb00   : > { %1275 = vadd.xlane.f32.xlu1 %v1274_v33 }
 0xb01   : > { %1918 = vmatpush3.bf16.msra.mxu0 %v2097_v37 }
 0xb8b   : > { %v1272_v38 = vpop.xlane.xlu0 %1271 }
 0xb8c   : > { %v1273_v39 = vmul.f32 0.0078125, %v1272_v38 }
 0xb8d   : > { %v1276_v40 = vpop.xlane.xlu1 %1275 }
 0xb8e   : > { %v1278_v42 = vmul.f32 %v1273_v39, %v1273_v39  ;;  %v1277_v45 = vmul.f32 0.0078125, %v1276_v40  ;;  %v1281_v50 = vsub.f32 %v2622_v31, %v1273_v39 }
 0xb90   : > { %v1279_v46 = vsub.f32 %v1277_v45, %v1278_v42 }
 0xb92   : > { %v1280_v48 = vmax.f32 %v1279_v46, 0.0 }
 0xb94   : > { %v1282_v49 = vadd.f32 1e-05, %v1280_v48 }
 0xb96   : > { %2120 = vrsqrt.f32 %v1282_v49 }
 0xba0   : > { %v2121_v51 = vpop.eup %2120 }
 0xba1   : > { %v1284_v52 = vmul.f32 %v2121_v51, %v1281_v50 }
 0xba3   : > { %v1301_v27 = vpack.c.bf16 %v1284_v52, %v1284_v52 }
 0xba5   : > { %1920 = vmatmul.mubr.bf16.vlgmr.msra.gmra.mrb[20].mxu0 %v1301_v27 }
 0xc78   : > { %v1384_v58 = vpop.f32.mrb[20].mxu0 }
 0xc79   : > { %v1394_v59 = vadd.f32 %v1393_v57, %v1384_v58  ;;  %v1921_v60 = vpop.f32.mrb[21].mxu0 }
 0xc7a   : > { %v1387_v61 = vpop.f32.mrb[22].mxu0 }
 0xc7b   : > { %v1395_v62 = vmax.f32 %v1394_v59, 0.0  ;;  %v1922_v63 = vpop.f32.mrb[23].mxu0 }
 0xc7d   : > { %1396 = vadd.xlane.f32.xlu0 %v1395_v62  ;;  %v1399_v2 = vmul.f32 %v1395_v62, %v1395_v62 }
 0xc7f   : > { %1400 = vadd.xlane.f32.xlu1 %v1399_v2 }
 0xd0a   : > { %v1397_v8 = vpop.xlane.xlu0 %1396 }
 0xd0b   : > { %v1398_v9 = vmul.f32 0.0078125, %v1397_v8 }
 0xd0c   : > { %v1401_v10 = vpop.xlane.xlu1 %1400 }
 0xd0d   : > { %v1403_v11 = vmul.f32 %v1398_v9, %v1398_v9  ;;  %v1402_v13 = vmul.f32 0.0078125, %v1401_v10  ;;  %v1406_v17 = vsub.f32 %v1395_v62, %v1398_v9 }
 0xd0f   : > { %v1404_v14 = vsub.f32 %v1402_v13, %v1403_v11 }
 0xd11   : > { %v1405_v15 = vmax.f32 %v1404_v14, 0.0 }
 0xd13   : > { %v1407_v16 = vadd.f32 1e-05, %v1405_v15 }
 0xd15   : > { %2122 = vrsqrt.f32 %v1407_v16 }
 0xd1f   : > { %v2123_v18 = vpop.eup %2122 }
 0xd20   : > { %v1409_v1 = vmul.f32 %v2123_v18, %v1406_v17 }
 0xd22   : > { %v1426_v19 = vpack.c.bf16 %v1409_v1, %v1409_v1 }
 0xd24   : > { %1940 = vmatmul.mubr.bf16.vlgmr.msra.gmra.mrb[20].mxu1 %v1426_v19 }
 0xdf7   : > { %v1509_v20 = vpop.f32.mrb[20].mxu1 }
 0xdf8   : > { %v1519_v21 = vadd.f32 %v1518_v0, %v1509_v20  ;;  %v1941_v22 = vpop.f32.mrb[21].mxu1 }
 0xdf9   : > { %v1512_v23 = vpop.f32.mrb[22].mxu1 }
 0xdfa   : > { %v1520_v24 = vadd.f32 %v1519_v21, %v2622_v31  ;;  %v1942_v25 = vpop.f32.mrb[23].mxu1 }
 0xdfc   : > { %1521 = vst [vmem:[%s263_s10] sm:$0xff] %v1520_v24 }
 0xdfd   : > { %2225 = shalt.err (!%p2222_p1)
}
 0xdfe   : > { %s2226_s11 = scalar_lea.hbm %s2653_s29, 128  ;;  %s2230_s12 = scalar_lea.hbm %s2701_s4, 256 }
 0xdff   : > { %p2227_p6 = scmp.ne.s32.totalorder %s2653_s29, %s2226_s11  ;;  %p2231_p12 = scmp.lt.u32.totalorder %s2653_s29, %s2701_s4 }
 0xe00   : > { %p2232_p11 = scmp.lt.u32.totalorder %s2230_s12, %s2226_s11  ;;  %p2234_p10 = scmp.lt.u32.totalorder %s2226_s11, %s2653_s29 }
 0xe01   : > { %p2228_p8 = pnand %p2227_p6, %p2719_p13 }
 0xe02   : > { %p2233_p0 = por %p2232_p11, %p2231_p12 }
 0xe03   : > { %p2229_p4 = pneg %p2228_p8 }
 0xe04   : > { %p2235_p3 = por %p2234_p10, %p2233_p0 }
 0xe06   : > { %p2236_p7 = pnand %p2235_p3, %p2229_p4 }
 0xe08   : > { %2239 = shalt.err (!%p2236_p7)
}
 0xe09   : > { %1951 = dma.vmem_to_hbm [thread:$0]  (%p2719_p13), %s2655_s2, 128, %s2653_s29, %s1523_s19  }
 0xe0a PF: > { %s1548_s26 = sand.u32 1, %s2274_s15   ;;  %p2720_p9 = scmp.ne.s32.totalorder %s2708_s22, 0 }
 0xe0b   : > { %p2721_p2 = scmp.ge.s32.totalorder %s2286_s18, 2  ;;  %s1549_s5 = scalar_lea.sflag [#allocation6], %s1548_s26 }
 0xe0d   : > { %p1965_p5 = pnand %p2721_p2, %p2720_p9 }
 0xe0f   : > { %2269 = dma.done.wait (!%p1965_p5), %s1549_s5, 128  }
 0xe10   : > { %2271 = vsyncadd (!%p1965_p5), %s1549_s5, 4294967168  ;;  %p20_p1 = scmp.ge.s32.totalorder %s2378_s27, 4   ;;  %s2722_s15 = smov %s2278_s16 }
 0xe11   : > { %s2723_s16 = smov %s2282_s17  ;;  %s2724_s17 = smov %s2409_s24 }
 0xe12   : > { %s2725_s18 = smov %s2378_s27  ;;  %22 = sbr.rel (!%p20_p1) target bundleno = 9 (0x9), region = 98 }
 0xe19   :  { %1554 = vsyncpa [#allocation5], 1 }
 0xe1a   :  { %1556 = vsyncpa [#allocation5 + $0x1], 1 }
 0xe1b   :  { %1557 = vsyncpa [#allocation8], 1 }
 0xe1c   :  { %1559 = vsyncpa [#allocation8 + $0x1], 1 }
 0xe1d   :  { %1560 = vsyncpa [#allocation6], 1 }
 0xe1e   :  { %1562 = vsyncpa [#allocation6 + $0x1], 1 }

// kernel: tpu_custom_call.1
= control target key start
LH: loop header
LB: loop body
LE: loop exit
PB: predicated region body
PF: predicated region fallthrough
CT: control target
= control target key end

     0   :  { %s2697_s0 = inlined_call_operand.hbm [shape: f32[2,8,128], index: 0, kind: input, shape index: {}]   ;;  %s2698_s1 = inlined_call_operand.hbm [shape: f32[2,8,128], index: 1, kind: input, shape index: {}]   ;;  %s2699_s2 = inlined_call_operand.hbm [shape: bf16[128,1280], index: 2, kind: input, shape index: {}]   ;;  %s2700_s3 = inlined_call_operand.vmem [shape: bf16[10,128], index: 3, kind: input, shape index: {}]   ;;  %s2701_s4 = inlined_call_operand.hbm [shape: f32[2,8,128], index: 4, kind: output, shape index: {}]  }
   0x1   :  { %2706 = sst [smem:[#allocation15_spill]] %s2699_s2 }
   0x2   :  { %9 = vsyncpa [#allocation5], 0 }
   0x3   :  { %11 = vsyncpa [#allocation5 + $0x1], 0 }
   0x4   :  { %12 = vsyncpa [#allocation8], 0 }
   0x5   :  { %14 = vsyncpa [#allocation8 + $0x1], 0 }
   0x6   :  { %15 = vsyncpa [#allocation6], 0 }
   0x7   :  { %17 = vsyncpa [#allocation6 + $0x1], 0  ;;  %s2322_s15 = smov 0   ;;  %s2324_s16 = smov 0  }
   0x8   :  { %s2326_s17 = smov 0   ;;  %s2328_s18 = smov 0  }
   0x9 LB: > { %s2343_s19 = sadd.s32 4294967295, %s2286_s18   ;;  %s1638_s20 = sadd.s32 4294967294, %s2286_s18   ;;  %s2286_s18 = sphi %s2328_s18, %s2725_s18   ;;  %s2282_s17 = sphi %s2326_s17, %s2724_s17   ;;  %s2278_s16 = sphi %s2324_s16, %s2723_s16   ;;  %s2274_s15 = sphi %s2322_s15, %s2722_s15  }
   0xa   : > { %p43_p0 = scmp.ne.s32.totalorder %s2278_s16, %s2274_s15  ;;  %p2702_p1 = scmp.eq.s32.totalorder %s2343_s19, 0 }
   0xb   : > { %p141_p3 = scmp.eq.s32.totalorder %s1638_s20, 1  ;;  %p1639_p5 = scmp.ge.s32.totalorder %s2286_s18, 1 }
   0xc   : > { %p2352_p4 = por %p2702_p1, %p43_p0  ;;  %p148_p7 = scmp.lt.s32.totalorder %s2286_s18, 3 }
   0xd   : > { %p2357_p6 = por %p141_p3, %p43_p0  ;;  %s2288_s24 = smov [#allocation9]  }
   0xe   : > { %s2707_s21 = scalar_select %p2352_p4, 1, 0 }
   0xf   : > { %s2708_s22 = scalar_select %p2357_p6, 1, 0 }
  0x10   : > { %p2362_p8 = pnand %p1639_p5, %p148_p7  ;;  %s160_s25 = sshll.u32 %s2288_s24, 4  ;;  %s2366_s25 = int_to_ptr.vmem [resolvable:$true] %s160_s25 }
  0x11   : > { %s2378_s27 = sadd.s32 1, %s2286_s18   ;;  %s30_s28 = sadd.s32 1, %s2282_s17 }
  0x12   : > { %s2709_s23 = scalar_select %p2362_p8, 1, 0 }
  0x13   : > { %p1953_p9 = pneg %p2362_p8  ;;  %s27_s29 = ssub.s32 %s2286_s18, %s2378_s27 }
  0x14   : > { %s2711_s2 = sld [smem:[#allocation15_spill]] }
  0x15   : > { %p2373_p11 = pnand %p1953_p9, %p2702_p1 }
  0x17   : > { %p2126_p13 = pneg %p2373_p11 }
  0x1a   : > { %s2124_s6 = scalar_lea.hbm %s2711_s2, 10240 }
  0x1b   : > { %p2125_p12 = scmp.ne.s32.totalorder %s2711_s2, %s2124_s6  ;;  %p2131_p5 = scmp.lt.u32.totalorder %s2124_s6, %s2711_s2 }
  0x1d   : > { %p2127_p0 = pnand %p2126_p13, %p2125_p12 }
  0x1f   : > { %p2128_p3 = pneg %p2127_p0 }
  0x21   : > { %p2133_p7 = pnand %p2131_p5, %p2128_p3 }
  0x23   : > { %2136 = shalt.err (!%p2133_p7)
}
  0x24   : > { %s2137_s11 = scalar_lea.vmem %s2366_s25, 10240  ;;  %p2145_p2 = scmp.lt.s32.totalorder %s2366_s25, %s2366_s25 }
  0x25   : > { %p2138_p9 = scmp.ne.s32.totalorder %s2366_s25, %s2137_s11  ;;  %p2146_p6 = scmp.lt.s32.totalorder %s2137_s11, %s2137_s11 }
  0x27   : > { %p2140_p10 = pnand %p2138_p9, %p2126_p13  ;;  %p2147_p4 = por %p2146_p6, %p2145_p2 }
  0x29   : > { %p2141_p1 = pneg %p2140_p10 }
  0x2b   : > { %p2148_p8 = pnand %p2147_p4, %p2141_p1 }
  0x2d   : > { %2151 = shalt.err (!%p2148_p8)
}
  0x2e   : > { %s2289_s12 = smov 640   ;;  %s2290_s13 = smov 40  }
  0x2f   : > { %1956 = dma.hbm_to_vmem [thread:$0]  (!%p2373_p11), %s2711_s2, 10240, %s2366_s25, [#allocation8], %s2289_s12, %s2289_s12, %s2290_s13  }
  0x30   : > { %p28_p2 = scmp.eq.s32.totalorder %s27_s29, 0  ;;  %p37_p1 = scmp.ne.s32.totalorder %s2282_s17, %s2278_s16 }
  0x31   : > { %p38_p4 = scmp.eq.s32.totalorder %s2286_s18, 0  ;;  %p1969_p6 = scmp.lt.s32.totalorder %s2286_s18, 2 }
  0x32   : > { %s2409_s24 = scalar_select %p28_p2, %s2282_s17, %s30_s28  }
  0x33   : > { %p39_p8 = por %p38_p4, %p37_p1  ;;  %p2712_p10 = scmp.eq.s32.totalorder %s2343_s19, 1 }
  0x34   : > { %s177_s5 = sand.u32 1, %s2282_s17   ;;  %s1643_s6 = sshll.u32 %s2286_s18, 7 }
  0x35   : > { %p2413_p12 = por %p2712_p10, %p37_p1  ;;  %s2419_s7 = sshll.u32 %s177_s5, 3 }
  0x36   : > { %s2424_s25 = scalar_lea.hbm %s2697_s0, %s1643_s6  ;;  %s181_s28 = scalar_lea.vmem [#allocation4], %s2419_s7 }
  0x37   : > { %s2713_s30 = scalar_select %p2413_p12, 1, 0 }
  0x38   : > { %s188_s29 = sshll.u32 %s181_s28, 4  ;;  %p2427_p11 = pnand %p1969_p6, %p39_p8  ;;  %s2431_s29 = int_to_ptr.vmem [resolvable:$true] %s188_s29 }
  0x39   : > { %s2436_s12 = scalar_lea.hbm %s2698_s1, %s1643_s6  ;;  %s178_s13 = scalar_lea.sflag [#allocation5], %s177_s5 }
  0x3a   : > { %s2152_s14 = scalar_lea.hbm %s2424_s25, 128  ;;  %p2154_p0 = pneg %p2427_p11 }
  0x3b   : > { %p2153_p13 = scmp.ne.s32.totalorder %s2424_s25, %s2152_s14  ;;  %s2157_s8 = scalar_lea.hbm %s2697_s0, 256 }
  0x3c   : > { %p2158_p7 = scmp.lt.u32.totalorder %s2424_s25, %s2697_s0  ;;  %p2159_p9 = scmp.lt.u32.totalorder %s2157_s8, %s2152_s14 }
  0x3d   : > { %p2155_p3 = pnand %p2154_p0, %p2153_p13  ;;  %p2161_p1 = scmp.lt.u32.totalorder %s2152_s14, %s2424_s25 }
  0x3e   : > { %p2160_p2 = por %p2159_p9, %p2158_p7 }
  0x3f   : > { %p2156_p5 = pneg %p2155_p3 }
  0x40   : > { %p2162_p4 = por %p2161_p1, %p2160_p2 }
  0x42   : > { %p2163_p6 = pnand %p2162_p4, %p2156_p5 }
  0x44   : > { %2166 = shalt.err (!%p2163_p6)
}
  0x45   : > { %s2167_s5 = scalar_lea.vmem %s2431_s29, 128  ;;  %s2291_s6 = smov [#allocation4]  }
  0x46   : > { %p2168_p8 = scmp.ne.s32.totalorder %s2431_s29, %s2167_s5  ;;  %s2172_s10 = sshll.u32 %s2291_s6, 4  ;;  %s2173_s10 = int_to_ptr.vmem [resolvable:$false] %s2172_s10 }
  0x47   : > { %s2174_s2 = scalar_lea.vmem %s2173_s10, 256  ;;  %p2175_p3 = scmp.lt.s32.totalorder %s2431_s29, %s2173_s10 }
  0x48   : > { %p2170_p10 = pnand %p2168_p8, %p2154_p0  ;;  %p2176_p7 = scmp.lt.s32.totalorder %s2174_s2, %s2167_s5 }
  0x4a   : > { %p2171_p13 = pneg %p2170_p10  ;;  %p2177_p9 = por %p2176_p7, %p2175_p3 }
  0x4c   : > { %p2178_p2 = pnand %p2177_p9, %p2171_p13 }
  0x4e   : > { %2181 = shalt.err (!%p2178_p2)
}
  0x4f   : > { %1960 = dma.hbm_to_vmem [thread:$0]  (!%p2427_p11), %s2424_s25, 128, %s2431_s29, %s178_s13  }
  0x50   : > { %s195_s11 = sand.u32 1, %s2286_s18   ;;  %s199_s14 = scalar_lea.vmem [#allocation7], %s2419_s7 }
  0x51   : > { %s206_s20 = sshll.u32 %s199_s14, 4  ;;  %s196_s26 = scalar_lea.sflag [#allocation8], %s195_s11  ;;  %s207_s20 = int_to_ptr.vmem [resolvable:$true] %s206_s20 }
  0x52   : > { %s2182_s8 = scalar_lea.hbm %s2436_s12, 128  ;;  %s2187_s6 = scalar_lea.hbm %s2698_s1, 256 }
  0x53   : > { %p2183_p5 = scmp.ne.s32.totalorder %s2436_s12, %s2182_s8  ;;  %p2188_p6 = scmp.lt.u32.totalorder %s2436_s12, %s2698_s1 }
  0x54   : > { %p2189_p8 = scmp.lt.u32.totalorder %s2187_s6, %s2182_s8  ;;  %p2191_p13 = scmp.lt.u32.totalorder %s2182_s8, %s2436_s12 }
  0x55   : > { %p2185_p1 = pnand %p2183_p5, %p2154_p0 }
  0x56   : > { %p2190_p10 = por %p2189_p8, %p2188_p6 }
  0x57   : > { %p2186_p4 = pneg %p2185_p1 }
  0x58   : > { %p2192_p3 = por %p2191_p13, %p2190_p10 }
  0x5a   : > { %p2193_p7 = pnand %p2192_p3, %p2186_p4 }
  0x5c   : > { %2196 = shalt.err (!%p2193_p7)
}
  0x5d   : > { %s2197_s7 = scalar_lea.vmem %s207_s20, 128  ;;  %s2292_s25 = smov [#allocation7]  }
  0x5e   : > { %p2198_p9 = scmp.ne.s32.totalorder %s207_s20, %s2197_s7  ;;  %s2202_s29 = sshll.u32 %s2292_s25, 4  ;;  %s2203_s29 = int_to_ptr.vmem [resolvable:$false] %s2202_s29 }
  0x5f   : > { %s2204_s13 = scalar_lea.vmem %s2203_s29, 256  ;;  %p2205_p1 = scmp.lt.s32.totalorder %s207_s20, %s2203_s29 }
  0x60   : > { %p2200_p2 = pnand %p2198_p9, %p2154_p0  ;;  %p2206_p12 = scmp.lt.s32.totalorder %s2204_s13, %s2197_s7 }
  0x62   : > { %p2201_p5 = pneg %p2200_p2  ;;  %p2207_p6 = por %p2206_p12, %p2205_p1 }
  0x64   : > { %p2208_p8 = pnand %p2207_p6, %p2201_p5 }
  0x66   : > { %2211 = shalt.err (!%p2208_p8)
}
  0x67   : > { %1963 = dma.hbm_to_vmem [thread:$0]  (!%p2427_p11), %s2436_s12, 128, %s207_s20, %s196_s26  }
  0x68   : > { %p2715_p4 = scmp.ne.s32.totalorder %s2709_s23, 0 }
  0x69   : > { %s2487_s11 = sand.u32 (!%p2715_p4), 1, %s2278_s16   ;;  %p2716_p12 = scmp.ne.s32.totalorder (!%p2715_p4), %s2707_s21, 0 }
  0x6a   : > { %215 = sbr.rel (%p2715_p4) target bundleno = 3594 (0xe0a), region = 36  ;;  %s2490_s14 = sshll.u32 (!%p2715_p4), %s2487_s11, 3 }
  0x6b   : > { %s218_s8 = scalar_lea.sflag (!%p2715_p4), [#allocation5], %s2487_s11  ;;  %s221_s28 = scalar_lea.vmem (!%p2715_p4), [#allocation4], %s2490_s14 }
  0x71   : > { %2257 = dma.done.wait (%p2716_p12), %s218_s8, 128  }
  0x72   : > { %2259 = vsyncadd (%p2716_p12), %s218_s8, 4294967168  ;;  %s226_s23 = sand.u32 1, %s2343_s19   ;;  %s230_s12 = scalar_lea.vmem [#allocation7], %s2490_s14 }
  0x73   : > { %s227_s9 = scalar_lea.sflag [#allocation8], %s226_s23 }
  0x74   : > { %2261 = dma.done.wait (%p2716_p12), %s227_s9, 128  }
  0x75   : > { %2263 = vsyncadd (%p2716_p12), %s227_s9, 4294967168  ;;  %p2717_p11 = scmp.eq.s32.totalorder %s2343_s19, 0 }
  0x77   : > { %2265 = dma.done.wait (%p2717_p11), [#allocation8], 10240   ;;  %p2718_p0 = pmov %p2717_p11 }
  0x78   : > { %v2293_v0 = vmov 0.0   ;;  %v2509_v1 = vld [vmem:[%s221_s28] sm:$0xff]  ;;  %v2014_v6 = vld [vmem:[#allocation9 + $0x54] ss:$40 sps:$4 sm:$0xff]   ;;  %v2016_v7 = vld [vmem:[#allocation9 + $0x50] ss:$40 sps:$4 sm:$0xff]   ;;  %v531_v40 = vlaneseq }
  0x79   : > { %2267 = vsyncadd (%p2718_p0), [#allocation8], 4294957056  ;;  %1799 = vmatprep.subr.bf16.mxu1 %v2293_v0  ;;  %270 = vadd.xlane.f32.xlu0 %v2509_v1  ;;  %v274_v2 = vmul.f32 %v2509_v1, %v2509_v1  ;;  %v2010_v3 = vld [vmem:[#allocation9 + $0x4] ss:$40 sps:$4 sm:$0xff]   ;;  %v2012_v4 = vld [vmem:[#allocation9] ss:$40 sps:$4 sm:$0xff]  }
  0x7a   : > { %v2013_v5 = vld [vmem:[#allocation9 + $0x8] ss:$40 sps:$4 sm:$0xff]   ;;  %446 = vmatprep.subr.bf16.mxu0 %v2010_v3  ;;  %v2017_v8 = vld [vmem:[#allocation9 + $0x58] ss:$40 sps:$4 sm:$0xff]   ;;  %v2018_v9 = vld [vmem:[#allocation9 + $0xa4] ss:$40 sps:$4 sm:$0xff]  }
  0x7b   : > { %447 = vmatpush1.bf16.msra.mxu0 %v2012_v4  ;;  %1800 = vmatpush3.bf16.msra.mxu1 %v2013_v5  ;;  %v2020_v10 = vld [vmem:[#allocation9 + $0xa0] ss:$40 sps:$4 sm:$0xff]   ;;  %v2022_v12 = vld [vmem:[#allocation9 + $0xf4] ss:$40 sps:$4 sm:$0xff]   ;;  %v2024_v13 = vld [vmem:[#allocation9 + $0xf0] ss:$40 sps:$4 sm:$0xff]  }
  0x7c   : > { %448 = vmatprep.subr.bf16.mxu0 %v2014_v6  ;;  %1801 = vmatprep.subr.bf16.mxu1 %v2293_v0  ;;  %v2021_v11 = vld [vmem:[#allocation9 + $0xa8] ss:$40 sps:$4 sm:$0xff]   ;;  %v2025_v14 = vld [vmem:[#allocation9 + $0xf8] ss:$40 sps:$4 sm:$0xff]   ;;  %v2026_v15 = vld [vmem:[#allocation9 + $0x144] ss:$40 sps:$4 sm:$0xff]  }
  0x7d   : > { %275 = vadd.xlane.f32.xlu0 %v274_v2  ;;  %v2028_v16 = vld [vmem:[#allocation9 + $0x140] ss:$40 sps:$4 sm:$0xff]   ;;  %v2030_v18 = vld [vmem:[#allocation9 + $0x194] ss:$40 sps:$4 sm:$0xff]   ;;  %v2032_v19 = vld [vmem:[#allocation9 + $0x190] ss:$40 sps:$4 sm:$0xff]  }
  0x7e   : > { %v2029_v17 = vld [vmem:[#allocation9 + $0x148] ss:$40 sps:$4 sm:$0xff]   ;;  %v2033_v20 = vld [vmem:[#allocation9 + $0x198] ss:$40 sps:$4 sm:$0xff]   ;;  %v2034_v21 = vld [vmem:[#allocation9 + $0x1e4] ss:$40 sps:$4 sm:$0xff]  }
  0x7f   : > { %449 = vmatpush1.bf16.msra.mxu0 %v2016_v7  ;;  %1802 = vmatpush3.bf16.msra.mxu1 %v2017_v8  ;;  %v2036_v22 = vld [vmem:[#allocation9 + $0x1e0] ss:$40 sps:$4 sm:$0xff]   ;;  %v2038_v24 = vld [vmem:[#allocation9 + $0x234] ss:$40 sps:$4 sm:$0xff]   ;;  %v2040_v25 = vld [vmem:[#allocation9 + $0x230] ss:$40 sps:$4 sm:$0xff]  }
  0x80   : > { %1803 = vmatprep.subr.bf16.mxu1 %v2293_v0  ;;  %450 = vmatprep.subr.bf16.mxu0 %v2018_v9  ;;  %v2037_v23 = vld [vmem:[#allocation9 + $0x1e8] ss:$40 sps:$4 sm:$0xff]   ;;  %v2041_v26 = vld [vmem:[#allocation9 + $0x238] ss:$40 sps:$4 sm:$0xff]   ;;  %v2294_v27 = vmov 0   ;;  %vm2295_vm0 = vmmov 0  }
  0x81   : > { %478 = vmatprep.mubr.bf16.mxu0 %v2294_v27  ;;  %1815 = vmatprep.mubr.msk.bf16.mxu1 %vm2295_vm0, %v2293_v0  ;;  %v2531_v41 = vshrl.u32 %v531_v40, 7  ;;  %v266_v42 = vld [vmem:[%s2700_s3] sm:$0xf]  ;;  %vm613_vm1 = vcmask 1043456   ;;  %v594_v3 = vand.u32 127, %v531_v40  ;;  %vm597_vm3 = vcmask 64512  }
  0x82   : > { %v2536_v43 = vunpack.c.l.bf16 %v266_v42  ;;  %s1734_s6 = sshll.u32 %s2343_s19, 7  ;;  %s263_s10 = scalar_lea.vmem [#allocation10], %s2490_s14 }
  0x83   : > { %451 = vmatpush1.bf16.msra.mxu0 %v2020_v10  ;;  %1804 = vmatpush3.bf16.msra.mxu1 %v2021_v11  ;;  %v540_v44 = vsub.s32 1, %v2531_v41  ;;  %v547_v45 = vsub.s32 2, %v2531_v41  ;;  %v533_v47 = vsub.s32 0, %v2531_v41  ;;  %vm595_vm2 = vcmp.ge.s32.totalorder %v2531_v41, %v594_v3  ;;  %s1536_s2 = sshll.u32 %s263_s10, 4  ;;  %s2653_s29 = scalar_lea.hbm %s2701_s4, %s1734_s6  ;;  %s2655_s2 = int_to_ptr.vmem [resolvable:$true] %s1536_s2 }
  0x84   : > { %1805 = vmatprep.subr.bf16.mxu1 %v2293_v0  ;;  %452 = vmatprep.subr.bf16.mxu0 %v2022_v12  ;;  %s1523_s19 = scalar_lea.sflag [#allocation6], %s2487_s11  ;;  %s2212_s13 = scalar_lea.vmem %s2655_s2, 128 }
  0x85   : > { %v541_v46 = vrot.slane %v2536_v43, %v540_v44  ;;  %v548_v50 = vrot.slane %v2536_v43, %v547_v45  ;;  %v534_v56 = vrot.slane %v2536_v43, %v533_v47  ;;  %v2053_v45 = vld [vmem:[#allocation9 + $0x64] ss:$40 sps:$4 sm:$0xff]   ;;  %p2213_p10 = scmp.ne.s32.totalorder %s2655_s2, %s2212_s13  ;;  %p2719_p13 = scmp.ne.s32.totalorder %s2713_s30, 0 }
  0x86   : > { %s2296_s14 = smov [#allocation10]  }
  0x87   : > { %453 = vmatpush1.bf16.msra.mxu0 %v2024_v13  ;;  %1806 = vmatpush3.bf16.msra.mxu1 %v2025_v14  ;;  %p2214_p3 = pnand %p2213_p10, %p2719_p13  ;;  %s2216_s8 = sshll.u32 %s2296_s14, 4  ;;  %s2217_s8 = int_to_ptr.vmem [resolvable:$false] %s2216_s8 }
  0x88   : > { %1807 = vmatprep.subr.bf16.mxu1 %v2293_v0  ;;  %454 = vmatprep.subr.bf16.mxu0 %v2026_v15  ;;  %s2218_s28 = scalar_lea.vmem %s2217_s8, 256  ;;  %p2219_p9 = scmp.lt.s32.totalorder %s2655_s2, %s2217_s8 }
  0x89   : > { %p2215_p7 = pneg %p2214_p3  ;;  %p2220_p2 = scmp.lt.s32.totalorder %s2218_s28, %s2212_s13 }
  0x8b   : > { %455 = vmatpush1.bf16.msra.mxu0 %v2028_v16  ;;  %1808 = vmatpush3.bf16.msra.mxu1 %v2029_v17  ;;  %p2221_p5 = por %p2220_p2, %p2219_p9 }
  0x8c   : > { %1809 = vmatprep.subr.bf16.mxu1 %v2293_v0  ;;  %456 = vmatprep.subr.bf16.mxu0 %v2030_v18  ;;  %v2042_v18 = vld [vmem:[#allocation9 + $0xc] ss:$40 sps:$4 sm:$0xff]  }
  0x8d   : > { %p2222_p1 = pnand %p2221_p5, %p2215_p7 }
  0x8f   : > { %457 = vmatpush1.bf16.msra.mxu0 %v2032_v19  ;;  %1810 = vmatpush3.bf16.msra.mxu1 %v2033_v20  ;;  %v2043_v20 = vld [vmem:[#allocation9 + $0x5c] ss:$40 sps:$4 sm:$0xff]  }
  0x90   : > { %458 = vmatprep.subr.bf16.mxu0 %v2034_v21  ;;  %1811 = vmatprep.subr.bf16.mxu1 %v2293_v0  ;;  %v2044_v21 = vld [vmem:[#allocation9 + $0xac] ss:$40 sps:$4 sm:$0xff]  }
  0x93   : > { %459 = vmatpush1.bf16.msra.mxu0 %v2036_v22  ;;  %1812 = vmatpush3.bf16.msra.mxu1 %v2037_v23  ;;  %v2045_v22 = vld [vmem:[#allocation9 + $0xfc] ss:$40 sps:$4 sm:$0xff]   ;;  %v2046_v23 = vld [vmem:[#allocation9 + $0x14c] ss:$40 sps:$4 sm:$0xff]  }
  0x94   : > { %460 = vmatprep.subr.bf16.mxu0 %v2038_v24  ;;  %1813 = vmatprep.subr.bf16.mxu1 %v2293_v0  ;;  %v2047_v24 = vld [vmem:[#allocation9 + $0x19c] ss:$40 sps:$4 sm:$0xff]  }
  0x97   : > { %461 = vmatpush1.bf16.msra.mxu0 %v2040_v25  ;;  %1814 = vmatpush3.bf16.msra.mxu1 %v2041_v26  ;;  %v2048_v25 = vld [vmem:[#allocation9 + $0x1ec] ss:$40 sps:$4 sm:$0xff]   ;;  %v2049_v26 = vld [vmem:[#allocation9 + $0x23c] ss:$40 sps:$4 sm:$0xff]  }
  0x98   : > { %1819 = vmatprep.subr.bf16.mxu0 %v2293_v0  ;;  %1851 = vmatprep.subr.bf16.mxu1 %v2293_v0 }
 0x106   : > { %v271_v28 = vpop.xlane.xlu0 %270 }
 0x107   : > { %v273_v29 = vmul.f32 0.0078125, %v271_v28  ;;  %v782_v28 = vld [vmem:[%s230_s12] sm:$0xff] }
 0x108   : > { %783 = vadd.xlane.f32.xlu0 %v782_v28 }
 0x109   : > { %v278_v31 = vmul.f32 %v273_v29, %v273_v29  ;;  %v281_v36 = vsub.f32 %v2509_v1, %v273_v29  ;;  %v786_v29 = vmul.f32 %v782_v28, %v782_v28 }
 0x10a   : > { %v276_v30 = vpop.xlane.xlu0 %275 }
 0x10b   : > { %v277_v32 = vmul.f32 0.0078125, %v276_v30 }
 0x10d   : > { %v279_v33 = vsub.f32 %v277_v32, %v278_v31 }
 0x10f   : > { %v280_v34 = vmax.f32 %v279_v33, 0.0 }
 0x111   : > { %v282_v35 = vadd.f32 1e-05, %v280_v34 }
 0x113   : > { %2106 = vrsqrt.f32 %v282_v35  ;;  %v2050_v35 = vld [vmem:[#allocation9 + $0x14] ss:$40 sps:$4 sm:$0xff]  }
 0x11d   : > { %v2107_v37 = vpop.eup %2106 }
 0x11e   : > { %v284_v38 = vmul.f32 %v2107_v37, %v281_v36  ;;  %v2052_v36 = vld [vmem:[#allocation9 + $0x18] ss:$40 sps:$4 sm:$0xff]  }
 0x120   : > { %v317_v39 = vpack.c.bf16 %v284_v38, %v284_v38 }
 0x122   : > { %479 = vmatmul.mubr.bf16.vlgmr.msra.gmra.mrb[0].mxu0 %v317_v39  ;;  %1816 = vmatmul.mubr.bf16.vlgmr.msra.gmra.mrb[0].mxu1 %v317_v39  ;;  %v2055_v39 = vld [vmem:[#allocation9 + $0x68] ss:$40 sps:$4 sm:$0xff]  }
 0x123   : > { %1821 = vmatprep.mubr.msk.bf16.mxu0 %vm2295_vm0, %v2293_v0  ;;  %1867 = vmatprep.mubr.msk.bf16.mxu1 %vm2295_vm0, %v2293_v0 }
 0x195   : > { %v784_v37 = vpop.xlane.xlu0 %783 }
 0x196   : > { %v785_v40 = vmul.f32 0.0078125, %v784_v37 }
 0x1f5   : > { %v480_v48 = vpop.f32.mrb[0].mxu0  ;;  %v521_v49 = vpop.f32.mrb[0].mxu1 }
 0x1f6   : > { %v482_v51 = vpop.f32.mrb[1].mxu0  ;;  %v1817_v52 = vpop.f32.mrb[1].mxu1  ;;  %v549_v60 = vadd.f32 %v548_v50, %v521_v49  ;;  %v535_v61 = vadd.f32 %v534_v56, %v480_v48  ;;  %v2058_v48 = vld [vmem:[#allocation9 + $0xb8] ss:$40 sps:$4 sm:$0xff]  }
 0x1f7   : > { %v542_v53 = vadd.f32 %v541_v46, %v482_v51  ;;  %v484_v54 = vpop.f32.mrb[2].mxu0  ;;  %v524_v55 = vpop.f32.mrb[2].mxu1  ;;  %v790_v46 = vmul.f32 %v785_v40, %v785_v40  ;;  %v2071_v50 = vld [vmem:[#allocation9 + $0x10] ss:$40 sps:$4 sm:$0xff]   ;;  %v2056_v52 = vld [vmem:[#allocation9 + $0xb4] ss:$40 sps:$4 sm:$0xff]  }
 0x1f8   : > { %v485_v57 = vpop.f32.mrb[3].mxu0  ;;  %v1818_v58 = vpop.f32.mrb[3].mxu1  ;;  %v550_v62 = vpack.c.bf16 %v549_v60, %v549_v60  ;;  %v536_v63 = vpack.c.bf16 %v535_v61, %v535_v61  ;;  %1852 = vmatpush3.bf16.msra.mxu1 %v2071_v50  ;;  %v2059_v55 = vld [vmem:[#allocation9 + $0x104] ss:$40 sps:$4 sm:$0xff]   ;;  %v2064_v56 = vld [vmem:[#allocation9 + $0x158] ss:$40 sps:$4 sm:$0xff]   ;;  %v793_v61 = vsub.f32 %v782_v28, %v785_v40 }
 0x1f9   : > { %v543_v59 = vpack.c.bf16 %v542_v53, %v542_v53  ;;  %v2061_v53 = vld [vmem:[#allocation9 + $0x108] ss:$40 sps:$4 sm:$0xff]   ;;  %1853 = vmatprep.subr.bf16.mxu1 %v2293_v0  ;;  %v2062_v57 = vld [vmem:[#allocation9 + $0x154] ss:$40 sps:$4 sm:$0xff]   ;;  %v2070_v60 = vld [vmem:[#allocation9 + $0x1f8] ss:$40 sps:$4 sm:$0xff]  }
 0x1fa   : > { %v615_v2 = vsel %vm613_vm1, %v550_v62, 0  ;;  %v2067_v58 = vld [vmem:[#allocation9 + $0x1a8] ss:$40 sps:$4 sm:$0xff]  }
 0x1fb   : > { %1820 = vmatpush3.bf16.xpose.msra.mxu0 %v543_v59  ;;  %v2065_v59 = vld [vmem:[#allocation9 + $0x1a4] ss:$40 sps:$4 sm:$0xff]  }
 0x1fc   : > { %1825 = vmatprep.subr.bf16.mxu0 %v2293_v0 }
 0x202   : > { %1822 = vmatmul.mubr.bf16.vlgmr.msra.gmra.mrb[4].mxu0 %v536_v63  ;;  %v2068_v63 = vld [vmem:[#allocation9 + $0x1f4] ss:$40 sps:$4 sm:$0xff]  }
 0x203   : > { %1826 = vmatpush3.bf16.msra.mxu0 %v615_v2  ;;  %1827 = vmatprep.mubr.msk.bf16.mxu0 %vm2295_vm0, %v2293_v0  ;;  %v2074_v2 = vld [vmem:[#allocation9 + $0x248] ss:$40 sps:$4 sm:$0xff]  }
 0x204   : > { %1831 = vmatprep.subr.bf16.mxu0 %v2293_v0 }
 0x2d5   : > { %v585_v4 = vpop.f32.mrb[4].mxu0 }
 0x2d6   : > { %v596_v5 = vsel %vm595_vm2, %v585_v4, -1e+09  ;;  %v1823_v6 = vpop.f32.mrb[5].mxu0  ;;  %v2072_v4 = vld [vmem:[#allocation9 + $0x244] ss:$40 sps:$4 sm:$0xff]  }
 0x2d7   : > { %v588_v7 = vpop.f32.mrb[6].mxu0  ;;  %v598_v8 = vsel %vm597_vm3, %v596_v5, -inf  ;;  %v764_v6 = vsub.s32 3, %v2531_v41 }
 0x2d8   : > { %599 = vmax.xlane.f32.xlu1 %v598_v8  ;;  %v1824_v9 = vpop.f32.mrb[7].mxu0 }
 0x2d9   : > { %v765_v7 = vrot.slane %v2536_v43, %v764_v6 }
 0x365   : > { %v600_v10 = vpop.xlane.xlu1 %599 }
 0x366   : > { %v601_v11 = vsub.f32 %v596_v5, %v600_v10 }
 0x368   : > { %v602_v12 = vmul.f32 1.442695, %v601_v11 }
 0x36a   : > { %2108 = vpow2.f32 %v602_v12 }
 0x374   : > { %v2109_v13 = vpop.eup %2108 }
 0x375   : > { %v604_v14 = vsel %vm597_vm3, %v2109_v13, 0.0 }
 0x376   : > { %605 = vadd.xlane.f32.xlu1 %v604_v14 }
 0x37a   : > { %787 = vadd.xlane.f32.xlu1 %v786_v29 }
 0x403   : > { %v606_v15 = vpop.xlane.xlu1 %605 }
 0x404   : > { %2110 = vrcp.f32 %v606_v15  ;;  %v2076_v15 = vld [vmem:[#allocation9 + $0xb0] ss:$40 sps:$4 sm:$0xff]  }
 0x407   : > { %v788_v38 = vpop.xlane.xlu1 %787 }
 0x408   : > { %v789_v42 = vmul.f32 0.0078125, %v788_v38 }
 0x40a   : > { %v791_v49 = vsub.f32 %v789_v42, %v790_v46  ;;  %v1058_v42 = vsub.s32 6, %v2531_v41  ;;  %v904_v46 = vsub.s32 4, %v2531_v41 }
 0x40c   : > { %v792_v51 = vmax.f32 %v791_v49, 0.0  ;;  %v905_v49 = vrot.slane %v2536_v43, %v904_v46 }
 0x40e   : > { %v2111_v16 = vpop.eup %2110  ;;  %v794_v54 = vadd.f32 1e-05, %v792_v51 }
 0x40f   : > { %v608_v17 = vmul.f32 %v2111_v16, %v2109_v13  ;;  %v2077_v16 = vld [vmem:[#allocation9 + $0x100] ss:$40 sps:$4 sm:$0xff]  }
 0x410   : > { %2112 = vrsqrt.f32 %v794_v54 }
 0x411   : > { %v609_v19 = vpack.c.bf16 %v608_v17, %v608_v17  ;;  %v2078_v17 = vld [vmem:[#allocation9 + $0x150] ss:$40 sps:$4 sm:$0xff]  }
 0x413   : > { %1828 = vmatmul.mubr.msk.bf16.vlgmr.msra.gmra.mrb[8].mxu0 %vm597_vm3, %v609_v19  ;;  %v2081_v19 = vld [vmem:[#allocation9 + $0x240] ss:$40 sps:$4 sm:$0xff]  }
 0x414   : > { %1832 = vmatpush3.bf16.msra.mxu0 %v2042_v18  ;;  %1847 = vmatprep.mubr.msk.bf16.mxu0 %vm2295_vm0, %v2293_v0  ;;  %v2079_v18 = vld [vmem:[#allocation9 + $0x1a0] ss:$40 sps:$4 sm:$0xff]  }
 0x415   : > { %1833 = vmatprep.subr.bf16.mxu0 %v2293_v0 }
 0x418   : > { %1834 = vmatpush3.bf16.msra.mxu0 %v2043_v20 }
 0x419   : > { %1835 = vmatprep.subr.bf16.mxu0 %v2293_v0 }
 0x41a   : > { %v2113_v62 = vpop.eup %2112 }
 0x41b   : > { %v796_v3 = vmul.f32 %v2113_v62, %v793_v61 }
 0x41c   : > { %1836 = vmatpush3.bf16.msra.mxu0 %v2044_v21 }
 0x41d   : > { %1837 = vmatprep.subr.bf16.mxu0 %v2293_v0  ;;  %v924_v5 = vpack.c.bf16 %v796_v3, %v796_v3 }
 0x420   : > { %1838 = vmatpush3.bf16.msra.mxu0 %v2045_v22 }
 0x421   : > { %1839 = vmatprep.subr.bf16.mxu0 %v2293_v0 }
 0x424   : > { %1840 = vmatpush3.bf16.msra.mxu0 %v2046_v23 }
 0x425   : > { %1841 = vmatprep.subr.bf16.mxu0 %v2293_v0 }
 0x428   : > { %1842 = vmatpush3.bf16.msra.mxu0 %v2047_v24 }
 0x429   : > { %1843 = vmatprep.subr.bf16.mxu0 %v2293_v0 }
 0x42c   : > { %1844 = vmatpush3.bf16.msra.mxu0 %v2048_v25 }
 0x42d   : > { %1845 = vmatprep.subr.bf16.mxu0 %v2293_v0 }
 0x430   : > { %1846 = vmatpush3.bf16.msra.mxu0 %v2049_v26 }
 0x431   : > { %1005 = vmatprep.subr.bf16.mxu0 %v2052_v36 }
 0x4e6   : > { %v651_v30 = vpop.f32.mrb[8].mxu0 }
 0x4e7   : > { %v673_v31 = vpack.c.bf16 %v651_v30, %v651_v30  ;;  %v1829_v32 = vpop.f32.mrb[9].mxu0 }
 0x4e8   : > { %v654_v33 = vpop.f32.mrb[10].mxu0 }
 0x4e9   : > { %v1830_v34 = vpop.f32.mrb[11].mxu0  ;;  %1848 = vmatmul.mubr.bf16.vlgmr.msra.gmra.mrb[12].mxu0 %v673_v31  ;;  %v1051_v33 = vsub.s32 5, %v2531_v41 }
 0x4ea   : > { %1037 = vmatprep.mubr.bf16.mxu0 %v2294_v27  ;;  %1006 = vmatpush1.bf16.msra.mxu0 %v2050_v35  ;;  %v2075_v27 = vld [vmem:[#allocation9 + $0x60] ss:$40 sps:$4 sm:$0xff]  }
 0x4eb   : > { %1007 = vmatprep.subr.bf16.mxu0 %v2055_v39  ;;  %1854 = vmatpush3.bf16.msra.mxu1 %v2075_v27  ;;  %v1052_v34 = vrot.slane %v2536_v43, %v1051_v33 }
 0x4ec   : > { %1855 = vmatprep.subr.bf16.mxu1 %v2293_v0 }
 0x4ee   : > { %1008 = vmatpush1.bf16.msra.mxu0 %v2053_v45  ;;  %v1059_v45 = vrot.slane %v2536_v43, %v1058_v42 }
 0x4ef   : > { %1009 = vmatprep.subr.bf16.mxu0 %v2058_v48  ;;  %1856 = vmatpush3.bf16.msra.mxu1 %v2076_v15  ;;  %v2087_v15 = vld [vmem:[#allocation9 + $0x1ac] ss:$40 sps:$4 sm:$0xff]  }
 0x4f0   : > { %1857 = vmatprep.subr.bf16.mxu1 %v2293_v0 }
 0x4f2   : > { %1010 = vmatpush1.bf16.msra.mxu0 %v2056_v52 }
 0x4f3   : > { %1011 = vmatprep.subr.bf16.mxu0 %v2061_v53  ;;  %1858 = vmatpush3.bf16.msra.mxu1 %v2077_v16  ;;  %v2088_v16 = vld [vmem:[#allocation9 + $0x1fc] ss:$40 sps:$4 sm:$0xff]  }
 0x4f4   : > { %1859 = vmatprep.subr.bf16.mxu1 %v2293_v0 }
 0x4f6   : > { %1012 = vmatpush1.bf16.msra.mxu0 %v2059_v55 }
 0x4f7   : > { %1013 = vmatprep.subr.bf16.mxu0 %v2064_v56  ;;  %1860 = vmatpush3.bf16.msra.mxu1 %v2078_v17  ;;  %v2089_v17 = vld [vmem:[#allocation9 + $0x24c] ss:$40 sps:$4 sm:$0xff]  }
 0x4f8   : > { %1861 = vmatprep.subr.bf16.mxu1 %v2293_v0 }
 0x4fa   : > { %1014 = vmatpush1.bf16.msra.mxu0 %v2062_v57 }
 0x4fb   : > { %1015 = vmatprep.subr.bf16.mxu0 %v2067_v58  ;;  %1862 = vmatpush3.bf16.msra.mxu1 %v2079_v18 }
 0x4fc   : > { %1863 = vmatprep.subr.bf16.mxu1 %v2293_v0 }
 0x4fe   : > { %1016 = vmatpush1.bf16.msra.mxu0 %v2065_v59 }
 0x4ff   : > { %1017 = vmatprep.subr.bf16.mxu0 %v2070_v60 }
 0x502   : > { %1018 = vmatpush1.bf16.msra.mxu0 %v2068_v63 }
 0x503   : > { %1019 = vmatprep.subr.bf16.mxu0 %v2074_v2 }
 0x506   : > { %1020 = vmatpush1.bf16.msra.mxu0 %v2072_v4 }
 0x507   : > { %1903 = vmatprep.subr.bf16.mxu0 %v2293_v0 }
 0x509   : > { %1038 = vmatmul.mubr.bf16.vlgmr.msra.gmra.mrb[16].mxu0 %v924_v5 }
 0x50a   : > { %1919 = vmatprep.mubr.msk.bf16.mxu0 %vm2295_vm0, %v2293_v0 }
 0x5bc   : > { %v756_v8 = vpop.f32.mrb[12].mxu0 }
 0x5bd   : > { %v766_v9 = vadd.f32 %v765_v7, %v756_v8  ;;  %v1849_v10 = vpop.f32.mrb[13].mxu0  ;;  %v2082_v8 = vld [vmem:[#allocation9 + $0x1c] ss:$40 sps:$4 sm:$0xff]  }
 0x5be   : > { %v759_v11 = vpop.f32.mrb[14].mxu0  ;;  %v2083_v10 = vld [vmem:[#allocation9 + $0x6c] ss:$40 sps:$4 sm:$0xff]  }
 0x5bf   : > { %v2577_v12 = vadd.f32 %v766_v9, %v2509_v1  ;;  %v1850_v13 = vpop.f32.mrb[15].mxu0  ;;  %v2080_v1 = vld [vmem:[#allocation9 + $0x1f0] ss:$40 sps:$4 sm:$0xff]   ;;  %v2084_v11 = vld [vmem:[#allocation9 + $0xbc] ss:$40 sps:$4 sm:$0xff]  }
 0x5c0   : > { %1864 = vmatpush3.bf16.msra.mxu1 %v2080_v1  ;;  %v2085_v13 = vld [vmem:[#allocation9 + $0x10c] ss:$40 sps:$4 sm:$0xff]  }
 0x5c1   : > { %768 = vadd.xlane.f32.xlu0 %v2577_v12  ;;  %v771_v14 = vmul.f32 %v2577_v12, %v2577_v12  ;;  %1865 = vmatprep.subr.bf16.mxu1 %v2293_v0 }
 0x5c3   : > { %772 = vadd.xlane.f32.xlu1 %v771_v14  ;;  %v2086_v14 = vld [vmem:[#allocation9 + $0x15c] ss:$40 sps:$4 sm:$0xff]  }
 0x5c4   : > { %1866 = vmatpush3.bf16.msra.mxu1 %v2081_v19 }
 0x5c5   : > { %1871 = vmatprep.subr.bf16.mxu1 %v2293_v0 }
 0x5dc   : > { %v1039_v20 = vpop.f32.mrb[16].mxu0 }
 0x5dd   : > { %v1041_v21 = vpop.f32.mrb[17].mxu0  ;;  %v1053_v35 = vadd.f32 %v1052_v34, %v1039_v20  ;;  %v2092_v34 = vld [vmem:[#allocation9 + $0xc0] ss:$40 sps:$4 sm:$0xff]  }
 0x5de   : > { %v1043_v22 = vpop.f32.mrb[18].mxu0  ;;  %v1060_v48 = vadd.f32 %v1059_v45, %v1041_v21 }
 0x5df   : > { %v1044_v23 = vpop.f32.mrb[19].mxu0  ;;  %v1054_v39 = vpack.c.bf16 %v1053_v35, %v1053_v35  ;;  %v2090_v22 = vld [vmem:[#allocation9 + $0x20] ss:$40 sps:$4 sm:$0xff]   ;;  %v2093_v35 = vld [vmem:[#allocation9 + $0x110] ss:$40 sps:$4 sm:$0xff]  }
 0x5e0   : > { %v1061_v51 = vpack.c.bf16 %v1060_v48, %v1060_v48  ;;  %1904 = vmatpush3.bf16.msra.mxu0 %v2090_v22  ;;  %v2091_v23 = vld [vmem:[#allocation9 + $0x70] ss:$40 sps:$4 sm:$0xff]  }
 0x5e1   : > { %1905 = vmatprep.subr.bf16.mxu0 %v2293_v0 }
 0x5e2   : > { %v1118_v56 = vsel %vm613_vm1, %v1061_v51, 0 }
 0x5e4   : > { %1906 = vmatpush3.bf16.msra.mxu0 %v2091_v23 }
 0x5e5   : > { %1907 = vmatprep.subr.bf16.mxu0 %v2293_v0 }
 0x5e8   : > { %1908 = vmatpush3.bf16.msra.mxu0 %v2092_v34 }
 0x5e9   : > { %1909 = vmatprep.subr.bf16.mxu0 %v2293_v0 }
 0x5ec   : > { %1910 = vmatpush3.bf16.msra.mxu0 %v2093_v35 }
 0x5ed   : > { %1911 = vmatprep.subr.bf16.mxu0 %v2293_v0 }
 0x64e   : > { %v769_v24 = vpop.xlane.xlu0 %768 }
 0x64f   : > { %v770_v25 = vmul.f32 0.0078125, %v769_v24  ;;  %v1267_v24 = vsub.s32 7, %v2531_v41 }
 0x650   : > { %v773_v26 = vpop.xlane.xlu1 %772 }
 0x651   : > { %v775_v28 = vmul.f32 %v770_v25, %v770_v25  ;;  %v774_v29 = vmul.f32 0.0078125, %v773_v26  ;;  %v778_v36 = vsub.f32 %v2577_v12, %v770_v25  ;;  %v1268_v25 = vrot.slane %v2536_v43, %v1267_v24  ;;  %v2094_v43 = vld [vmem:[#allocation9 + $0x160] ss:$40 sps:$4 sm:$0xff]  }
 0x652   : > { %1912 = vmatpush3.bf16.msra.mxu0 %v2094_v43 }
 0x653   : > { %v776_v30 = vsub.f32 %v774_v29, %v775_v28  ;;  %1913 = vmatprep.subr.bf16.mxu0 %v2293_v0 }
 0x655   : > { %v777_v31 = vmax.f32 %v776_v30, 0.0 }
 0x657   : > { %v779_v32 = vadd.f32 1e-05, %v777_v31 }
 0x659   : > { %2114 = vrsqrt.f32 %v779_v32 }
 0x663   : > { %v2115_v37 = vpop.eup %2114 }
 0x664   : > { %v781_v38 = vmul.f32 %v2115_v37, %v778_v36  ;;  %v2095_v36 = vld [vmem:[#allocation9 + $0x1b0] ss:$40 sps:$4 sm:$0xff]  }
 0x665   : > { %1914 = vmatpush3.bf16.msra.mxu0 %v2095_v36  ;;  %v2097_v37 = vld [vmem:[#allocation9 + $0x250] ss:$40 sps:$4 sm:$0xff]  }
 0x666   : > { %v813_v40 = vpack.c.bf16 %v781_v38, %v781_v38  ;;  %1915 = vmatprep.subr.bf16.mxu0 %v2293_v0 }
 0x668   : > { %1868 = vmatmul.mubr.bf16.vlgmr.msra.gmra.mrb[4].mxu1 %v813_v40 }
 0x669   : > { %1872 = vmatpush3.bf16.xpose.msra.mxu1 %v1054_v39  ;;  %1873 = vmatprep.mubr.msk.bf16.mxu1 %vm2295_vm0, %v2293_v0 }
 0x66a   : > { %1877 = vmatprep.subr.bf16.mxu1 %v2293_v0 }
 0x73b   : > { %v896_v50 = vpop.f32.mrb[4].mxu1 }
 0x73c   : > { %v906_v52 = vadd.f32 %v905_v49, %v896_v50  ;;  %v1869_v27 = vpop.f32.mrb[5].mxu1 }
 0x73d   : > { %v899_v53 = vpop.f32.mrb[6].mxu1 }
 0x73e   : > { %v907_v54 = vpack.c.bf16 %v906_v52, %v906_v52  ;;  %v1870_v55 = vpop.f32.mrb[7].mxu1  ;;  %v2098_v53 = vld [vmem:[#allocation9 + $0x24] ss:$40 sps:$4 sm:$0xff]  }
 0x73f   : > { %v267_v55 = vld [vmem:[%s2700_s3 + $0x4] sm:$0x1] }
 0x740   : > { %1874 = vmatmul.mubr.bf16.vlgmr.msra.gmra.mrb[8].mxu1 %v907_v54  ;;  %v2099_v54 = vld [vmem:[#allocation9 + $0x74] ss:$40 sps:$4 sm:$0xff]  }
 0x741   : > { %1878 = vmatpush3.bf16.msra.mxu1 %v1118_v56  ;;  %1879 = vmatprep.mubr.msk.bf16.mxu1 %vm2295_vm0, %v2293_v0  ;;  %v269_v56 = vunpack.c.l.bf16 %v267_v55 }
 0x742   : > { %1883 = vmatprep.subr.bf16.mxu1 %v2293_v0 }
 0x813   : > { %v1096_v57 = vpop.f32.mrb[8].mxu1 }
 0x814   : > { %v1875_v58 = vpop.f32.mrb[9].mxu1  ;;  %v1102_v59 = vsel %vm597_vm3, %v1096_v57, -inf }
 0x815   : > { %1103 = vmax.xlane.f32.xlu0 %v1102_v59  ;;  %v1099_v60 = vpop.f32.mrb[10].mxu1 }
 0x816   : > { %v1876_v61 = vpop.f32.mrb[11].mxu1 }
 0x8a2   : > { %v1104_v62 = vpop.xlane.xlu0 %1103 }
 0x8a3   : > { %v1105_v63 = vsub.f32 %v1096_v57, %v1104_v62  ;;  %v1393_v57 = vrot.slane %v269_v56, %v533_v47  ;;  %v2103_v47 = vld [vmem:[#allocation9 + $0x1b4] ss:$40 sps:$4 sm:$0xff]  }
 0x8a5   : > { %v1106_v2 = vmul.f32 1.442695, %v1105_v63 }
 0x8a7   : > { %2116 = vpow2.f32 %v1106_v2 }
 0x8b1   : > { %v2117_v3 = vpop.eup %2116 }
 0x8b2   : > { %v1108_v4 = vsel %vm597_vm3, %v2117_v3, 0.0 }
 0x8b3   : > { %1109 = vadd.xlane.f32.xlu1 %v1108_v4  ;;  %v2101_v4 = vld [vmem:[#allocation9 + $0x114] ss:$40 sps:$4 sm:$0xff]  }
 0x940   : > { %v1110_v5 = vpop.xlane.xlu1 %1109 }
 0x941   : > { %2118 = vrcp.f32 %v1110_v5  ;;  %v2102_v5 = vld [vmem:[#allocation9 + $0x164] ss:$40 sps:$4 sm:$0xff]  }
 0x94b   : > { %v2119_v6 = vpop.eup %2118 }
 0x94c   : > { %v1112_v7 = vmul.f32 %v2119_v6, %v2117_v3  ;;  %v2100_v3 = vld [vmem:[#allocation9 + $0xc4] ss:$40 sps:$4 sm:$0xff]  }
 0x94d   : > { %v2104_v6 = vld [vmem:[#allocation9 + $0x204] ss:$40 sps:$4 sm:$0xff]  }
 0x94e   : > { %v1113_v9 = vpack.c.bf16 %v1112_v7, %v1112_v7  ;;  %v2105_v7 = vld [vmem:[#allocation9 + $0x254] ss:$40 sps:$4 sm:$0xff]  }
 0x950   : > { %1880 = vmatmul.mubr.msk.bf16.vlgmr.msra.gmra.mrb[12].mxu1 %vm597_vm3, %v1113_v9 }
 0x951   : > { %1884 = vmatpush3.bf16.msra.mxu1 %v2082_v8  ;;  %1899 = vmatprep.mubr.msk.bf16.mxu1 %vm2295_vm0, %v2293_v0 }
 0x952   : > { %1885 = vmatprep.subr.bf16.mxu1 %v2293_v0 }
 0x955   : > { %1886 = vmatpush3.bf16.msra.mxu1 %v2083_v10 }
 0x956   : > { %1887 = vmatprep.subr.bf16.mxu1 %v2293_v0 }
 0x959   : > { %1888 = vmatpush3.bf16.msra.mxu1 %v2084_v11 }
 0x95a   : > { %1889 = vmatprep.subr.bf16.mxu1 %v2293_v0 }
 0x95d   : > { %1890 = vmatpush3.bf16.msra.mxu1 %v2085_v13 }
 0x95e   : > { %1891 = vmatprep.subr.bf16.mxu1 %v2293_v0 }
 0x961   : > { %1892 = vmatpush3.bf16.msra.mxu1 %v2086_v14 }
 0x962   : > { %1893 = vmatprep.subr.bf16.mxu1 %v2293_v0 }
 0x965   : > { %1894 = vmatpush3.bf16.msra.mxu1 %v2087_v15 }
 0x966   : > { %1895 = vmatprep.subr.bf16.mxu1 %v2293_v0 }
 0x969   : > { %1896 = vmatpush3.bf16.msra.mxu1 %v2088_v16 }
 0x96a   : > { %1897 = vmatprep.subr.bf16.mxu1 %v2293_v0 }
 0x96d   : > { %1898 = vmatpush3.bf16.msra.mxu1 %v2089_v17 }
 0x96e   : > { %1923 = vmatprep.subr.bf16.mxu1 %v2293_v0 }
 0xa23   : > { %v1154_v18 = vpop.f32.mrb[12].mxu1 }
 0xa24   : > { %v1176_v1 = vpack.c.bf16 %v1154_v18, %v1154_v18  ;;  %v1881_v19 = vpop.f32.mrb[13].mxu1 }
 0xa25   : > { %v1157_v20 = vpop.f32.mrb[14].mxu1 }
 0xa26   : > { %v1882_v21 = vpop.f32.mrb[15].mxu1  ;;  %1900 = vmatmul.mubr.bf16.vlgmr.msra.gmra.mrb[16].mxu1 %v1176_v1 }
 0xa27   : > { %1939 = vmatprep.mubr.msk.bf16.mxu1 %vm2295_vm0, %v2293_v0  ;;  %1924 = vmatpush3.bf16.msra.mxu1 %v2098_v53 }
 0xa28   : > { %1925 = vmatprep.subr.bf16.mxu1 %v2293_v0 }
 0xa2b   : > { %1926 = vmatpush3.bf16.msra.mxu1 %v2099_v54 }
 0xa2c   : > { %1927 = vmatprep.subr.bf16.mxu1 %v2293_v0 }
 0xa2f   : > { %1928 = vmatpush3.bf16.msra.mxu1 %v2100_v3 }
 0xa30   : > { %1929 = vmatprep.subr.bf16.mxu1 %v2293_v0 }
 0xa33   : > { %1930 = vmatpush3.bf16.msra.mxu1 %v2101_v4 }
 0xa34   : > { %1931 = vmatprep.subr.bf16.mxu1 %v2293_v0 }
 0xa37   : > { %1932 = vmatpush3.bf16.msra.mxu1 %v2102_v5 }
 0xa38   : > { %1933 = vmatprep.subr.bf16.mxu1 %v2293_v0 }
 0xa3b   : > { %1934 = vmatpush3.bf16.msra.mxu1 %v2103_v47 }
 0xa3c   : > { %1935 = vmatprep.subr.bf16.mxu1 %v2293_v0 }
 0xa3f   : > { %1936 = vmatpush3.bf16.msra.mxu1 %v2104_v6 }
 0xa40   : > { %1937 = vmatprep.subr.bf16.mxu1 %v2293_v0 }
 0xa43   : > { %1938 = vmatpush3.bf16.msra.mxu1 %v2105_v7 }
 0xaf9   : > { %v1259_v26 = vpop.f32.mrb[16].mxu1 }
 0xafa   : > { %v1269_v28 = vadd.f32 %v1268_v25, %v1259_v26  ;;  %v1901_v29 = vpop.f32.mrb[17].mxu1 }
 0xafb   : > { %v1262_v30 = vpop.f32.mrb[18].mxu1 }
 0xafc   : > { %v2622_v31 = vadd.f32 %v1269_v28, %v2577_v12  ;;  %v1902_v32 = vpop.f32.mrb[19].mxu1  ;;  %v2096_v12 = vld [vmem:[#allocation9 + $0x200] ss:$40 sps:$4 sm:$0xff]  }
 0xafd   : > { %1916 = vmatpush3.bf16.msra.mxu0 %v2096_v12 }
 0xafe   : > { %1271 = vadd.xlane.f32.xlu0 %v2622_v31  ;;  %v1274_v33 = vmul.f32 %v2622_v31, %v2622_v31  ;;  %1917 = vmatprep.subr.bf16.mxu0 %v2293_v0  ;;  %v1518_v0 = vrot.slane %v269_v56, %v540_v44 }
 0xb00   : > { %1275 = vadd.xlane.f32.xlu1 %v1274_v33 }
 0xb01   : > { %1918 = vmatpush3.bf16.msra.mxu0 %v2097_v37 }
 0xb8b   : > { %v1272_v38 = vpop.xlane.xlu0 %1271 }
 0xb8c   : > { %v1273_v39 = vmul.f32 0.0078125, %v1272_v38 }
 0xb8d   : > { %v1276_v40 = vpop.xlane.xlu1 %1275 }
 0xb8e   : > { %v1278_v42 = vmul.f32 %v1273_v39, %v1273_v39  ;;  %v1277_v45 = vmul.f32 0.0078125, %v1276_v40  ;;  %v1281_v50 = vsub.f32 %v2622_v31, %v1273_v39 }
 0xb90   : > { %v1279_v46 = vsub.f32 %v1277_v45, %v1278_v42 }
 0xb92   : > { %v1280_v48 = vmax.f32 %v1279_v46, 0.0 }
 0xb94   : > { %v1282_v49 = vadd.f32 1e-05, %v1280_v48 }
 0xb96   : > { %2120 = vrsqrt.f32 %v1282_v49 }
 0xba0   : > { %v2121_v51 = vpop.eup %2120 }
 0xba1   : > { %v1284_v52 = vmul.f32 %v2121_v51, %v1281_v50 }
 0xba3   : > { %v1301_v27 = vpack.c.bf16 %v1284_v52, %v1284_v52 }
 0xba5   : > { %1920 = vmatmul.mubr.bf16.vlgmr.msra.gmra.mrb[20].mxu0 %v1301_v27 }
 0xc78   : > { %v1384_v58 = vpop.f32.mrb[20].mxu0 }
 0xc79   : > { %v1394_v59 = vadd.f32 %v1393_v57, %v1384_v58  ;;  %v1921_v60 = vpop.f32.mrb[21].mxu0 }
 0xc7a   : > { %v1387_v61 = vpop.f32.mrb[22].mxu0 }
 0xc7b   : > { %v1395_v62 = vmax.f32 %v1394_v59, 0.0  ;;  %v1922_v63 = vpop.f32.mrb[23].mxu0 }
 0xc7d   : > { %1396 = vadd.xlane.f32.xlu0 %v1395_v62  ;;  %v1399_v2 = vmul.f32 %v1395_v62, %v1395_v62 }
 0xc7f   : > { %1400 = vadd.xlane.f32.xlu1 %v1399_v2 }
 0xd0a   : > { %v1397_v8 = vpop.xlane.xlu0 %1396 }
 0xd0b   : > { %v1398_v9 = vmul.f32 0.0078125, %v1397_v8 }
 0xd0c   : > { %v1401_v10 = vpop.xlane.xlu1 %1400 }
 0xd0d   : > { %v1403_v11 = vmul.f32 %v1398_v9, %v1398_v9  ;;  %v1402_v13 = vmul.f32 0.0078125, %v1401_v10  ;;  %v1406_v17 = vsub.f32 %v1395_v62, %v1398_v9 }
 0xd0f   : > { %v1404_v14 = vsub.f32 %v1402_v13, %v1403_v11 }
 0xd11   : > { %v1405_v15 = vmax.f32 %v1404_v14, 0.0 }
 0xd13   : > { %v1407_v16 = vadd.f32 1e-05, %v1405_v15 }
 0xd15   : > { %2122 = vrsqrt.f32 %v1407_v16 }
 0xd1f   : > { %v2123_v18 = vpop.eup %2122 }
 0xd20   : > { %v1409_v1 = vmul.f32 %v2123_v18, %v1406_v17 }
 0xd22   : > { %v1426_v19 = vpack.c.bf16 %v1409_v1, %v1409_v1 }
 0xd24   : > { %1940 = vmatmul.mubr.bf16.vlgmr.msra.gmra.mrb[20].mxu1 %v1426_v19 }
 0xdf7   : > { %v1509_v20 = vpop.f32.mrb[20].mxu1 }
 0xdf8   : > { %v1519_v21 = vadd.f32 %v1518_v0, %v1509_v20  ;;  %v1941_v22 = vpop.f32.mrb[21].mxu1 }
 0xdf9   : > { %v1512_v23 = vpop.f32.mrb[22].mxu1 }
 0xdfa   : > { %v1520_v24 = vadd.f32 %v1519_v21, %v2622_v31  ;;  %v1942_v25 = vpop.f32.mrb[23].mxu1 }
 0xdfc   : > { %1521 = vst [vmem:[%s263_s10] sm:$0xff] %v1520_v24 }
 0xdfd   : > { %2225 = shalt.err (!%p2222_p1)
}
 0xdfe   : > { %s2226_s11 = scalar_lea.hbm %s2653_s29, 128  ;;  %s2230_s12 = scalar_lea.hbm %s2701_s4, 256 }
 0xdff   : > { %p2227_p6 = scmp.ne.s32.totalorder %s2653_s29, %s2226_s11  ;;  %p2231_p12 = scmp.lt.u32.totalorder %s2653_s29, %s2701_s4 }
 0xe00   : > { %p2232_p11 = scmp.lt.u32.totalorder %s2230_s12, %s2226_s11  ;;  %p2234_p10 = scmp.lt.u32.totalorder %s2226_s11, %s2653_s29 }
 0xe01   : > { %p2228_p8 = pnand %p2227_p6, %p2719_p13 }
 0xe02   : > { %p2233_p0 = por %p2232_p11, %p2231_p12 }
 0xe03   : > { %p2229_p4 = pneg %p2228_p8 }
 0xe04   : > { %p2235_p3 = por %p2234_p10, %p2233_p0 }
 0xe06   : > { %p2236_p7 = pnand %p2235_p3, %p2229_p4 }
 0xe08   : > { %2239 = shalt.err (!%p2236_p7)
}
 0xe09   : > { %1951 = dma.vmem_to_hbm [thread:$0]  (%p2719_p13), %s2655_s2, 128, %s2653_s29, %s1523_s19  }
 0xe0a PF: > { %s1548_s26 = sand.u32 1, %s2274_s15   ;;  %p2720_p9 = scmp.ne.s32.totalorder %s2708_s22, 0 }
 0xe0b   : > { %p2721_p2 = scmp.ge.s32.totalorder %s2286_s18, 2  ;;  %s1549_s5 = scalar_lea.sflag [#allocation6], %s1548_s26 }
 0xe0d   : > { %p1965_p5 = pnand %p2721_p2, %p2720_p9 }
 0xe0f   : > { %2269 = dma.done.wait (!%p1965_p5), %s1549_s5, 128  }
 0xe10   : > { %2271 = vsyncadd (!%p1965_p5), %s1549_s5, 4294967168  ;;  %p20_p1 = scmp.ge.s32.totalorder %s2378_s27, 4   ;;  %s2722_s15 = smov %s2278_s16 }
 0xe11   : > { %s2723_s16 = smov %s2282_s17  ;;  %s2724_s17 = smov %s2409_s24 }
 0xe12   : > { %s2725_s18 = smov %s2378_s27  ;;  %22 = sbr.rel (!%p20_p1) target bundleno = 9 (0x9), region = 98 }
 0xe19   :  { %1554 = vsyncpa [#allocation5], 1 }
 0xe1a   :  { %1556 = vsyncpa [#allocation5 + $0x1], 1 }
 0xe1b   :  { %1557 = vsyncpa [#allocation8], 1 }
 0xe1c   :  { %1559 = vsyncpa [#allocation8 + $0x1], 1 }
 0xe1d   :  { %1560 = vsyncpa [#allocation6], 1 }
 0xe1e   :  { %1562 = vsyncpa [#allocation6 + $0x1], 1 }

</bundles_post_ra>
